<compile_context>
chip_gen: v5e
topology: v5e:2x2
jax: 0.10.0
libtpu: 0.0.40
codegen_flags: <defaults>
</compile_context>

<pallas_src>
import math
import functools

import jax
import jax.numpy as jnp
from jax.experimental import pallas as pl
from jax.experimental.pallas import tpu as pltpu


def _round_up(x, m):
    return ((x + m - 1) // m) * m


def _pad2d(a, rows, cols, dtype=None):
    r, c = a.shape
    out = jnp.pad(a, ((0, rows - r), (0, cols - c)))
    return out.astype(dtype) if dtype is not None else out


# ----------------------------------------------------------------------------
# One-time parameter packing (hoisted out of the forward pass).
# ----------------------------------------------------------------------------
def pack_params(params):
    """Pad to vreg granules, fuse gates, cast MXU operands to bf16. Run once."""
    emb_table = params["emb_table"]
    V, E = emb_table.shape
    H = params["W_gh"].shape[0]

    E_pad = _round_up(E, 128)
    H_pad = _round_up(H, 128)
    V_pad = _round_up(V, 128)

    def gx(n):
        return _pad2d(params[n], E_pad, H_pad, jnp.bfloat16)

    def gh(n):
        return _pad2d(params[n], H_pad, H_pad, jnp.bfloat16)

    def gb(n):
        return _pad2d(params[n], 1, H_pad, jnp.float32)

    packed = {
        # Fused [g|i|f|o] weights, bf16 MXU operands (f32 accumulation in-kernel).
        "W_x": jnp.concatenate([gx("W_gx"), gx("W_ix"), gx("W_fx"), gx("W_ox")], axis=1),
        "W_h": jnp.concatenate([gh("W_gh"), gh("W_ih"), gh("W_fh"), gh("W_oh")], axis=1),
        "b":   jnp.concatenate([gb("b_g"), gb("b_i"), gb("b_f"), gb("b_o")], axis=1),
        "W_out": _pad2d(params["W_out"], H_pad, V_pad, jnp.bfloat16),
        "b_out": _pad2d(params["b_out"], 1, V_pad, jnp.float32),
        "emb": jnp.pad(emb_table, ((0, 0), (0, E_pad - E))).astype(jnp.bfloat16),
    }
    dims = dict(E=E, H=H, V=V, E_pad=E_pad, H_pad=H_pad, V_pad=V_pad)
    return packed, dims


# ----------------------------------------------------------------------------
# Kernel 1: LSTM recurrence over one time chunk (sequential grid axis).
# ----------------------------------------------------------------------------
def _lstm_chunk_kernel(emb_ref, wx_ref, wh_ref, b_ref, hid_ref,
                       h_sc, c_sc, xz_sc, *, b_pad, h_pad, t_chunk, unroll):
    """emb_ref : (t_chunk*b_pad, E_pad) bf16   chunk of embedded inputs
    wx_ref  : (E_pad, 4*h_pad) bf16          fused [g|i|f|o] input weights
    wh_ref  : (h_pad, 4*h_pad) bf16          fused [g|i|f|o] recurrent weights
    b_ref   : (1, 4*h_pad) f32               fused gate biases
    hid_ref : (t_chunk*b_pad, h_pad) bf16    hidden states (output)
    h_sc/c_sc : (b_pad, h_pad) f32           recurrent state, carried across chunks
    xz_sc   : (t_chunk*b_pad, 4*h_pad) f32   x @ W_x + b for the chunk
    """
    # h_0 = c_0 = 0 (torch.zeros in the reference forward).
    @pl.when(pl.program_id(0) == 0)
    def _():
        h_sc[...] = jnp.zeros_like(h_sc)
        c_sc[...] = jnp.zeros_like(c_sc)

    # Whole-chunk input projection (lane-dense bf16 MXU matmul, f32 acc) with
    # the gate bias folded in once, off the serial critical path.
    xz_sc[...] = (jnp.dot(emb_ref[...], wx_ref[...],
                          preferred_element_type=jnp.float32)
                  + b_ref[...])

    def step(t, carry):
        h, c = carry
        off = pl.multiple_of(t * b_pad, b_pad)
        z = xz_sc[pl.ds(off, b_pad), :] + jnp.dot(
            h.astype(jnp.bfloat16), wh_ref[...],
            preferred_element_type=jnp.float32)
        # Gate slices are 128-lane aligned because h_pad % 128 == 0.
        # Elementwise gate math stays f32 (no bf16 VPU/EUP on v5e).
        g_t = jnp.tanh(z[:, 0 * h_pad:1 * h_pad])
        i_t = jax.nn.sigmoid(z[:, 1 * h_pad:2 * h_pad])
        f_t = jax.nn.sigmoid(z[:, 2 * h_pad:3 * h_pad])
        o_t = jax.nn.sigmoid(z[:, 3 * h_pad:4 * h_pad])
        c_new = g_t * i_t + c * f_t
        h_new = jnp.tanh(c_new) * o_t
        hid_ref[pl.ds(off, b_pad), :] = h_new.astype(hid_ref.dtype)
        return h_new, c_new

    h_f, c_f = jax.lax.fori_loop(0, t_chunk, step,
                                 (h_sc[...], c_sc[...]), unroll=unroll)
    h_sc[...] = h_f
    c_sc[...] = c_f


# ----------------------------------------------------------------------------
# Kernel 2: vocabulary projection (embarrassingly parallel tiled matmul).
# ----------------------------------------------------------------------------
def _vocab_proj_kernel(h_ref, w_ref, b_ref, o_ref):
    o_ref[...] = (jnp.dot(h_ref[...], w_ref[...],
                          preferred_element_type=jnp.float32)
                  + b_ref[...]).astype(o_ref.dtype)


# ----------------------------------------------------------------------------
# Forward pass.
# ----------------------------------------------------------------------------
def text_generation_forward(x_tokens, packed, dims, *, t_chunk=32,
                            logits_dtype=jnp.float32):
    """x_tokens: int32 [T, B] (time-major, as the PyTorch model consumes them).
    packed/dims: output of pack_params(params) (computed once).
    Returns logits [T, B, V].

    t_chunk: 32 (256 rows) targets v6e/v7x's 256-wide MXU; use 16 on v5e.
    logits_dtype: set to jnp.bfloat16 to halve the logits HBM writeback if the
    downstream softmax/sampling tolerates it.
    """
    T, B = x_tokens.shape
    E_pad, H_pad, V_pad, V = dims["E_pad"], dims["H_pad"], dims["V_pad"], dims["V"]

    B_pad = _round_up(max(B, 8), 8)
    t_chunk = max(1, min(t_chunk, _round_up(T, 8)))   # don't over-pad tiny sequences
    T_pad = _round_up(T, t_chunk)
    n_chunks = T_pad // t_chunk
    rows_per_chunk = t_chunk * B_pad

    # Pad the int32 token ids (cheap) before the gather so the gather directly
    # emits the padded bf16 layout -- no post-gather activation pad copy in HBM.
    # Padded batch columns / time steps compute garbage that is sliced off and
    # cannot contaminate real rows (batch rows evolve independently).
    ids = jnp.pad(x_tokens, ((0, T_pad - T), (0, B_pad - B)))
    embeds = packed["emb"][ids].reshape(T_pad * B_pad, E_pad)        # bf16
    # TODO(synk): fuse the gather in-kernel via scalar-prefetched token ids to
    # avoid materializing (T_pad*B_pad, E_pad) in HBM for very long sequences.

    # Full unroll only while the per-step live set fits the 64 vregs.
    unroll = True if H_pad <= 256 else 2

    kernel = functools.partial(_lstm_chunk_kernel, b_pad=B_pad, h_pad=H_pad,
                               t_chunk=t_chunk, unroll=unroll)

    # Constant-index weights: single-buffered (double-buffering a constant
    # block buys nothing and doubles its VMEM footprint).
    def const_spec(shape):
        return pl.BlockSpec(shape, lambda c: (0, 0), pipeline_mode=pl.Buffered(1))

    # Explicit per-chunk VMEM budget -> scoped limit.  Re-derive when sizing
    # t_chunk per generation (keep total under ~48-56 MiB for v7x's 64 MiB).
    est = (2 * rows_per_chunk * E_pad * 2        # embeds tile, 2 bufs, bf16
           + 2 * rows_per_chunk * H_pad * 2      # hidden-out tile, 2 bufs, bf16
           + (E_pad + H_pad) * 4 * H_pad * 2     # W_x + W_h, single-buffered, bf16
           + 4 * H_pad * 4                       # gate bias
           + rows_per_chunk * 4 * H_pad * 4      # xz scratch, f32
           + 2 * B_pad * H_pad * 4)              # h/c carries, f32
    vmem_limit = int(min(64 * 1024 * 1024, max(32 * 1024 * 1024, 2 * est)))

    hidden = pl.pallas_call(
        kernel,
        out_shape=jax.ShapeDtypeStruct((T_pad * B_pad, H_pad), jnp.bfloat16),
        grid_spec=pltpu.PrefetchScalarGridSpec(
            num_scalar_prefetch=0,
            grid=(n_chunks,),
            in_specs=[
                pl.BlockSpec((rows_per_chunk, E_pad), lambda c: (c, 0)),  # embeds
                const_spec((E_pad, 4 * H_pad)),                           # W_x
                const_spec((H_pad, 4 * H_pad)),                           # W_h
                const_spec((1, 4 * H_pad)),                               # gate bias
            ],
            out_specs=pl.BlockSpec((rows_per_chunk, H_pad), lambda c: (c, 0)),
            scratch_shapes=[
                pltpu.VMEM((B_pad, H_pad), jnp.float32),                  # h carry
                pltpu.VMEM((B_pad, H_pad), jnp.float32),                  # c carry
                pltpu.VMEM((rows_per_chunk, 4 * H_pad), jnp.float32),     # x@W_x + b
            ],
        ),
        compiler_params=pltpu.CompilerParams(
            # Time chunks carry h/c -> must stay sequential ("arbitrary").
            dimension_semantics=("arbitrary",),
            vmem_limit_bytes=vmem_limit),
    )(embeds, packed["W_x"], packed["W_h"], packed["b"])

    # ---- deferred vocab projection: separate tiled-matmul kernel -----------
    # Row-compact to T*B rows first: with B=2 padded to 8 sublanes, 75% of the
    # V-wide matmul FLOPs and of the logits HBM writeback would be garbage.
    R = T * B
    tr = min(256, _round_up(R, 8))
    R_pad = _round_up(R, tr)
    hid = hidden.reshape(T_pad, B_pad, H_pad)[:T, :B].reshape(R, H_pad)
    hid = jnp.pad(hid, ((0, R_pad - R), (0, 0)))

    tv = next(t for t in (512, 256, 128) if V_pad % t == 0)   # streamed W_out tiles

    logits = pl.pallas_call(
        _vocab_proj_kernel,
        out_shape=jax.ShapeDtypeStruct((R_pad, V_pad), logits_dtype),
        grid_spec=pltpu.PrefetchScalarGridSpec(
            num_scalar_prefetch=0,
            grid=(R_pad // tr, V_pad // tv),
            in_specs=[
                pl.BlockSpec((tr, H_pad), lambda i, j: (i, 0)),   # hidden rows
                pl.BlockSpec((H_pad, tv), lambda i, j: (0, j)),   # W_out V-tile
                pl.BlockSpec((1, tv), lambda i, j: (0, j)),       # b_out V-tile
            ],
            out_specs=pl.BlockSpec((tr, tv), lambda i, j: (i, j)),
        ),
        compiler_params=pltpu.CompilerParams(
            # Independent tiles -> shards across v7x's two TensorCores.
            dimension_semantics=("parallel", "parallel")),
    )(hid, packed["W_out"], packed["b_out"])

    return logits[:R, :V].reshape(T, B, V)


# ----------------------------------------------------------------------------
# Parameter init & pure-JAX reference (mirrors the PyTorch module).
# ----------------------------------------------------------------------------
def init_params(key, vocab_size, embed_size, hidden_dim):
    """Deterministic parameter init mirroring the PyTorch module's __init__."""
    keys = jax.random.split(key, 16)
    bound = 1.0 / math.sqrt(hidden_dim)

    def u(k, shape):
        return jax.random.uniform(k, shape, jnp.float32, -bound, bound)

    params = {
        "W_gx": u(keys[0], (embed_size, hidden_dim)),
        "W_ix": u(keys[1], (embed_size, hidden_dim)),
        "W_fx": u(keys[2], (embed_size, hidden_dim)),
        "W_ox": u(keys[3], (embed_size, hidden_dim)),
        "W_gh": u(keys[4], (hidden_dim, hidden_dim)),
        "W_ih": u(keys[5], (hidden_dim, hidden_dim)),
        "W_fh": u(keys[6], (hidden_dim, hidden_dim)),
        "W_oh": u(keys[7], (hidden_dim, hidden_dim)),
        "b_g": u(keys[8], (1, hidden_dim)),
        "b_i": u(keys[9], (1, hidden_dim)),
        "b_f": u(keys[10], (1, hidden_dim)) + 1.0,   # forget-gate bias + 1
        "b_o": u(keys[11], (1, hidden_dim)),
        # NOTE: W_ph / b_h exist in the PyTorch module but are unused in forward().
        # nn.Embedding default init ~ N(0, 1)
        "emb_table": jax.random.normal(keys[12], (vocab_size, embed_size),
                                       jnp.float32),
        # nn.Linear default init U(-1/sqrt(H), 1/sqrt(H))
        "W_out": jax.random.uniform(keys[13], (hidden_dim, vocab_size),
                                    jnp.float32, -bound, bound),
        "b_out": jax.random.uniform(keys[14], (1, vocab_size),
                                    jnp.float32, -bound, bound),
    }
    return params


def reference_forward(x_tokens, params):
    """Pure-JAX f32 reference (mirrors the PyTorch forward) for verification."""
    embeds = params["emb_table"][x_tokens]     # (T, B, E)
    H = params["W_gh"].shape[0]
    B = x_tokens.shape[1]

    def step(carry, emb_t):
        h, c = carry
        g = jnp.tanh(emb_t @ params["W_gx"] + h @ params["W_gh"] + params["b_g"])
        i = jax.nn.sigmoid(emb_t @ params["W_ix"] + h @ params["W_ih"] + params["b_i"])
        f = jax.nn.sigmoid(emb_t @ params["W_fx"] + h @ params["W_fh"] + params["b_f"])
        o = jax.nn.sigmoid(emb_t @ params["W_ox"] + h @ params["W_oh"] + params["b_o"])
        c = g * i + c * f
        h = jnp.tanh(c) * o
        return (h, c), h

    h0 = jnp.zeros((B, H), jnp.float32)
    c0 = jnp.zeros((B, H), jnp.float32)
    _, hs = jax.lax.scan(step, (h0, c0), embeds)
    return hs @ params["W_out"] + params["b_out"]


if __name__ == "__main__":
    # Small shapes consistent with the module's forward.
    vocab_size = 16
    embed_size = 32
    hidden_dim = 32
    seq_len = 8
    batch = 2

    key = jax.random.PRNGKey(0)
    pkey, xkey = jax.random.split(key)
    params = init_params(pkey, vocab_size, embed_size, hidden_dim)
    packed, dims = pack_params(params)          # one-time weight packing

    # Input token ids, time-major [T, B] (as the PyTorch model consumes them).
    x = jax.random.randint(xkey, (seq_len, batch), 0, vocab_size, dtype=jnp.int32)

    out = text_generation_forward(x, packed, dims)
    out = jax.block_until_ready(out)

    ref = reference_forward(x, params)
    assert out.shape == (seq_len, batch, vocab_size)
    # bf16 MXU operands -> looser tolerance than the all-f32 version.
    assert jnp.allclose(out, ref, atol=2e-2, rtol=2e-2), "mismatch vs reference"

    print("KERNEL_OK")
</pallas_src>

<mosaic_0001>
module attributes {stable_mosaic.version = 11 : i64} {
  func.func @_lstm_chunk_kernel(%arg0: i32, %arg1: memref<64x128xbf16, #tpu.memory_space<vmem>>, %arg2: memref<128x512xbf16, #tpu.memory_space<vmem>>, %arg3: memref<128x512xbf16, #tpu.memory_space<vmem>>, %arg4: memref<1x512xf32, #tpu.memory_space<vmem>>, %arg5: memref<64x128xbf16, #tpu.memory_space<vmem>>, %arg6: memref<8x128xf32, #tpu.memory_space<vmem>>, %arg7: memref<8x128xf32, #tpu.memory_space<vmem>>, %arg8: memref<64x512xf32, #tpu.memory_space<vmem>>) attributes {dimension_semantics = [#tpu.dimension_semantics<arbitrary>], iteration_bounds = array<i64: 1>, scalar_prefetch = 0 : i64, scratch_operands = 3 : i64, tpu.core_type = #tpu.core_type<tc>, window_params = [{transform_indices = @transform_0, window_bounds = array<i64: 64, 128>}, {pipeline_mode = #tpu.pipeline_mode<synchronous>, transform_indices = @transform_1, window_bounds = array<i64: 128, 512>}, {pipeline_mode = #tpu.pipeline_mode<synchronous>, transform_indices = @transform_2, window_bounds = array<i64: 128, 512>}, {pipeline_mode = #tpu.pipeline_mode<synchronous>, transform_indices = @transform_3, window_bounds = array<i64: 1, 512>}, {transform_indices = @transform_4, window_bounds = array<i64: 64, 128>}]} {
    %c0_i32 = arith.constant 0 : i32
    %0 = arith.cmpi eq, %arg0, %c0_i32 : i32
    %1 = arith.extui %0 : i1 to i32
    %c0_i32_0 = arith.constant 0 : i32
    %2 = arith.cmpi ne, %1, %c0_i32_0 : i32
    scf.if %2 {
      %cst_89 = arith.constant 0.000000e+00 : f32
      %302 = vector.broadcast %cst_89 : f32 to vector<8x128xf32>
      %c0_90 = arith.constant 0 : index
      %c0_91 = arith.constant 0 : index
      %303 = vector.load %arg6[%c0_90, %c0_91] : memref<8x128xf32, #tpu.memory_space<vmem>>, vector<8x128xf32>
      tpu.vector_store %arg6[%c0_90, %c0_91], %302 {strides = array<i32>} : memref<8x128xf32, #tpu.memory_space<vmem>>, vector<8x128xf32>,
      %cst_92 = arith.constant 0.000000e+00 : f32
      %304 = vector.broadcast %cst_92 : f32 to vector<8x128xf32>
      %c0_93 = arith.constant 0 : index
      %c0_94 = arith.constant 0 : index
      %305 = vector.load %arg7[%c0_93, %c0_94] : memref<8x128xf32, #tpu.memory_space<vmem>>, vector<8x128xf32>
      tpu.vector_store %arg7[%c0_93, %c0_94], %304 {strides = array<i32>} : memref<8x128xf32, #tpu.memory_space<vmem>>, vector<8x128xf32>,
    } else {
    }
    %c0 = arith.constant 0 : index
    %c0_1 = arith.constant 0 : index
    %3 = vector.load %arg1[%c0, %c0_1] : memref<64x128xbf16, #tpu.memory_space<vmem>>, vector<64x128xbf16>
    %c0_2 = arith.constant 0 : index
    %c0_3 = arith.constant 0 : index
    %4 = vector.load %arg2[%c0_2, %c0_3] : memref<128x512xbf16, #tpu.memory_space<vmem>>, vector<128x512xbf16>
    %cst = arith.constant dense<0.000000e+00> : vector<64x512xf32>
    %5 = tpu.matmul %3, %4, %cst {dimension_numbers = #tpu.dot_dimension_numbers<[1], [0], [0], [1], [0, 0, 1, 1], [], []>} : vector<64x128xbf16>, vector<128x512xbf16>, vector<64x512xf32> -> vector<64x512xf32>
    %c0_4 = arith.constant 0 : index
    %c0_5 = arith.constant 0 : index
    %6 = vector.load %arg4[%c0_4, %c0_5] : memref<1x512xf32, #tpu.memory_space<vmem>>, vector<1x512xf32>
    %7 = vector.broadcast %6 : vector<1x512xf32> to vector<64x512xf32>
    %8 = arith.addf %5, %7 : vector<64x512xf32>
    %c0_6 = arith.constant 0 : index
    %c0_7 = arith.constant 0 : index
    %9 = vector.load %arg8[%c0_6, %c0_7] : memref<64x512xf32, #tpu.memory_space<vmem>>, vector<64x512xf32>
    tpu.vector_store %arg8[%c0_6, %c0_7], %8 {strides = array<i32>} : memref<64x512xf32, #tpu.memory_space<vmem>>, vector<64x512xf32>,
    %c0_8 = arith.constant 0 : index
    %c0_9 = arith.constant 0 : index
    %10 = vector.load %arg6[%c0_8, %c0_9] : memref<8x128xf32, #tpu.memory_space<vmem>>, vector<8x128xf32>
    %c0_10 = arith.constant 0 : index
    %c0_11 = arith.constant 0 : index
    %11 = vector.load %arg7[%c0_10, %c0_11] : memref<8x128xf32, #tpu.memory_space<vmem>>, vector<8x128xf32>
    %c0_i32_12 = arith.constant 0 : i32
    %c8_i32 = arith.constant 8 : i32
    %12 = arith.muli %c0_i32_12, %c8_i32 : i32
    %13 = tpu.assume_multiple %12, 8 : i32
    %14 = arith.index_cast %13 : i32 to index
    %c0_13 = arith.constant 0 : index
    %15 = vector.load %arg8[%14, %c0_13] : memref<64x512xf32, #tpu.memory_space<vmem>>, vector<8x512xf32>
    %16 = arith.truncf %10 : vector<8x128xf32> to vector<8x128xbf16>
    %c0_14 = arith.constant 0 : index
    %c0_15 = arith.constant 0 : index
    %17 = vector.load %arg3[%c0_14, %c0_15] : memref<128x512xbf16, #tpu.memory_space<vmem>>, vector<128x512xbf16>
    %cst_16 = arith.constant dense<0.000000e+00> : vector<8x512xf32>
    %18 = tpu.matmul %16, %17, %cst_16 {dimension_numbers = #tpu.dot_dimension_numbers<[1], [0], [0], [1], [0, 0, 1, 1], [], []>} : vector<8x128xbf16>, vector<128x512xbf16>, vector<8x512xf32> -> vector<8x512xf32>
    %19 = arith.addf %15, %18 : vector<8x512xf32>
    %20 = vector.extract_strided_slice %19 {offsets = [0, 0], sizes = [8, 128], strides = [1, 1]} : vector<8x512xf32> to vector<8x128xf32>
    %21 = math.tanh %20 : vector<8x128xf32>
    %22 = vector.extract_strided_slice %19 {offsets = [0, 128], sizes = [8, 128], strides = [1, 1]} : vector<8x512xf32> to vector<8x128xf32>
    %23 = arith.negf %22 : vector<8x128xf32>
    %24 = math.exp %23 : vector<8x128xf32>
    %cst_17 = arith.constant 1.000000e+00 : f32
    %25 = vector.broadcast %cst_17 : f32 to vector<8x128xf32>
    %26 = arith.addf %25, %24 : vector<8x128xf32>
    %27 = arith.divf %25, %26 : vector<8x128xf32>
    %28 = vector.extract_strided_slice %19 {offsets = [0, 256], sizes = [8, 128], strides = [1, 1]} : vector<8x512xf32> to vector<8x128xf32>
    %29 = arith.negf %28 : vector<8x128xf32>
    %30 = math.exp %29 : vector<8x128xf32>
    %cst_18 = arith.constant 1.000000e+00 : f32
    %31 = vector.broadcast %cst_18 : f32 to vector<8x128xf32>
    %32 = arith.addf %31, %30 : vector<8x128xf32>
    %33 = arith.divf %31, %32 : vector<8x128xf32>
    %34 = vector.extract_strided_slice %19 {offsets = [0, 384], sizes = [8, 128], strides = [1, 1]} : vector<8x512xf32> to vector<8x128xf32>
    %35 = arith.negf %34 : vector<8x128xf32>
    %36 = math.exp %35 : vector<8x128xf32>
    %cst_19 = arith.constant 1.000000e+00 : f32
    %37 = vector.broadcast %cst_19 : f32 to vector<8x128xf32>
    %38 = arith.addf %37, %36 : vector<8x128xf32>
    %39 = arith.divf %37, %38 : vector<8x128xf32>
    %40 = arith.mulf %21, %27 : vector<8x128xf32>
    %41 = arith.mulf %11, %33 : vector<8x128xf32>
    %42 = arith.addf %40, %41 : vector<8x128xf32>
    %43 = math.tanh %42 : vector<8x128xf32>
    %44 = arith.mulf %43, %39 : vector<8x128xf32>
    %45 = arith.truncf %44 : vector<8x128xf32> to vector<8x128xbf16>
    %46 = arith.index_cast %13 : i32 to index
    %c0_20 = arith.constant 0 : index
    %47 = vector.load %arg5[%46, %c0_20] : memref<64x128xbf16, #tpu.memory_space<vmem>>, vector<8x128xbf16>
    tpu.vector_store %arg5[%46, %c0_20], %45 {strides = array<i32>} : memref<64x128xbf16, #tpu.memory_space<vmem>>, vector<8x128xbf16>,
    %c1_i32 = arith.constant 1 : i32
    %c8_i32_21 = arith.constant 8 : i32
    %48 = arith.muli %c1_i32, %c8_i32_21 : i32
    %49 = tpu.assume_multiple %48, 8 : i32
    %50 = arith.index_cast %49 : i32 to index
    %c0_22 = arith.constant 0 : index
    %51 = vector.load %arg8[%50, %c0_22] : memref<64x512xf32, #tpu.memory_space<vmem>>, vector<8x512xf32>
    %52 = arith.truncf %44 : vector<8x128xf32> to vector<8x128xbf16>
    %c0_23 = arith.constant 0 : index
    %c0_24 = arith.constant 0 : index
    %53 = vector.load %arg3[%c0_23, %c0_24] : memref<128x512xbf16, #tpu.memory_space<vmem>>, vector<128x512xbf16>
    %cst_25 = arith.constant dense<0.000000e+00> : vector<8x512xf32>
    %54 = tpu.matmul %52, %53, %cst_25 {dimension_numbers = #tpu.dot_dimension_numbers<[1], [0], [0], [1], [0, 0, 1, 1], [], []>} : vector<8x128xbf16>, vector<128x512xbf16>, vector<8x512xf32> -> vector<8x512xf32>
    %55 = arith.addf %51, %54 : vector<8x512xf32>
    %56 = vector.extract_strided_slice %55 {offsets = [0, 0], sizes = [8, 128], strides = [1, 1]} : vector<8x512xf32> to vector<8x128xf32>
    %57 = math.tanh %56 : vector<8x128xf32>
    %58 = vector.extract_strided_slice %55 {offsets = [0, 128], sizes = [8, 128], strides = [1, 1]} : vector<8x512xf32> to vector<8x128xf32>
    %59 = arith.negf %58 : vector<8x128xf32>
    %60 = math.exp %59 : vector<8x128xf32>
    %cst_26 = arith.constant 1.000000e+00 : f32
    %61 = vector.broadcast %cst_26 : f32 to vector<8x128xf32>
    %62 = arith.addf %61, %60 : vector<8x128xf32>
    %63 = arith.divf %61, %62 : vector<8x128xf32>
    %64 = vector.extract_strided_slice %55 {offsets = [0, 256], sizes = [8, 128], strides = [1, 1]} : vector<8x512xf32> to vector<8x128xf32>
    %65 = arith.negf %64 : vector<8x128xf32>
    %66 = math.exp %65 : vector<8x128xf32>
    %cst_27 = arith.constant 1.000000e+00 : f32
    %67 = vector.broadcast %cst_27 : f32 to vector<8x128xf32>
    %68 = arith.addf %67, %66 : vector<8x128xf32>
    %69 = arith.divf %67, %68 : vector<8x128xf32>
    %70 = vector.extract_strided_slice %55 {offsets = [0, 384], sizes = [8, 128], strides = [1, 1]} : vector<8x512xf32> to vector<8x128xf32>
    %71 = arith.negf %70 : vector<8x128xf32>
    %72 = math.exp %71 : vector<8x128xf32>
    %cst_28 = arith.constant 1.000000e+00 : f32
    %73 = vector.broadcast %cst_28 : f32 to vector<8x128xf32>
    %74 = arith.addf %73, %72 : vector<8x128xf32>
    %75 = arith.divf %73, %74 : vector<8x128xf32>
    %76 = arith.mulf %57, %63 : vector<8x128xf32>
    %77 = arith.mulf %42, %69 : vector<8x128xf32>
    %78 = arith.addf %76, %77 : vector<8x128xf32>
    %79 = math.tanh %78 : vector<8x128xf32>
    %80 = arith.mulf %79, %75 : vector<8x128xf32>
    %81 = arith.truncf %80 : vector<8x128xf32> to vector<8x128xbf16>
    %82 = arith.index_cast %49 : i32 to index
    %c0_29 = arith.constant 0 : index
    %83 = vector.load %arg5[%82, %c0_29] : memref<64x128xbf16, #tpu.memory_space<vmem>>, vector<8x128xbf16>
    tpu.vector_store %arg5[%82, %c0_29], %81 {strides = array<i32>} : memref<64x128xbf16, #tpu.memory_space<vmem>>, vector<8x128xbf16>,
    %c2_i32 = arith.constant 2 : i32
    %c8_i32_30 = arith.constant 8 : i32
    %84 = arith.muli %c2_i32, %c8_i32_30 : i32
    %85 = tpu.assume_multiple %84, 8 : i32
    %86 = arith.index_cast %85 : i32 to index
    %c0_31 = arith.constant 0 : index
    %87 = vector.load %arg8[%86, %c0_31] : memref<64x512xf32, #tpu.memory_space<vmem>>, vector<8x512xf32>
    %88 = arith.truncf %80 : vector<8x128xf32> to vector<8x128xbf16>
    %c0_32 = arith.constant 0 : index
    %c0_33 = arith.constant 0 : index
    %89 = vector.load %arg3[%c0_32, %c0_33] : memref<128x512xbf16, #tpu.memory_space<vmem>>, vector<128x512xbf16>
    %cst_34 = arith.constant dense<0.000000e+00> : vector<8x512xf32>
    %90 = tpu.matmul %88, %89, %cst_34 {dimension_numbers = #tpu.dot_dimension_numbers<[1], [0], [0], [1], [0, 0, 1, 1], [], []>} : vector<8x128xbf16>, vector<128x512xbf16>, vector<8x512xf32> -> vector<8x512xf32>
    %91 = arith.addf %87, %90 : vector<8x512xf32>
    %92 = vector.extract_strided_slice %91 {offsets = [0, 0], sizes = [8, 128], strides = [1, 1]} : vector<8x512xf32> to vector<8x128xf32>
    %93 = math.tanh %92 : vector<8x128xf32>
    %94 = vector.extract_strided_slice %91 {offsets = [0, 128], sizes = [8, 128], strides = [1, 1]} : vector<8x512xf32> to vector<8x128xf32>
    %95 = arith.negf %94 : vector<8x128xf32>
    %96 = math.exp %95 : vector<8x128xf32>
    %cst_35 = arith.constant 1.000000e+00 : f32
    %97 = vector.broadcast %cst_35 : f32 to vector<8x128xf32>
    %98 = arith.addf %97, %96 : vector<8x128xf32>
    %99 = arith.divf %97, %98 : vector<8x128xf32>
    %100 = vector.extract_strided_slice %91 {offsets = [0, 256], sizes = [8, 128], strides = [1, 1]} : vector<8x512xf32> to vector<8x128xf32>
    %101 = arith.negf %100 : vector<8x128xf32>
    %102 = math.exp %101 : vector<8x128xf32>
    %cst_36 = arith.constant 1.000000e+00 : f32
    %103 = vector.broadcast %cst_36 : f32 to vector<8x128xf32>
    %104 = arith.addf %103, %102 : vector<8x128xf32>
    %105 = arith.divf %103, %104 : vector<8x128xf32>
    %106 = vector.extract_strided_slice %91 {offsets = [0, 384], sizes = [8, 128], strides = [1, 1]} : vector<8x512xf32> to vector<8x128xf32>
    %107 = arith.negf %106 : vector<8x128xf32>
    %108 = math.exp %107 : vector<8x128xf32>
    %cst_37 = arith.constant 1.000000e+00 : f32
    %109 = vector.broadcast %cst_37 : f32 to vector<8x128xf32>
    %110 = arith.addf %109, %108 : vector<8x128xf32>
    %111 = arith.divf %109, %110 : vector<8x128xf32>
    %112 = arith.mulf %93, %99 : vector<8x128xf32>
    %113 = arith.mulf %78, %105 : vector<8x128xf32>
    %114 = arith.addf %112, %113 : vector<8x128xf32>
    %115 = math.tanh %114 : vector<8x128xf32>
    %116 = arith.mulf %115, %111 : vector<8x128xf32>
    %117 = arith.truncf %116 : vector<8x128xf32> to vector<8x128xbf16>
    %118 = arith.index_cast %85 : i32 to index
    %c0_38 = arith.constant 0 : index
    %119 = vector.load %arg5[%118, %c0_38] : memref<64x128xbf16, #tpu.memory_space<vmem>>, vector<8x128xbf16>
    tpu.vector_store %arg5[%118, %c0_38], %117 {strides = array<i32>} : memref<64x128xbf16, #tpu.memory_space<vmem>>, vector<8x128xbf16>,
    %c3_i32 = arith.constant 3 : i32
    %c8_i32_39 = arith.constant 8 : i32
    %120 = arith.muli %c3_i32, %c8_i32_39 : i32
    %121 = tpu.assume_multiple %120, 8 : i32
    %122 = arith.index_cast %121 : i32 to index
    %c0_40 = arith.constant 0 : index
    %123 = vector.load %arg8[%122, %c0_40] : memref<64x512xf32, #tpu.memory_space<vmem>>, vector<8x512xf32>
    %124 = arith.truncf %116 : vector<8x128xf32> to vector<8x128xbf16>
    %c0_41 = arith.constant 0 : index
    %c0_42 = arith.constant 0 : index
    %125 = vector.load %arg3[%c0_41, %c0_42] : memref<128x512xbf16, #tpu.memory_space<vmem>>, vector<128x512xbf16>
    %cst_43 = arith.constant dense<0.000000e+00> : vector<8x512xf32>
    %126 = tpu.matmul %124, %125, %cst_43 {dimension_numbers = #tpu.dot_dimension_numbers<[1], [0], [0], [1], [0, 0, 1, 1], [], []>} : vector<8x128xbf16>, vector<128x512xbf16>, vector<8x512xf32> -> vector<8x512xf32>
    %127 = arith.addf %123, %126 : vector<8x512xf32>
    %128 = vector.extract_strided_slice %127 {offsets = [0, 0], sizes = [8, 128], strides = [1, 1]} : vector<8x512xf32> to vector<8x128xf32>
    %129 = math.tanh %128 : vector<8x128xf32>
    %130 = vector.extract_strided_slice %127 {offsets = [0, 128], sizes = [8, 128], strides = [1, 1]} : vector<8x512xf32> to vector<8x128xf32>
    %131 = arith.negf %130 : vector<8x128xf32>
    %132 = math.exp %131 : vector<8x128xf32>
    %cst_44 = arith.constant 1.000000e+00 : f32
    %133 = vector.broadcast %cst_44 : f32 to vector<8x128xf32>
    %134 = arith.addf %133, %132 : vector<8x128xf32>
    %135 = arith.divf %133, %134 : vector<8x128xf32>
    %136 = vector.extract_strided_slice %127 {offsets = [0, 256], sizes = [8, 128], strides = [1, 1]} : vector<8x512xf32> to vector<8x128xf32>
    %137 = arith.negf %136 : vector<8x128xf32>
    %138 = math.exp %137 : vector<8x128xf32>
    %cst_45 = arith.constant 1.000000e+00 : f32
    %139 = vector.broadcast %cst_45 : f32 to vector<8x128xf32>
    %140 = arith.addf %139, %138 : vector<8x128xf32>
    %141 = arith.divf %139, %140 : vector<8x128xf32>
    %142 = vector.extract_strided_slice %127 {offsets = [0, 384], sizes = [8, 128], strides = [1, 1]} : vector<8x512xf32> to vector<8x128xf32>
    %143 = arith.negf %142 : vector<8x128xf32>
    %144 = math.exp %143 : vector<8x128xf32>
    %cst_46 = arith.constant 1.000000e+00 : f32
    %145 = vector.broadcast %cst_46 : f32 to vector<8x128xf32>
    %146 = arith.addf %145, %144 : vector<8x128xf32>
    %147 = arith.divf %145, %146 : vector<8x128xf32>
    %148 = arith.mulf %129, %135 : vector<8x128xf32>
    %149 = arith.mulf %114, %141 : vector<8x128xf32>
    %150 = arith.addf %148, %149 : vector<8x128xf32>
    %151 = math.tanh %150 : vector<8x128xf32>
    %152 = arith.mulf %151, %147 : vector<8x128xf32>
    %153 = arith.truncf %152 : vector<8x128xf32> to vector<8x128xbf16>
    %154 = arith.index_cast %121 : i32 to index
    %c0_47 = arith.constant 0 : index
    %155 = vector.load %arg5[%154, %c0_47] : memref<64x128xbf16, #tpu.memory_space<vmem>>, vector<8x128xbf16>
    tpu.vector_store %arg5[%154, %c0_47], %153 {strides = array<i32>} : memref<64x128xbf16, #tpu.memory_space<vmem>>, vector<8x128xbf16>,
    %c4_i32 = arith.constant 4 : i32
    %c8_i32_48 = arith.constant 8 : i32
    %156 = arith.muli %c4_i32, %c8_i32_48 : i32
    %157 = tpu.assume_multiple %156, 8 : i32
    %158 = arith.index_cast %157 : i32 to index
    %c0_49 = arith.constant 0 : index
    %159 = vector.load %arg8[%158, %c0_49] : memref<64x512xf32, #tpu.memory_space<vmem>>, vector<8x512xf32>
    %160 = arith.truncf %152 : vector<8x128xf32> to vector<8x128xbf16>
    %c0_50 = arith.constant 0 : index
    %c0_51 = arith.constant 0 : index
    %161 = vector.load %arg3[%c0_50, %c0_51] : memref<128x512xbf16, #tpu.memory_space<vmem>>, vector<128x512xbf16>
    %cst_52 = arith.constant dense<0.000000e+00> : vector<8x512xf32>
    %162 = tpu.matmul %160, %161, %cst_52 {dimension_numbers = #tpu.dot_dimension_numbers<[1], [0], [0], [1], [0, 0, 1, 1], [], []>} : vector<8x128xbf16>, vector<128x512xbf16>, vector<8x512xf32> -> vector<8x512xf32>
    %163 = arith.addf %159, %162 : vector<8x512xf32>
    %164 = vector.extract_strided_slice %163 {offsets = [0, 0], sizes = [8, 128], strides = [1, 1]} : vector<8x512xf32> to vector<8x128xf32>
    %165 = math.tanh %164 : vector<8x128xf32>
    %166 = vector.extract_strided_slice %163 {offsets = [0, 128], sizes = [8, 128], strides = [1, 1]} : vector<8x512xf32> to vector<8x128xf32>
    %167 = arith.negf %166 : vector<8x128xf32>
    %168 = math.exp %167 : vector<8x128xf32>
    %cst_53 = arith.constant 1.000000e+00 : f32
    %169 = vector.broadcast %cst_53 : f32 to vector<8x128xf32>
    %170 = arith.addf %169, %168 : vector<8x128xf32>
    %171 = arith.divf %169, %170 : vector<8x128xf32>
    %172 = vector.extract_strided_slice %163 {offsets = [0, 256], sizes = [8, 128], strides = [1, 1]} : vector<8x512xf32> to vector<8x128xf32>
    %173 = arith.negf %172 : vector<8x128xf32>
    %174 = math.exp %173 : vector<8x128xf32>
    %cst_54 = arith.constant 1.000000e+00 : f32
    %175 = vector.broadcast %cst_54 : f32 to vector<8x128xf32>
    %176 = arith.addf %175, %174 : vector<8x128xf32>
    %177 = arith.divf %175, %176 : vector<8x128xf32>
    %178 = vector.extract_strided_slice %163 {offsets = [0, 384], sizes = [8, 128], strides = [1, 1]} : vector<8x512xf32> to vector<8x128xf32>
    %179 = arith.negf %178 : vector<8x128xf32>
    %180 = math.exp %179 : vector<8x128xf32>
    %cst_55 = arith.constant 1.000000e+00 : f32
    %181 = vector.broadcast %cst_55 : f32 to vector<8x128xf32>
    %182 = arith.addf %181, %180 : vector<8x128xf32>
    %183 = arith.divf %181, %182 : vector<8x128xf32>
    %184 = arith.mulf %165, %171 : vector<8x128xf32>
    %185 = arith.mulf %150, %177 : vector<8x128xf32>
    %186 = arith.addf %184, %185 : vector<8x128xf32>
    %187 = math.tanh %186 : vector<8x128xf32>
    %188 = arith.mulf %187, %183 : vector<8x128xf32>
    %189 = arith.truncf %188 : vector<8x128xf32> to vector<8x128xbf16>
    %190 = arith.index_cast %157 : i32 to index
    %c0_56 = arith.constant 0 : index
    %191 = vector.load %arg5[%190, %c0_56] : memref<64x128xbf16, #tpu.memory_space<vmem>>, vector<8x128xbf16>
    tpu.vector_store %arg5[%190, %c0_56], %189 {strides = array<i32>} : memref<64x128xbf16, #tpu.memory_space<vmem>>, vector<8x128xbf16>,
    %c5_i32 = arith.constant 5 : i32
    %c8_i32_57 = arith.constant 8 : i32
    %192 = arith.muli %c5_i32, %c8_i32_57 : i32
    %193 = tpu.assume_multiple %192, 8 : i32
    %194 = arith.index_cast %193 : i32 to index
    %c0_58 = arith.constant 0 : index
    %195 = vector.load %arg8[%194, %c0_58] : memref<64x512xf32, #tpu.memory_space<vmem>>, vector<8x512xf32>
    %196 = arith.truncf %188 : vector<8x128xf32> to vector<8x128xbf16>
    %c0_59 = arith.constant 0 : index
    %c0_60 = arith.constant 0 : index
    %197 = vector.load %arg3[%c0_59, %c0_60] : memref<128x512xbf16, #tpu.memory_space<vmem>>, vector<128x512xbf16>
    %cst_61 = arith.constant dense<0.000000e+00> : vector<8x512xf32>
    %198 = tpu.matmul %196, %197, %cst_61 {dimension_numbers = #tpu.dot_dimension_numbers<[1], [0], [0], [1], [0, 0, 1, 1], [], []>} : vector<8x128xbf16>, vector<128x512xbf16>, vector<8x512xf32> -> vector<8x512xf32>
    %199 = arith.addf %195, %198 : vector<8x512xf32>
    %200 = vector.extract_strided_slice %199 {offsets = [0, 0], sizes = [8, 128], strides = [1, 1]} : vector<8x512xf32> to vector<8x128xf32>
    %201 = math.tanh %200 : vector<8x128xf32>
    %202 = vector.extract_strided_slice %199 {offsets = [0, 128], sizes = [8, 128], strides = [1, 1]} : vector<8x512xf32> to vector<8x128xf32>
    %203 = arith.negf %202 : vector<8x128xf32>
    %204 = math.exp %203 : vector<8x128xf32>
    %cst_62 = arith.constant 1.000000e+00 : f32
    %205 = vector.broadcast %cst_62 : f32 to vector<8x128xf32>
    %206 = arith.addf %205, %204 : vector<8x128xf32>
    %207 = arith.divf %205, %206 : vector<8x128xf32>
    %208 = vector.extract_strided_slice %199 {offsets = [0, 256], sizes = [8, 128], strides = [1, 1]} : vector<8x512xf32> to vector<8x128xf32>
    %209 = arith.negf %208 : vector<8x128xf32>
    %210 = math.exp %209 : vector<8x128xf32>
    %cst_63 = arith.constant 1.000000e+00 : f32
    %211 = vector.broadcast %cst_63 : f32 to vector<8x128xf32>
    %212 = arith.addf %211, %210 : vector<8x128xf32>
    %213 = arith.divf %211, %212 : vector<8x128xf32>
    %214 = vector.extract_strided_slice %199 {offsets = [0, 384], sizes = [8, 128], strides = [1, 1]} : vector<8x512xf32> to vector<8x128xf32>
    %215 = arith.negf %214 : vector<8x128xf32>
    %216 = math.exp %215 : vector<8x128xf32>
    %cst_64 = arith.constant 1.000000e+00 : f32
    %217 = vector.broadcast %cst_64 : f32 to vector<8x128xf32>
    %218 = arith.addf %217, %216 : vector<8x128xf32>
    %219 = arith.divf %217, %218 : vector<8x128xf32>
    %220 = arith.mulf %201, %207 : vector<8x128xf32>
    %221 = arith.mulf %186, %213 : vector<8x128xf32>
    %222 = arith.addf %220, %221 : vector<8x128xf32>
    %223 = math.tanh %222 : vector<8x128xf32>
    %224 = arith.mulf %223, %219 : vector<8x128xf32>
    %225 = arith.truncf %224 : vector<8x128xf32> to vector<8x128xbf16>
    %226 = arith.index_cast %193 : i32 to index
    %c0_65 = arith.constant 0 : index
    %227 = vector.load %arg5[%226, %c0_65] : memref<64x128xbf16, #tpu.memory_space<vmem>>, vector<8x128xbf16>
    tpu.vector_store %arg5[%226, %c0_65], %225 {strides = array<i32>} : memref<64x128xbf16, #tpu.memory_space<vmem>>, vector<8x128xbf16>,
    %c6_i32 = arith.constant 6 : i32
    %c8_i32_66 = arith.constant 8 : i32
    %228 = arith.muli %c6_i32, %c8_i32_66 : i32
    %229 = tpu.assume_multiple %228, 8 : i32
    %230 = arith.index_cast %229 : i32 to index
    %c0_67 = arith.constant 0 : index
    %231 = vector.load %arg8[%230, %c0_67] : memref<64x512xf32, #tpu.memory_space<vmem>>, vector<8x512xf32>
    %232 = arith.truncf %224 : vector<8x128xf32> to vector<8x128xbf16>
    %c0_68 = arith.constant 0 : index
    %c0_69 = arith.constant 0 : index
    %233 = vector.load %arg3[%c0_68, %c0_69] : memref<128x512xbf16, #tpu.memory_space<vmem>>, vector<128x512xbf16>
    %cst_70 = arith.constant dense<0.000000e+00> : vector<8x512xf32>
    %234 = tpu.matmul %232, %233, %cst_70 {dimension_numbers = #tpu.dot_dimension_numbers<[1], [0], [0], [1], [0, 0, 1, 1], [], []>} : vector<8x128xbf16>, vector<128x512xbf16>, vector<8x512xf32> -> vector<8x512xf32>
    %235 = arith.addf %231, %234 : vector<8x512xf32>
    %236 = vector.extract_strided_slice %235 {offsets = [0, 0], sizes = [8, 128], strides = [1, 1]} : vector<8x512xf32> to vector<8x128xf32>
    %237 = math.tanh %236 : vector<8x128xf32>
    %238 = vector.extract_strided_slice %235 {offsets = [0, 128], sizes = [8, 128], strides = [1, 1]} : vector<8x512xf32> to vector<8x128xf32>
    %239 = arith.negf %238 : vector<8x128xf32>
    %240 = math.exp %239 : vector<8x128xf32>
    %cst_71 = arith.constant 1.000000e+00 : f32
    %241 = vector.broadcast %cst_71 : f32 to vector<8x128xf32>
    %242 = arith.addf %241, %240 : vector<8x128xf32>
    %243 = arith.divf %241, %242 : vector<8x128xf32>
    %244 = vector.extract_strided_slice %235 {offsets = [0, 256], sizes = [8, 128], strides = [1, 1]} : vector<8x512xf32> to vector<8x128xf32>
    %245 = arith.negf %244 : vector<8x128xf32>
    %246 = math.exp %245 : vector<8x128xf32>
    %cst_72 = arith.constant 1.000000e+00 : f32
    %247 = vector.broadcast %cst_72 : f32 to vector<8x128xf32>
    %248 = arith.addf %247, %246 : vector<8x128xf32>
    %249 = arith.divf %247, %248 : vector<8x128xf32>
    %250 = vector.extract_strided_slice %235 {offsets = [0, 384], sizes = [8, 128], strides = [1, 1]} : vector<8x512xf32> to vector<8x128xf32>
    %251 = arith.negf %250 : vector<8x128xf32>
    %252 = math.exp %251 : vector<8x128xf32>
    %cst_73 = arith.constant 1.000000e+00 : f32
    %253 = vector.broadcast %cst_73 : f32 to vector<8x128xf32>
    %254 = arith.addf %253, %252 : vector<8x128xf32>
    %255 = arith.divf %253, %254 : vector<8x128xf32>
    %256 = arith.mulf %237, %243 : vector<8x128xf32>
    %257 = arith.mulf %222, %249 : vector<8x128xf32>
    %258 = arith.addf %256, %257 : vector<8x128xf32>
    %259 = math.tanh %258 : vector<8x128xf32>
    %260 = arith.mulf %259, %255 : vector<8x128xf32>
    %261 = arith.truncf %260 : vector<8x128xf32> to vector<8x128xbf16>
    %262 = arith.index_cast %229 : i32 to index
    %c0_74 = arith.constant 0 : index
    %263 = vector.load %arg5[%262, %c0_74] : memref<64x128xbf16, #tpu.memory_space<vmem>>, vector<8x128xbf16>
    tpu.vector_store %arg5[%262, %c0_74], %261 {strides = array<i32>} : memref<64x128xbf16, #tpu.memory_space<vmem>>, vector<8x128xbf16>,
    %c7_i32 = arith.constant 7 : i32
    %c8_i32_75 = arith.constant 8 : i32
    %264 = arith.muli %c7_i32, %c8_i32_75 : i32
    %265 = tpu.assume_multiple %264, 8 : i32
    %266 = arith.index_cast %265 : i32 to index
    %c0_76 = arith.constant 0 : index
    %267 = vector.load %arg8[%266, %c0_76] : memref<64x512xf32, #tpu.memory_space<vmem>>, vector<8x512xf32>
    %268 = arith.truncf %260 : vector<8x128xf32> to vector<8x128xbf16>
    %c0_77 = arith.constant 0 : index
    %c0_78 = arith.constant 0 : index
    %269 = vector.load %arg3[%c0_77, %c0_78] : memref<128x512xbf16, #tpu.memory_space<vmem>>, vector<128x512xbf16>
    %cst_79 = arith.constant dense<0.000000e+00> : vector<8x512xf32>
    %270 = tpu.matmul %268, %269, %cst_79 {dimension_numbers = #tpu.dot_dimension_numbers<[1], [0], [0], [1], [0, 0, 1, 1], [], []>} : vector<8x128xbf16>, vector<128x512xbf16>, vector<8x512xf32> -> vector<8x512xf32>
    %271 = arith.addf %267, %270 : vector<8x512xf32>
    %272 = vector.extract_strided_slice %271 {offsets = [0, 0], sizes = [8, 128], strides = [1, 1]} : vector<8x512xf32> to vector<8x128xf32>
    %273 = math.tanh %272 : vector<8x128xf32>
    %274 = vector.extract_strided_slice %271 {offsets = [0, 128], sizes = [8, 128], strides = [1, 1]} : vector<8x512xf32> to vector<8x128xf32>
    %275 = arith.negf %274 : vector<8x128xf32>
    %276 = math.exp %275 : vector<8x128xf32>
    %cst_80 = arith.constant 1.000000e+00 : f32
    %277 = vector.broadcast %cst_80 : f32 to vector<8x128xf32>
    %278 = arith.addf %277, %276 : vector<8x128xf32>
    %279 = arith.divf %277, %278 : vector<8x128xf32>
    %280 = vector.extract_strided_slice %271 {offsets = [0, 256], sizes = [8, 128], strides = [1, 1]} : vector<8x512xf32> to vector<8x128xf32>
    %281 = arith.negf %280 : vector<8x128xf32>
    %282 = math.exp %281 : vector<8x128xf32>
    %cst_81 = arith.constant 1.000000e+00 : f32
    %283 = vector.broadcast %cst_81 : f32 to vector<8x128xf32>
    %284 = arith.addf %283, %282 : vector<8x128xf32>
    %285 = arith.divf %283, %284 : vector<8x128xf32>
    %286 = vector.extract_strided_slice %271 {offsets = [0, 384], sizes = [8, 128], strides = [1, 1]} : vector<8x512xf32> to vector<8x128xf32>
    %287 = arith.negf %286 : vector<8x128xf32>
    %288 = math.exp %287 : vector<8x128xf32>
    %cst_82 = arith.constant 1.000000e+00 : f32
    %289 = vector.broadcast %cst_82 : f32 to vector<8x128xf32>
    %290 = arith.addf %289, %288 : vector<8x128xf32>
    %291 = arith.divf %289, %290 : vector<8x128xf32>
    %292 = arith.mulf %273, %279 : vector<8x128xf32>
    %293 = arith.mulf %258, %285 : vector<8x128xf32>
    %294 = arith.addf %292, %293 : vector<8x128xf32>
    %295 = math.tanh %294 : vector<8x128xf32>
    %296 = arith.mulf %295, %291 : vector<8x128xf32>
    %297 = arith.truncf %296 : vector<8x128xf32> to vector<8x128xbf16>
    %298 = arith.index_cast %265 : i32 to index
    %c0_83 = arith.constant 0 : index
    %299 = vector.load %arg5[%298, %c0_83] : memref<64x128xbf16, #tpu.memory_space<vmem>>, vector<8x128xbf16>
    tpu.vector_store %arg5[%298, %c0_83], %297 {strides = array<i32>} : memref<64x128xbf16, #tpu.memory_space<vmem>>, vector<8x128xbf16>,
    %c8_i32_84 = arith.constant 8 : i32
    %c0_85 = arith.constant 0 : index
    %c0_86 = arith.constant 0 : index
    %300 = vector.load %arg6[%c0_85, %c0_86] : memref<8x128xf32, #tpu.memory_space<vmem>>, vector<8x128xf32>
    tpu.vector_store %arg6[%c0_85, %c0_86], %296 {strides = array<i32>} : memref<8x128xf32, #tpu.memory_space<vmem>>, vector<8x128xf32>,
    %c0_87 = arith.constant 0 : index
    %c0_88 = arith.constant 0 : index
    %301 = vector.load %arg7[%c0_87, %c0_88] : memref<8x128xf32, #tpu.memory_space<vmem>>, vector<8x128xf32>
    tpu.vector_store %arg7[%c0_87, %c0_88], %294 {strides = array<i32>} : memref<8x128xf32, #tpu.memory_space<vmem>>, vector<8x128xf32>,
    return
  }
  func.func @transform_0(%arg0: i32) -> (i32, i32) {
    %c0_i32 = arith.constant 0 : i32
    %c0_i32_0 = arith.constant 0 : i32
    return %arg0, %c0_i32 : i32, i32
  }
  func.func @transform_1(%arg0: i32) -> (i32, i32) {
    %c0_i32 = arith.constant 0 : i32
    %c0_i32_0 = arith.constant 0 : i32
    %c0_i32_1 = arith.constant 0 : i32
    return %c0_i32, %c0_i32_0 : i32, i32
  }
  func.func @transform_2(%arg0: i32) -> (i32, i32) {
    %c0_i32 = arith.constant 0 : i32
    %c0_i32_0 = arith.constant 0 : i32
    %c0_i32_1 = arith.constant 0 : i32
    return %c0_i32, %c0_i32_0 : i32, i32
  }
  func.func @transform_3(%arg0: i32) -> (i32, i32) {
    %c0_i32 = arith.constant 0 : i32
    %c0_i32_0 = arith.constant 0 : i32
    %c0_i32_1 = arith.constant 0 : i32
    return %c0_i32, %c0_i32_0 : i32, i32
  }
  func.func @transform_4(%arg0: i32) -> (i32, i32) {
    %c0_i32 = arith.constant 0 : i32
    %c0_i32_0 = arith.constant 0 : i32
    return %arg0, %c0_i32 : i32, i32
  }
}

</mosaic_0001>

<bundles_post_ra>
// kernel: tpu_custom_call.1
= control target key start
LH: loop header
LB: loop body
LE: loop exit
PB: predicated region body
PF: predicated region fallthrough
CT: control target
= control target key end

     0   :  { %9 = vsyncpa [#allocation6], 0  ;;  %s5100_s0 = inlined_call_operand.hbm [shape: bf16[64,128], index: 0, kind: input, shape index: {}]   ;;  %s5101_s1 = inlined_call_operand.hbm [shape: bf16[128,512], index: 1, kind: input, shape index: {}]   ;;  %s5102_s2 = inlined_call_operand.hbm [shape: bf16[128,512], index: 2, kind: input, shape index: {}]   ;;  %s5103_s3 = inlined_call_operand.hbm [shape: f32[1,512], index: 3, kind: input, shape index: {}]   ;;  %s5104_s4 = inlined_call_operand.hbm [shape: bf16[64,128], index: 4, kind: output, shape index: {}]  }
   0x1   :  { %10 = vsyncpa [#allocation9], 0 }
   0x2   :  { %11 = vsyncpa [#allocation12], 0  ;;  %s30_s17 = sshll.u32 %s5101_s1, 4  ;;  %s31_s17 = int_to_ptr.hbm [resolvable:$true] %s30_s17 }
   0x3   :  { %12 = vsyncpa [#allocation7], 0  ;;  %s4817_s18 = smov [#allocation8]   ;;  %s17_s22 = sshll.u32 %s5100_s0, 4  ;;  %s18_s22 = int_to_ptr.hbm [resolvable:$true] %s17_s22 }
   0x4   :  { %s32_s19 = sshll.u32 %s4817_s18, 4  ;;  %s4818_s23 = smov 256   ;;  %s33_s19 = int_to_ptr.vmem [resolvable:$true] %s32_s19 }
   0x5   :  { %s4819_s24 = smov 16   ;;  %s4820_s25 = smov [#allocation5]  }
   0x6   :  { %38 = dma.hbm_to_vmem [thread:$0]  %s31_s17, 4096, %s33_s19, [#allocation9], %s4818_s23, %s4818_s23, %s4819_s24  }
   0x7   :  { %s19_s26 = sshll.u32 %s4820_s25, 4  ;;  %s4821_s27 = smov 64   ;;  %s20_s26 = int_to_ptr.vmem [resolvable:$true] %s19_s26 }
   0x8   :  { %s4822_s28 = smov 4   ;;  %s43_s30 = sshll.u32 %s5102_s2, 4  ;;  %s44_s30 = int_to_ptr.hbm [resolvable:$true] %s43_s30 }
   0x9   :  { %25 = dma.hbm_to_vmem [thread:$0]  %s18_s22, 512, %s20_s26, [#allocation6], %s4821_s27, %s4821_s27, %s4822_s28  }
   0xa   :  { %s4823_s5 = smov [#allocation10]   ;;  %s57_s8 = sshll.u32 %s5103_s3, 4  ;;  %s58_s8 = int_to_ptr.hbm [resolvable:$true] %s57_s8 }
   0xb   :  { %s45_s0 = sshll.u32 %s4823_s5, 4  ;;  %s4824_s9 = smov [#allocation11]   ;;  %s46_s0 = int_to_ptr.vmem [resolvable:$true] %s45_s0 }
   0xc   :  { %51 = dma.hbm_to_vmem [thread:$0]  %s44_s30, 4096, %s46_s0, [#allocation9], %s4818_s23, %s4818_s23, %s4819_s24  }
   0xd   :  { %s59_s10 = sshll.u32 %s4824_s9, 4  ;;  %s60_s10 = int_to_ptr.vmem [resolvable:$true] %s59_s10 }
   0xe   :  { %62 = dma.hbm_to_vmem [thread:$0]  %s58_s8, 64, %s60_s10, [#allocation12]  }
   0xf   :  { %4809 = dma.done.wait [#allocation6], 512  }
  0x10   :  { %4810 = vsyncadd [#allocation6], 4294966784 }
  0x11   :  { %4811 = dma.done.wait [#allocation9], 8192  }
  0x12   :  { %4812 = vsyncadd [#allocation9], 4294959104 }
  0x13   :  { %4813 = dma.done.wait [#allocation12], 64  }
  0x14   :  { %4814 = vsyncadd [#allocation12], 4294967232  ;;  %v3197_v0 = vld [vmem:[#allocation8 + $0xe0] sm:$0xf]  ;;  %v4293_v1 = vld [vmem:[#allocation8 + $0xec] sm:$0xf0] }
  0x15   :  { %v4291_v2 = vld [vmem:[#allocation8 + $0xe4] sm:$0xf]  ;;  %v3198_v3 = vor.u32 %v4293_v1, %v3197_v0  ;;  %v3199_v4 = vld [vmem:[#allocation8 + $0xf0] sm:$0xf0]  ;;  %v3205_v5 = vld [vmem:[#allocation8 + $0xe8] sm:$0xf] }
  0x16   :  { %v4294_v6 = vld [vmem:[#allocation8 + $0xf4] sm:$0xf0]  ;;  %v3202_v7 = vor.u32 %v4291_v2, %v3199_v4  ;;  %v4292_v9 = vld [vmem:[#allocation8 + $0xec] sm:$0xf]  ;;  %v3207_v10 = vld [vmem:[#allocation8 + $0xf8] sm:$0xf0] }
  0x17   :  { %v3206_v8 = vor.u32 %v4294_v6, %v3205_v5  ;;  %v3181_v11 = vld [vmem:[#allocation8 + $0xc0] sm:$0xf]  ;;  %319 = vmatpush.bf16.msra.mxu0 %v3198_v3  ;;  %v3210_v12 = vor.u32 %v4292_v9, %v3207_v10  ;;  %v4289_v13 = vld [vmem:[#allocation8 + $0xcc] sm:$0xf0]  ;;  %v4287_v14 = vld [vmem:[#allocation8 + $0xc4] sm:$0xf] }
  0x18   :  { %v3183_v15 = vld [vmem:[#allocation8 + $0xd0] sm:$0xf0]  ;;  %348 = vmatpush.bf16.msra.mxu1 %v3202_v7  ;;  %v3182_v16 = vor.u32 %v4289_v13, %v3181_v11  ;;  %v3189_v18 = vld [vmem:[#allocation8 + $0xc8] sm:$0xf]  ;;  %v4290_v19 = vld [vmem:[#allocation8 + $0xd4] sm:$0xf0] }
  0x19   :  { %377 = vmatpush.bf16.msra.mxu2 %v3206_v8  ;;  %v3186_v17 = vor.u32 %v4287_v14, %v3183_v15  ;;  %v4288_v20 = vld [vmem:[#allocation8 + $0xcc] sm:$0xf]  ;;  %406 = vmatpush.bf16.msra.mxu3 %v3210_v12  ;;  %v3190_v21 = vor.u32 %v4290_v19, %v3189_v18  ;;  %v3191_v22 = vld [vmem:[#allocation8 + $0xd8] sm:$0xf0]  ;;  %v3165_v23 = vld [vmem:[#allocation8 + $0xa0] sm:$0xf] }
  0x1a   :  { %v4285_v24 = vld [vmem:[#allocation8 + $0xac] sm:$0xf0]  ;;  %v3194_v25 = vor.u32 %v4288_v20, %v3191_v22  ;;  %v4283_v26 = vld [vmem:[#allocation8 + $0xa4] sm:$0xf]  ;;  %v3167_v27 = vld [vmem:[#allocation8 + $0xb0] sm:$0xf0] }
  0x1b   :  { %v3173_v28 = vld [vmem:[#allocation8 + $0xa8] sm:$0xf]  ;;  %320 = vmatpush.bf16.msra.mxu0 %v3182_v16  ;;  %v3166_v29 = vor.u32 %v4285_v24, %v3165_v23  ;;  %v4286_v30 = vld [vmem:[#allocation8 + $0xb4] sm:$0xf0]  ;;  %v4284_v31 = vld [vmem:[#allocation8 + $0xac] sm:$0xf]  ;;  %v3170_v33 = vor.u32 %v4283_v26, %v3167_v27 }
  0x1c   :  { %v3175_v32 = vld [vmem:[#allocation8 + $0xb8] sm:$0xf0]  ;;  %349 = vmatpush.bf16.msra.mxu1 %v3186_v17  ;;  %v3174_v34 = vor.u32 %v4286_v30, %v3173_v28  ;;  %v3149_v35 = vld [vmem:[#allocation8 + $0x80] sm:$0xf]  ;;  %v4281_v36 = vld [vmem:[#allocation8 + $0x8c] sm:$0xf0] }
  0x1d   :  { %378 = vmatpush.bf16.msra.mxu2 %v3190_v21  ;;  %v4279_v37 = vld [vmem:[#allocation8 + $0x84] sm:$0xf]  ;;  %407 = vmatpush.bf16.msra.mxu3 %v3194_v25  ;;  %v3178_v38 = vor.u32 %v4284_v31, %v3175_v32  ;;  %v3151_v39 = vld [vmem:[#allocation8 + $0x90] sm:$0xf0]  ;;  %v3157_v40 = vld [vmem:[#allocation8 + $0x88] sm:$0xf]  ;;  %v3150_v44 = vor.u32 %v4281_v36, %v3149_v35 }
  0x1e   :  { %v4282_v41 = vld [vmem:[#allocation8 + $0x94] sm:$0xf0]  ;;  %v4280_v42 = vld [vmem:[#allocation8 + $0x8c] sm:$0xf]  ;;  %v3159_v43 = vld [vmem:[#allocation8 + $0x98] sm:$0xf0]  ;;  %v3154_v45 = vor.u32 %v4279_v37, %v3151_v39 }
  0x1f   :  { %321 = vmatpush.bf16.msra.mxu0 %v3166_v29  ;;  %v3158_v46 = vor.u32 %v4282_v41, %v3157_v40  ;;  %v3133_v47 = vld [vmem:[#allocation8 + $0x60] sm:$0xf]  ;;  %v4277_v48 = vld [vmem:[#allocation8 + $0x6c] sm:$0xf0]  ;;  %v4275_v49 = vld [vmem:[#allocation8 + $0x64] sm:$0xf]  ;;  %v3162_v50 = vor.u32 %v4280_v42, %v3159_v43 }
  0x20   :  { %350 = vmatpush.bf16.msra.mxu1 %v3170_v33  ;;  %v3135_v51 = vld [vmem:[#allocation8 + $0x70] sm:$0xf0]  ;;  %v3141_v52 = vld [vmem:[#allocation8 + $0x68] sm:$0xf]  ;;  %v4278_v53 = vld [vmem:[#allocation8 + $0x74] sm:$0xf0]  ;;  %v3134_v56 = vor.u32 %v4277_v48, %v3133_v47 }
  0x21   :  { %379 = vmatpush.bf16.msra.mxu2 %v3174_v34  ;;  %408 = vmatpush.bf16.msra.mxu3 %v3178_v38  ;;  %v4276_v54 = vld [vmem:[#allocation8 + $0x6c] sm:$0xf]  ;;  %v3143_v55 = vld [vmem:[#allocation8 + $0x78] sm:$0xf0]  ;;  %v3138_v57 = vor.u32 %v4275_v49, %v3135_v51  ;;  %v3142_v58 = vor.u32 %v4278_v53, %v3141_v52  ;;  %v3117_v59 = vld [vmem:[#allocation8 + $0x40] sm:$0xf] }
  0x22   :  { %v4273_v60 = vld [vmem:[#allocation8 + $0x4c] sm:$0xf0]  ;;  %v4271_v61 = vld [vmem:[#allocation8 + $0x44] sm:$0xf]  ;;  %v3146_v62 = vor.u32 %v4276_v54, %v3143_v55  ;;  %v3119_v63 = vld [vmem:[#allocation8 + $0x50] sm:$0xf0] }
  0x23   :  { %322 = vmatpush.bf16.msra.mxu0 %v3150_v44  ;;  %v3125_v0 = vld [vmem:[#allocation8 + $0x48] sm:$0xf]  ;;  %v4274_v1 = vld [vmem:[#allocation8 + $0x54] sm:$0xf0]  ;;  %v4272_v2 = vld [vmem:[#allocation8 + $0x4c] sm:$0xf]  ;;  %v3118_v4 = vor.u32 %v4273_v60, %v3117_v59  ;;  %v3122_v5 = vor.u32 %v4271_v61, %v3119_v63 }
  0x24   :  { %351 = vmatpush.bf16.msra.mxu1 %v3154_v45  ;;  %v3127_v3 = vld [vmem:[#allocation8 + $0x58] sm:$0xf0]  ;;  %v3126_v6 = vor.u32 %v4274_v1, %v3125_v0  ;;  %v3101_v7 = vld [vmem:[#allocation8 + $0x20] sm:$0xf]  ;;  %v4269_v8 = vld [vmem:[#allocation8 + $0x2c] sm:$0xf0] }
  0x25   :  { %380 = vmatpush.bf16.msra.mxu2 %v3158_v46  ;;  %409 = vmatpush.bf16.msra.mxu3 %v3162_v50  ;;  %v4267_v9 = vld [vmem:[#allocation8 + $0x24] sm:$0xf]  ;;  %v3130_v10 = vor.u32 %v4272_v2, %v3127_v3  ;;  %v3103_v11 = vld [vmem:[#allocation8 + $0x30] sm:$0xf0]  ;;  %v3109_v12 = vld [vmem:[#allocation8 + $0x28] sm:$0xf]  ;;  %v3102_v16 = vor.u32 %v4269_v8, %v3101_v7 }
  0x26   :  { %v4270_v13 = vld [vmem:[#allocation8 + $0x34] sm:$0xf0]  ;;  %v4268_v14 = vld [vmem:[#allocation8 + $0x2c] sm:$0xf]  ;;  %v3111_v15 = vld [vmem:[#allocation8 + $0x38] sm:$0xf0]  ;;  %v3106_v18 = vor.u32 %v4267_v9, %v3103_v11 }
  0x27   :  { %323 = vmatpush.bf16.msra.mxu0 %v3134_v56  ;;  %v3085_v17 = vld [vmem:[#allocation8] sm:$0xf]  ;;  %v3110_v19 = vor.u32 %v4270_v13, %v3109_v12  ;;  %v4265_v20 = vld [vmem:[#allocation8 + $0xc] sm:$0xf0]  ;;  %v4263_v21 = vld [vmem:[#allocation8 + $0x4] sm:$0xf]  ;;  %v3114_v23 = vor.u32 %v4268_v14, %v3111_v15 }
  0x28   :  { %352 = vmatpush.bf16.msra.mxu1 %v3138_v57  ;;  %v3087_v22 = vld [vmem:[#allocation8 + $0x10] sm:$0xf0]  ;;  %v3093_v24 = vld [vmem:[#allocation8 + $0x8] sm:$0xf]  ;;  %v4266_v25 = vld [vmem:[#allocation8 + $0x14] sm:$0xf0]  ;;  %v3086_v30 = vor.u32 %v4265_v20, %v3085_v17 }
  0x29   :  { %381 = vmatpush.bf16.msra.mxu2 %v3142_v58  ;;  %410 = vmatpush.bf16.msra.mxu3 %v3146_v62  ;;  %v4264_v26 = vld [vmem:[#allocation8 + $0xc] sm:$0xf]  ;;  %v3095_v27 = vld [vmem:[#allocation8 + $0x18] sm:$0xf0]  ;;  %v3333_v28 = vld [vmem:[#allocation10 + $0xe8] sm:$0xf]  ;;  %v3090_v33 = vor.u32 %v4263_v21, %v3087_v22  ;;  %v3094_v34 = vor.u32 %v4266_v25, %v3093_v24 }
  0x2a   :  { %v4326_v29 = vld [vmem:[#allocation10 + $0xf4] sm:$0xf0]  ;;  %v4323_v31 = vld [vmem:[#allocation10 + $0xe4] sm:$0xf]  ;;  %v3327_v32 = vld [vmem:[#allocation10 + $0xf0] sm:$0xf0]  ;;  %v3098_v36 = vor.u32 %v4264_v26, %v3095_v27 }
  0x2b   :  { %324 = vmatpush.bf16.msra.mxu0 %v3118_v4  ;;  %v4259_v35 = vld [vmem:[#allocation5] sm:$0xff]  ;;  %v3334_v37 = vor.u32 %v4326_v29, %v3333_v28  ;;  %v3317_v38 = vld [vmem:[#allocation10 + $0xc8] sm:$0xf]  ;;  %v4325_v40 = vld [vmem:[#allocation10 + $0xec] sm:$0xf0]  ;;  %v3330_v41 = vor.u32 %v4323_v31, %v3327_v32  ;;  %s4826_s2 = smov [#allocation13]  }
  0x2c   :  { %353 = vmatpush.bf16.msra.mxu1 %v3122_v5  ;;  %v3325_v39 = vld [vmem:[#allocation10 + $0xe0] sm:$0xf]  ;;  %v4322_v42 = vld [vmem:[#allocation10 + $0xd4] sm:$0xf0]  ;;  %v4324_v43 = vld [vmem:[#allocation10 + $0xec] sm:$0xf] }
  0x2d   :  { %382 = vmatpush.bf16.msra.mxu2 %v3126_v6  ;;  %411 = vmatpush.bf16.msra.mxu3 %v3130_v10  ;;  %v3335_v44 = vld [vmem:[#allocation10 + $0xf8] sm:$0xf0]  ;;  %v4319_v45 = vld [vmem:[#allocation10 + $0xc4] sm:$0xf]  ;;  %v3311_v46 = vld [vmem:[#allocation10 + $0xd0] sm:$0xf0]  ;;  %v3326_v47 = vor.u32 %v4325_v40, %v3325_v39  ;;  %v3318_v48 = vor.u32 %v4322_v42, %v3317_v38 }
  0x2e   :  { %v3338_v49 = vor.u32 %v4324_v43, %v3335_v44  ;;  %v3301_v50 = vld [vmem:[#allocation10 + $0xa8] sm:$0xf]  ;;  %v3314_v51 = vor.u32 %v4319_v45, %v3311_v46  ;;  %v4318_v52 = vld [vmem:[#allocation10 + $0xb4] sm:$0xf0]  ;;  %v4320_v53 = vld [vmem:[#allocation10 + $0xcc] sm:$0xf] }
  0x2f   :  { %325 = vmatpush.bf16.msra.mxu0 %v3102_v16  ;;  %v3319_v54 = vld [vmem:[#allocation10 + $0xd8] sm:$0xf0]  ;;  %v4315_v55 = vld [vmem:[#allocation10 + $0xa4] sm:$0xf]  ;;  %v3295_v56 = vld [vmem:[#allocation10 + $0xb0] sm:$0xf0]  ;;  %v3302_v58 = vor.u32 %v4318_v52, %v3301_v50 }
  0x30   :  { %354 = vmatpush.bf16.msra.mxu1 %v3106_v18  ;;  %v3309_v57 = vld [vmem:[#allocation10 + $0xc0] sm:$0xf]  ;;  %v3322_v59 = vor.u32 %v4320_v53, %v3319_v54  ;;  %v3285_v60 = vld [vmem:[#allocation10 + $0x88] sm:$0xf]  ;;  %v4314_v61 = vld [vmem:[#allocation10 + $0x94] sm:$0xf0]  ;;  %v3298_v63 = vor.u32 %v4315_v55, %v3295_v56 }
  0x31   :  { %383 = vmatpush.bf16.msra.mxu2 %v3110_v19  ;;  %412 = vmatpush.bf16.msra.mxu3 %v3114_v23  ;;  %v4321_v62 = vld [vmem:[#allocation10 + $0xcc] sm:$0xf0]  ;;  %v4316_v0 = vld [vmem:[#allocation10 + $0xac] sm:$0xf]  ;;  %v3303_v1 = vld [vmem:[#allocation10 + $0xb8] sm:$0xf0]  ;;  %v3286_v8 = vor.u32 %v4314_v61, %v3285_v60 }
  0x32   :  { %v4311_v2 = vld [vmem:[#allocation10 + $0x84] sm:$0xf]  ;;  %v3310_v3 = vor.u32 %v4321_v62, %v3309_v57  ;;  %v3279_v4 = vld [vmem:[#allocation10 + $0x90] sm:$0xf0]  ;;  %v3293_v5 = vld [vmem:[#allocation10 + $0xa0] sm:$0xf]  ;;  %v3306_v9 = vor.u32 %v4316_v0, %v3303_v1 }
  0x33   :  { %326 = vmatpush.bf16.msra.mxu0 %v3086_v30  ;;  %v4317_v6 = vld [vmem:[#allocation10 + $0xac] sm:$0xf0]  ;;  %v3269_v10 = vld [vmem:[#allocation10 + $0x68] sm:$0xf]  ;;  %v3277_v11 = vld [vmem:[#allocation10 + $0x80] sm:$0xf]  ;;  %v3282_v13 = vor.u32 %v4311_v2, %v3279_v4 }
  0x34   :  { %355 = vmatpush.bf16.msra.mxu1 %v3090_v33  ;;  %v3294_v7 = vor.u32 %v4317_v6, %v3293_v5  ;;  %v4313_v12 = vld [vmem:[#allocation10 + $0x8c] sm:$0xf0]  ;;  %v4310_v14 = vld [vmem:[#allocation10 + $0x74] sm:$0xf0]  ;;  %v4312_v15 = vld [vmem:[#allocation10 + $0x8c] sm:$0xf] }
  0x35   :  { %384 = vmatpush.bf16.msra.mxu2 %v3094_v34  ;;  %413 = vmatpush.bf16.msra.mxu3 %v3098_v36  ;;  %v3287_v16 = vld [vmem:[#allocation10 + $0x98] sm:$0xf0]  ;;  %v4307_v17 = vld [vmem:[#allocation10 + $0x64] sm:$0xf]  ;;  %v3263_v18 = vld [vmem:[#allocation10 + $0x70] sm:$0xf0]  ;;  %v3278_v19 = vor.u32 %v4313_v12, %v3277_v11  ;;  %v3270_v21 = vor.u32 %v4310_v14, %v3269_v10 }
  0x36   :  { %327 = vmatmul.bf16.vlgmr.msra.gmra.mxu0 %v4259_v35  ;;  %v4260_v20 = vld [vmem:[#allocation5 + $0x8] sm:$0xff]  ;;  %v3290_v22 = vor.u32 %v4312_v15, %v3287_v16  ;;  %v3266_v24 = vor.u32 %v4307_v17, %v3263_v18  ;;  %v4306_v25 = vld [vmem:[#allocation10 + $0x54] sm:$0xf0]  ;;  %v3271_v27 = vld [vmem:[#allocation10 + $0x78] sm:$0xf0]  ;;  %v4825_v4 = vmov 0.0|0.0  }
  0x37   :  { %356 = vmatmul.bf16.vlgmr.msra.gmra.mxu1 %v4259_v35  ;;  %669 = vmatpush.bf16.msrb.mxu0 %v3326_v47  ;;  %v3253_v23 = vld [vmem:[#allocation10 + $0x48] sm:$0xf]  ;;  %v4308_v26 = vld [vmem:[#allocation10 + $0x6c] sm:$0xf]  ;;  %v4303_v28 = vld [vmem:[#allocation10 + $0x44] sm:$0xf] }
  0x38   :  { %682 = vmatpush.bf16.msrb.mxu1 %v3330_v41  ;;  %385 = vmatmul.bf16.vlgmr.msra.gmra.mxu2 %v4259_v35  ;;  %v3247_v29 = vld [vmem:[#allocation10 + $0x50] sm:$0xf0]  ;;  %v3254_v30 = vor.u32 %v4306_v25, %v3253_v23  ;;  %v3274_v31 = vor.u32 %v4308_v26, %v3271_v27  ;;  %v3261_v33 = vld [vmem:[#allocation10 + $0x60] sm:$0xf]  ;;  %v4309_v34 = vld [vmem:[#allocation10 + $0x6c] sm:$0xf0] }
  0x39   :  { %695 = vmatpush.bf16.msrb.mxu2 %v3334_v37  ;;  %414 = vmatmul.bf16.vlgmr.msra.gmra.mxu3 %v4259_v35  ;;  %v3250_v32 = vor.u32 %v4303_v28, %v3247_v29  ;;  %v3262_v35 = vor.u32 %v4309_v34, %v3261_v33  ;;  %v3237_v36 = vld [vmem:[#allocation10 + $0x28] sm:$0xf]  ;;  %v4302_v37 = vld [vmem:[#allocation10 + $0x34] sm:$0xf0]  ;;  %v4304_v38 = vld [vmem:[#allocation10 + $0x4c] sm:$0xf] }
  0x3a   :  { %708 = vmatpush.bf16.msrb.mxu3 %v3338_v49  ;;  %v3238_v39 = vor.u32 %v4302_v37, %v3237_v36  ;;  %v3255_v40 = vld [vmem:[#allocation10 + $0x58] sm:$0xf0]  ;;  %v3245_v41 = vld [vmem:[#allocation10 + $0x40] sm:$0xf]  ;;  %v4305_v42 = vld [vmem:[#allocation10 + $0x4c] sm:$0xf0] }
  0x3b   :  { %670 = vmatpush.bf16.msrb.mxu0 %v3310_v3  ;;  %v3258_v43 = vor.u32 %v4304_v38, %v3255_v40  ;;  %v3246_v44 = vor.u32 %v4305_v42, %v3245_v41  ;;  %v4299_v45 = vld [vmem:[#allocation10 + $0x24] sm:$0xf]  ;;  %v3231_v46 = vld [vmem:[#allocation10 + $0x30] sm:$0xf0]  ;;  %v3221_v47 = vld [vmem:[#allocation10 + $0x8] sm:$0xf] }
  0x3c   :  { %683 = vmatpush.bf16.msrb.mxu1 %v3314_v51  ;;  %v4298_v49 = vld [vmem:[#allocation10 + $0x14] sm:$0xf0]  ;;  %v3229_v50 = vld [vmem:[#allocation10 + $0x20] sm:$0xf]  ;;  %v4301_v51 = vld [vmem:[#allocation10 + $0x2c] sm:$0xf0] }
  0x3d   :  { %696 = vmatpush.bf16.msrb.mxu2 %v3318_v48  ;;  %v3234_v48 = vor.u32 %v4299_v45, %v3231_v46  ;;  %v4300_v52 = vld [vmem:[#allocation10 + $0x2c] sm:$0xf]  ;;  %v3239_v53 = vld [vmem:[#allocation10 + $0x38] sm:$0xf0]  ;;  %v3222_v54 = vor.u32 %v4298_v49, %v3221_v47  ;;  %v4295_v56 = vld [vmem:[#allocation10 + $0x4] sm:$0xf] }
  0x3e   :  { %709 = vmatpush.bf16.msrb.mxu3 %v3322_v59  ;;  %v3242_v55 = vor.u32 %v4300_v52, %v3239_v53  ;;  %v3215_v57 = vld [vmem:[#allocation10 + $0x10] sm:$0xf0]  ;;  %v4296_v60 = vld [vmem:[#allocation10 + $0xc] sm:$0xf]  ;;  %v3223_v61 = vld [vmem:[#allocation10 + $0x18] sm:$0xf0] }
  0x3f   :  { %671 = vmatpush.bf16.msrb.mxu0 %v3294_v7  ;;  %v3218_v59 = vor.u32 %v4295_v56, %v3215_v57  ;;  %v3213_v62 = vld [vmem:[#allocation10] sm:$0xf]  ;;  %v3226_v0 = vor.u32 %v4296_v60, %v3223_v61  ;;  %v4261_v1 = vld [vmem:[#allocation5 + $0x10] sm:$0xff]  ;;  %v4262_v3 = vld [vmem:[#allocation5 + $0x18] sm:$0xff]  ;;  %s3043_s3 = sshll.u32 %s4826_s2, 4  ;;  %s3045_s13 = sshll.u32 %s5104_s4, 4  ;;  %s3044_s3 = int_to_ptr.vmem [resolvable:$true] %s3043_s3  ;;  %s3046_s13 = int_to_ptr.hbm [resolvable:$true] %s3045_s13 }
  0x40   :  { %684 = vmatpush.bf16.msrb.mxu1 %v3298_v63  ;;  %v4297_v63 = vld [vmem:[#allocation10 + $0xc] sm:$0xf0]  ;;  %v125_v7 = vld [vmem:[#allocation11] sm:$0xf]  ;;  %v4355_v60 = vld [vmem:[#allocation10 + $0xe4] sm:$0xf] }
  0x41   :  { %697 = vmatpush.bf16.msrb.mxu2 %v3302_v58  ;;  %v3230_v58 = vor.u32 %v4301_v51, %v3229_v50  ;;  %v3214_v2 = vor.u32 %v4297_v63, %v3213_v62  ;;  %v4875_v10 = vperm.slane %v125_v7, 1  ;;  %v4885_v16 = vperm.slane %v125_v7, 3  ;;  %v3458_v62 = vld [vmem:[#allocation10 + $0xf0] sm:$0xf0]  ;;  %v3464_v63 = vld [vmem:[#allocation10 + $0xe8] sm:$0xf] }
  0x42   :  { %710 = vmatpush.bf16.msrb.mxu3 %v3306_v9  ;;  %v4887_v17 = vperm.slane %v125_v7, 2 }
  0x43   :  { %672 = vmatpush.bf16.msrb.mxu0 %v3278_v19 }
  0x44   :  { %685 = vmatpush.bf16.msrb.mxu1 %v3282_v13 }
  0x45   :  { %698 = vmatpush.bf16.msrb.mxu2 %v3286_v8  ;;  %v4871_v8 = vperm.slane %v125_v7, 0  ;;  %v3466_v7 = vld [vmem:[#allocation10 + $0xf8] sm:$0xf0] }
  0x46   :  { %711 = vmatpush.bf16.msrb.mxu3 %v3290_v22  ;;  %332 = vmatmul.bf16.gmra.mxu0 %v4260_v20 }
  0x47   :  { %361 = vmatmul.bf16.gmra.mxu1 %v4260_v20  ;;  %673 = vmatpush.bf16.msrb.mxu0 %v3262_v35 }
  0x48   :  { %686 = vmatpush.bf16.msrb.mxu1 %v3266_v24  ;;  %390 = vmatmul.bf16.gmra.mxu2 %v4260_v20 }
  0x49   :  { %699 = vmatpush.bf16.msrb.mxu2 %v3270_v21  ;;  %419 = vmatmul.bf16.gmra.mxu3 %v4260_v20 }
  0x4a   :  { %712 = vmatpush.bf16.msrb.mxu3 %v3274_v31 }
  0x4b   :  { %674 = vmatpush.bf16.msrb.mxu0 %v3246_v44 }
  0x4c   :  { %687 = vmatpush.bf16.msrb.mxu1 %v3250_v32 }
  0x4d   :  { %700 = vmatpush.bf16.msrb.mxu2 %v3254_v30 }
  0x4e   :  { %713 = vmatpush.bf16.msrb.mxu3 %v3258_v43 }
  0x4f   :  { %675 = vmatpush.bf16.msrb.mxu0 %v3230_v58  ;;  %v3456_v58 = vld [vmem:[#allocation10 + $0xe0] sm:$0xf] }
  0x50   :  { %688 = vmatpush.bf16.msrb.mxu1 %v3234_v48 }
  0x51   :  { %701 = vmatpush.bf16.msrb.mxu2 %v3238_v39 }
  0x52   :  { %714 = vmatpush.bf16.msrb.mxu3 %v3242_v55 }
  0x53   :  { %676 = vmatpush.bf16.msrb.mxu0 %v3214_v2  ;;  %v3461_v2 = vor.u32 %v4355_v60, %v3458_v62  ;;  %v3426_v60 = vld [vmem:[#allocation10 + $0xb0] sm:$0xf0]  ;;  %v4350_v62 = vld [vmem:[#allocation10 + $0xb4] sm:$0xf0] }
  0x54   :  { %689 = vmatpush.bf16.msrb.mxu1 %v3218_v59  ;;  %v4357_v59 = vld [vmem:[#allocation10 + $0xec] sm:$0xf0] }
  0x55   :  { %702 = vmatpush.bf16.msrb.mxu2 %v3222_v54  ;;  %v3457_v61 = vor.u32 %v4357_v59, %v3456_v58  ;;  %v4347_v58 = vld [vmem:[#allocation10 + $0xa4] sm:$0xf] }
  0x56   :  { %715 = vmatpush.bf16.msrb.mxu3 %v3226_v0  ;;  %337 = vmatmul.bf16.gmra.mxu0 %v4261_v1  ;;  %v4358_v0 = vld [vmem:[#allocation10 + $0xf4] sm:$0xf0] }
  0x57   :  { %366 = vmatmul.bf16.gmra.mxu1 %v4261_v1  ;;  %989 = vmatpush.bf16.msra.mxu0 %v3457_v61  ;;  %v3432_v61 = vld [vmem:[#allocation10 + $0xa8] sm:$0xf] }
  0x58   :  { %395 = vmatmul.bf16.gmra.mxu2 %v4261_v1  ;;  %1002 = vmatpush.bf16.msra.mxu1 %v3461_v2  ;;  %v4348_v2 = vld [vmem:[#allocation10 + $0xac] sm:$0xf] }
  0x59   :  { %424 = vmatmul.bf16.gmra.mxu3 %v4261_v1 }
  0x66   :  { %342 = vmatmul.bf16.gmra.mxu0 %v4262_v3 }
  0x67   :  { %371 = vmatmul.bf16.gmra.mxu1 %v4262_v3 }
  0x68   :  { %400 = vmatmul.bf16.gmra.mxu2 %v4262_v3 }
  0x69   :  { %429 = vmatmul.bf16.gmra.mxu3 %v4262_v3  ;;  %v3465_v3 = vor.u32 %v4358_v0, %v3464_v63  ;;  %v3429_v0 = vor.u32 %v4347_v58, %v3426_v60  ;;  %v4341_v58 = vld [vmem:[#allocation10 + $0x6c] sm:$0xf0] }
  0x6b   :  { %1015 = vmatpush.bf16.msra.mxu2 %v3465_v3  ;;  %v3434_v3 = vld [vmem:[#allocation10 + $0xb8] sm:$0xf0] }
  0x76   :  { %677 = vmatmul.bf16.vlgmr.msrb.gmra.mxu0 %v4825_v4 }
  0x77   :  { %690 = vmatmul.bf16.vlgmr.msrb.gmra.mxu1 %v4825_v4 }
  0x78   :  { %703 = vmatmul.bf16.vlgmr.msrb.gmra.mxu2 %v4825_v4 }
  0x79   :  { %716 = vmatmul.bf16.vlgmr.msrb.gmra.mxu3 %v4825_v4  ;;  %v4356_v4 = vld [vmem:[#allocation10 + $0xec] sm:$0xf] }
  0xb3   :  { %v4867_v5 = vpop.f32.mrf.mxu0 }
  0xb4   :  { %v4869_v6 = vpop.f32.mrf.mxu1 }
  0xbb   :  { %v4873_v9 = vpop.f32.mrf.mxu2  ;;  %v330_v12 = vpop.f32.mrf.mxu0 }
  0xbc   :  { %v4877_v11 = vpop.f32.mrf.mxu3  ;;  %v4880_v13 = vadd.f32 %v330_v12, %v4871_v8  ;;  %v359_v14 = vpop.f32.mrf.mxu1  ;;  %v387_v60 = vadd.f32 %v4873_v9, %v4887_v17  ;;  %v3376_v9 = vld [vmem:[#allocation10 + $0x40] sm:$0xf] }
  0xbd   :  { %v4883_v15 = vadd.f32 %v359_v14, %v4875_v10 }
  0xc3   :  { %v388_v18 = vpop.f32.mrf.mxu2  ;;  %v333_v21 = vpop.f32.mrf.mxu0 }
  0xc4   :  { %v4890_v19 = vadd.f32 %v388_v18, %v4887_v17  ;;  %v417_v20 = vpop.f32.mrf.mxu3  ;;  %v4896_v23 = vadd.f32 %v333_v21, %v4871_v8  ;;  %v362_v24 = vpop.f32.mrf.mxu1 }
  0xc5   :  { %v4893_v22 = vadd.f32 %v417_v20, %v4885_v16  ;;  %v4899_v25 = vadd.f32 %v362_v24, %v4875_v10  ;;  %v3469_v20 = vor.u32 %v4356_v4, %v3466_v7  ;;  %v358_v4 = vadd.f32 %v4869_v6, %v4875_v10 }
  0xc7   :  { %1028 = vmatpush.bf16.msra.mxu3 %v3469_v20  ;;  %v3437_v20 = vor.u32 %v4348_v2, %v3434_v3 }
  0xcb   :  { %v391_v26 = vpop.f32.mrf.mxu2  ;;  %v335_v29 = vpop.f32.mrf.mxu0 }
  0xcc   :  { %v4902_v27 = vadd.f32 %v391_v26, %v4887_v17  ;;  %v420_v28 = vpop.f32.mrf.mxu3  ;;  %v4908_v31 = vadd.f32 %v335_v29, %v4871_v8  ;;  %v364_v32 = vpop.f32.mrf.mxu1  ;;  %v4353_v29 = vld [vmem:[#allocation10 + $0xcc] sm:$0xf0] }
  0xcd   :  { %v4905_v30 = vadd.f32 %v420_v28, %v4885_v16  ;;  %v4911_v33 = vadd.f32 %v364_v32, %v4875_v10  ;;  %v3440_v28 = vld [vmem:[#allocation10 + $0xc0] sm:$0xf]  ;;  %v4351_v32 = vld [vmem:[#allocation10 + $0xc4] sm:$0xf] }
  0xd3   :  { %v393_v34 = vpop.f32.mrf.mxu2  ;;  %v338_v37 = vpop.f32.mrf.mxu0 }
  0xd4   :  { %v4914_v35 = vadd.f32 %v393_v34, %v4887_v17  ;;  %v422_v36 = vpop.f32.mrf.mxu3  ;;  %v4920_v39 = vadd.f32 %v338_v37, %v4871_v8  ;;  %v367_v40 = vpop.f32.mrf.mxu1  ;;  %v3442_v37 = vld [vmem:[#allocation10 + $0xd0] sm:$0xf0] }
  0xd5   :  { %v4917_v38 = vadd.f32 %v422_v36, %v4885_v16  ;;  %v4923_v41 = vadd.f32 %v367_v40, %v4875_v10  ;;  %v3441_v36 = vor.u32 %v4353_v29, %v3440_v28  ;;  %v3448_v40 = vld [vmem:[#allocation10 + $0xc8] sm:$0xf]  ;;  %v3408_v29 = vld [vmem:[#allocation10 + $0x80] sm:$0xf] }
  0xd7   :  { %990 = vmatpush.bf16.msra.mxu0 %v3441_v36  ;;  %v4343_v36 = vld [vmem:[#allocation10 + $0x84] sm:$0xf] }
  0xdb   :  { %v396_v42 = vpop.f32.mrf.mxu2  ;;  %v340_v45 = vpop.f32.mrf.mxu0 }
  0xdc   :  { %v4926_v43 = vadd.f32 %v396_v42, %v4887_v17  ;;  %v425_v44 = vpop.f32.mrf.mxu3  ;;  %v4932_v47 = vadd.f32 %v340_v45, %v4871_v8  ;;  %v369_v48 = vpop.f32.mrf.mxu1  ;;  %v4354_v42 = vld [vmem:[#allocation10 + $0xd4] sm:$0xf0] }
  0xdd   :  { %v4929_v46 = vadd.f32 %v425_v44, %v4885_v16  ;;  %v4935_v49 = vadd.f32 %v369_v48, %v4875_v10  ;;  %v3445_v44 = vor.u32 %v4351_v32, %v3442_v37  ;;  %v3449_v45 = vor.u32 %v4354_v42, %v3448_v40  ;;  %v4352_v48 = vld [vmem:[#allocation10 + $0xcc] sm:$0xf]  ;;  %v4345_v32 = vld [vmem:[#allocation10 + $0x8c] sm:$0xf0]  ;;  %v3416_v40 = vld [vmem:[#allocation10 + $0x88] sm:$0xf] }
  0xde   :  { %v3409_v6 = vor.u32 %v4345_v32, %v3408_v29  ;;  %v4346_v42 = vld [vmem:[#allocation10 + $0x94] sm:$0xf0] }
  0xdf   :  { %1003 = vmatpush.bf16.msra.mxu1 %v3445_v44  ;;  %1016 = vmatpush.bf16.msra.mxu2 %v3449_v45  ;;  %v3417_v45 = vor.u32 %v4346_v42, %v3416_v40  ;;  %v3378_v42 = vld [vmem:[#allocation10 + $0x50] sm:$0xf0] }
  0xe3   :  { %v398_v50 = vpop.f32.mrf.mxu2  ;;  %v343_v53 = vpop.f32.mrf.mxu0  ;;  %1004 = vmatpush.bf16.msra.mxu1 %v3429_v0  ;;  %v4342_v0 = vld [vmem:[#allocation10 + $0x74] sm:$0xf0] }
  0xe4   :  { %v4938_v51 = vadd.f32 %v398_v50, %v4887_v17  ;;  %v427_v52 = vpop.f32.mrf.mxu3  ;;  %v4944_v55 = vadd.f32 %v343_v53, %v4871_v8  ;;  %v372_v56 = vpop.f32.mrf.mxu1  ;;  %v3450_v50 = vld [vmem:[#allocation10 + $0xd8] sm:$0xf0]  ;;  %v3424_v53 = vld [vmem:[#allocation10 + $0xa0] sm:$0xf] }
  0xe5   :  { %v4941_v54 = vadd.f32 %v427_v52, %v4885_v16  ;;  %v4947_v57 = vadd.f32 %v372_v56, %v4875_v10  ;;  %v3453_v52 = vor.u32 %v4352_v48, %v3450_v50  ;;  %v4349_v56 = vld [vmem:[#allocation10 + $0xac] sm:$0xf0]  ;;  %v4344_v48 = vld [vmem:[#allocation10 + $0x8c] sm:$0xf]  ;;  %v3418_v50 = vld [vmem:[#allocation10 + $0x98] sm:$0xf0] }
  0xe6   :  { %v3425_v59 = vor.u32 %v4349_v56, %v3424_v53  ;;  %v3421_v53 = vor.u32 %v4344_v48, %v3418_v50  ;;  %v3392_v56 = vld [vmem:[#allocation10 + $0x60] sm:$0xf]  ;;  %v4336_v50 = vld [vmem:[#allocation10 + $0x4c] sm:$0xf] }
  0xe7   :  { %1029 = vmatpush.bf16.msra.mxu3 %v3453_v52 }
  0xe8   :  { %991 = vmatpush.bf16.msra.mxu0 %v3425_v59  ;;  %v4339_v59 = vld [vmem:[#allocation10 + $0x64] sm:$0xf] }
  0xeb   :  { %v401_v1 = vpop.f32.mrf.mxu2  ;;  %v345_v18 = vpop.f32.mrf.mxu0  ;;  %1030 = vmatpush.bf16.msra.mxu3 %v3437_v20  ;;  %v3402_v20 = vld [vmem:[#allocation10 + $0x78] sm:$0xf0] }
  0xec   :  { %v4950_v12 = vadd.f32 %v401_v1, %v4887_v17  ;;  %v430_v14 = vpop.f32.mrf.mxu3  ;;  %v4956_v24 = vadd.f32 %v345_v18, %v4871_v8  ;;  %v374_v26 = vpop.f32.mrf.mxu1  ;;  %v3433_v1 = vor.u32 %v4350_v62, %v3432_v61  ;;  %992 = vmatpush.bf16.msra.mxu0 %v3409_v6  ;;  %v3393_v61 = vor.u32 %v4341_v58, %v3392_v56  ;;  %v3394_v62 = vld [vmem:[#allocation10 + $0x70] sm:$0xf0]  ;;  %v3360_v58 = vld [vmem:[#allocation10 + $0x20] sm:$0xf] }
  0xed   :  { %v4953_v21 = vadd.f32 %v430_v14, %v4885_v16  ;;  %v4959_v34 = vadd.f32 %v374_v26, %v4875_v10  ;;  %v3410_v10 = vld [vmem:[#allocation10 + $0x90] sm:$0xf0]  ;;  %v3397_v3 = vor.u32 %v4339_v59, %v3394_v62  ;;  %v4333_v59 = vld [vmem:[#allocation10 + $0x2c] sm:$0xf0]  ;;  %v4331_v62 = vld [vmem:[#allocation10 + $0x24] sm:$0xf] }
  0xee   :  { %1017 = vmatpush.bf16.msra.mxu2 %v3433_v1  ;;  %v3413_v44 = vor.u32 %v4343_v36, %v3410_v10  ;;  %v416_v1 = vadd.f32 %v4877_v11, %v4885_v16  ;;  %v3384_v11 = vld [vmem:[#allocation10 + $0x48] sm:$0xf] }
  0xef   :  { %1031 = vmatpush.bf16.msra.mxu3 %v3421_v53 }
  0xf0   :  { %1005 = vmatpush.bf16.msra.mxu1 %v3413_v44  ;;  %993 = vmatpush.bf16.msra.mxu0 %v3393_v61  ;;  %v3361_v61 = vor.u32 %v4333_v59, %v3360_v58 }
  0xf2   :  { %1018 = vmatpush.bf16.msra.mxu2 %v3417_v45 }
  0xf3   :  { %v403_v63 = vpop.f32.mrf.mxu2  ;;  %v4966_v18 = vpop.f32.mrf.mxu0 }
  0xf4   :  { %v4964_v7 = vadd.f32 %v403_v63, %v4887_v17  ;;  %v432_v14 = vpop.f32.mrf.mxu3  ;;  %v691_v28 = vpop.f32.mrf.mxu1  ;;  %v3400_v63 = vld [vmem:[#allocation10 + $0x68] sm:$0xf]  ;;  %v4337_v17 = vld [vmem:[#allocation10 + $0x4c] sm:$0xf0]  ;;  %1006 = vmatpush.bf16.msra.mxu1 %v3397_v3  ;;  %v4334_v3 = vld [vmem:[#allocation10 + $0x34] sm:$0xf0] }
  0xf5   :  { %v4969_v26 = vadd.f32 %v432_v14, %v4885_v16  ;;  %v722_v37 = vadd.f32 %v691_v28, %v358_v4  ;;  %v3401_v4 = vor.u32 %v4342_v0, %v3400_v63  ;;  %v4340_v14 = vld [vmem:[#allocation10 + $0x6c] sm:$0xf]  ;;  %v3377_v40 = vor.u32 %v4337_v17, %v3376_v9  ;;  %v4338_v16 = vld [vmem:[#allocation10 + $0x54] sm:$0xf0]  ;;  %v3362_v63 = vld [vmem:[#allocation10 + $0x30] sm:$0xf0] }
  0xf6   :  { %v3405_v36 = vor.u32 %v4340_v14, %v3402_v20  ;;  %v3385_v48 = vor.u32 %v4338_v16, %v3384_v11  ;;  %v3368_v0 = vld [vmem:[#allocation10 + $0x28] sm:$0xf]  ;;  %v3370_v20 = vld [vmem:[#allocation10 + $0x38] sm:$0xf0]  ;;  %v4328_v16 = vld [vmem:[#allocation10 + $0xc] sm:$0xf] }
  0xf7   :  { %v3339_v52 = vmul.f32 -1.442695, %v722_v37  ;;  %v4335_v37 = vld [vmem:[#allocation10 + $0x44] sm:$0xf]  ;;  %1019 = vmatpush.bf16.msra.mxu2 %v3401_v4  ;;  %994 = vmatpush.bf16.msra.mxu0 %v3377_v40  ;;  %v4332_v4 = vld [vmem:[#allocation10 + $0x2c] sm:$0xf]  ;;  %v3369_v14 = vor.u32 %v4334_v3, %v3368_v0 }
  0xf8   :  { %1032 = vmatpush.bf16.msra.mxu3 %v3405_v36  ;;  %v3381_v45 = vor.u32 %v4335_v37, %v3378_v42  ;;  %v4327_v36 = vld [vmem:[#allocation10 + $0x4] sm:$0xf]  ;;  %v3373_v17 = vor.u32 %v4332_v4, %v3370_v20  ;;  %v4330_v40 = vld [vmem:[#allocation10 + $0x14] sm:$0xf0] }
  0xf9   :  { %4561 = vpow2.f32 %v3339_v52  ;;  %v3386_v52 = vld [vmem:[#allocation10 + $0x58] sm:$0xf0] }
  0xfa   :  { %v3389_v56 = vor.u32 %v4336_v50, %v3386_v52  ;;  %1007 = vmatpush.bf16.msra.mxu1 %v3381_v45  ;;  %v329_v52 = vadd.f32 %v4867_v5, %v4871_v8 }
  0xfb   :  { %v704_v2 = vpop.f32.mrf.mxu2  ;;  %v680_v32 = vpop.f32.mrf.mxu0  ;;  %1020 = vmatpush.bf16.msra.mxu2 %v3385_v48  ;;  %995 = vmatpush.bf16.msra.mxu0 %v3361_v61 }
  0xfc   :  { %v723_v28 = vadd.f32 %v704_v2, %v387_v60  ;;  %v717_v29 = vpop.f32.mrf.mxu3  ;;  %v693_v10 = vpop.f32.mrf.mxu1  ;;  %v3365_v2 = vor.u32 %v4331_v62, %v3362_v63  ;;  %1033 = vmatpush.bf16.msra.mxu3 %v3389_v56  ;;  %v721_v59 = vadd.f32 %v4966_v18, %v329_v52 }
  0xfd   :  { %v724_v6 = vadd.f32 %v717_v29, %v416_v1  ;;  %v4329_v29 = vld [vmem:[#allocation10 + $0xc] sm:$0xf0]  ;;  %v3352_v10 = vld [vmem:[#allocation10 + $0x8] sm:$0xf] }
  0xfe   :  { %v3340_v44 = vmul.f32 -1.442695, %v723_v28  ;;  %v3344_v28 = vld [vmem:[#allocation10] sm:$0xf]  ;;  %1008 = vmatpush.bf16.msra.mxu1 %v3365_v2  ;;  %v3353_v11 = vor.u32 %v4330_v40, %v3352_v10 }
  0xff   :  { %v3341_v53 = vmul.f32 -1.442695, %v724_v6  ;;  %v4562_v60 = vpop.eup %4561  ;;  %v3345_v37 = vor.u32 %v4329_v29, %v3344_v28  ;;  %v3346_v6 = vld [vmem:[#allocation10 + $0x10] sm:$0xf0]  ;;  %1021 = vmatpush.bf16.msra.mxu2 %v3369_v14 }
 0x100   :  { %4563 = vpow2.f32 %v3340_v44  ;;  %v729_v1 = vadd.f32 1.0, %v4562_v60  ;;  %v3349_v42 = vor.u32 %v4327_v36, %v3346_v6  ;;  %v3354_v44 = vld [vmem:[#allocation10 + $0x18] sm:$0xf0]  ;;  %1034 = vmatpush.bf16.msra.mxu3 %v3373_v17 }
 0x101   :  { %4565 = vpow2.f32 %v3341_v53  ;;  %v3357_v48 = vor.u32 %v4328_v16, %v3354_v44  ;;  %996 = vmatpush.bf16.msra.mxu0 %v3345_v37 }
 0x102   :  { %4567 = vrcp.f32 %v729_v1  ;;  %1009 = vmatpush.bf16.msra.mxu1 %v3349_v42  ;;  %v741_v62 = vand.u32 2147483648, %v729_v1  ;;  %v739_v0 = vand.u32 2147483647, %v729_v1  ;;  %vm735_vm1 = vweird.f32 %v729_v1 }
 0x103   :  { %v706_v32 = vpop.f32.mrf.mxu2  ;;  %1022 = vmatpush.bf16.msra.mxu2 %v3353_v11 }
 0x104   :  { %v719_v9 = vpop.f32.mrf.mxu3  ;;  %1035 = vmatpush.bf16.msra.mxu3 %v3357_v48  ;;  %v742_v4 = vor.u32 1.1754944e-38, %v741_v62  ;;  %vm740_vm3 = vcmp.eq.f32.partialorder %v739_v0, 8.507059e+37  ;;  %v4389_v62 = vld [vmem:[#allocation10 + $0xec] sm:$0xf0] }
 0x106   :  { %v4564_v45 = vpop.eup %4563 }
 0x107   :  { %v4566_v50 = vpop.eup %4565  ;;  %v748_v53 = vadd.f32 1.0, %v4564_v45 }
 0x108   :  { %v767_v56 = vadd.f32 1.0, %v4566_v50  ;;  %v4568_v58 = vpop.eup %4567 }
 0x109   :  { %4569 = vrcp.f32 %v748_v53  ;;  %v731_v60 = vmul.f32 %v4568_v58, %v729_v1  ;;  %vm736_vm0 = vweird.f32 %v4568_v58  ;;  %v760_v32 = vand.u32 2147483648, %v748_v53 }
 0x10a   :  { %4571 = vrcp.f32 %v767_v56  ;;  %vm737_vm2 = vmor %vm735_vm1, %vm736_vm0  ;;  %v758_v17 = vand.u32 2147483647, %v748_v53  ;;  %vm754_vm5 = vweird.f32 %v748_v53  ;;  %v779_v45 = vand.u32 2147483648, %v767_v56 }
 0x10b   :  { %v732_v61 = vsub.f32 1.0, %v731_v60  ;;  %4573 = vtanh.f32 %v721_v59  ;;  %v761_v10 = vor.u32 1.1754944e-38, %v760_v32  ;;  %vm773_vm9 = vweird.f32 %v767_v56 }
 0x10c   :  { %vm759_vm7 = vcmp.eq.f32.partialorder %v758_v17, 8.507059e+37  ;;  %v777_v48 = vand.u32 2147483647, %v767_v56  ;;  %v780_v52 = vor.u32 1.1754944e-38, %v779_v45  ;;  %v4386_v17 = vld [vmem:[#allocation10 + $0xd4] sm:$0xf0] }
 0x10d   :  { %v733_v63 = vmul.f32 %v4568_v58, %v732_v61  ;;  %v3587_v61 = vld [vmem:[#allocation10 + $0xe0] sm:$0xf] }
 0x10e   :  { %vm778_vm11 = vcmp.eq.f32.partialorder %v777_v48, 8.507059e+37  ;;  %v3588_v0 = vor.u32 %v4389_v62, %v3587_v61  ;;  %v3557_v48 = vld [vmem:[#allocation10 + $0xb0] sm:$0xf0] }
 0x10f   :  { %v4570_v2 = vpop.eup %4569  ;;  %v734_v8 = vadd.f32 %v4568_v58, %v733_v63  ;;  %v4387_v63 = vld [vmem:[#allocation10 + $0xe4] sm:$0xf] }
 0x110   :  { %v4572_v5 = vpop.eup %4571  ;;  %v750_v3 = vmul.f32 %v4570_v2, %v748_v53  ;;  %vm755_vm4 = vweird.f32 %v4570_v2  ;;  %1310 = vmatpush.bf16.msrb.mxu0 %v3588_v0 }
 0x111   :  { %v769_v18 = vmul.f32 %v4572_v5, %v767_v56  ;;  %v738_v14 = vsel %vm737_vm2, %v4568_v58, %v734_v8  ;;  %v4574_v28 = vpop.eup %4573  ;;  %vm756_vm6 = vmor %vm754_vm5, %vm755_vm4  ;;  %vm774_vm8 = vweird.f32 %v4572_v5  ;;  %v3595_v8 = vld [vmem:[#allocation10 + $0xe8] sm:$0xf]  ;;  %v4390_v56 = vld [vmem:[#allocation10 + $0xf4] sm:$0xf0] }
 0x112   :  { %v751_v20 = vsub.f32 1.0, %v750_v3  ;;  %v743_v29 = vsel %vm740_vm3, %v742_v4, %v738_v14  ;;  %vm775_vm10 = vmor %vm773_vm9, %vm774_vm8  ;;  %v4388_v4 = vld [vmem:[#allocation10 + $0xec] sm:$0xf] }
 0x113   :  { %v783_v36 = vmul.f32 %v4574_v28, %v743_v29  ;;  %v770_v37 = vsub.f32 1.0, %v769_v18  ;;  %v3597_v18 = vld [vmem:[#allocation10 + $0xf8] sm:$0xf0]  ;;  %v4385_v28 = vld [vmem:[#allocation10 + $0xcc] sm:$0xf0] }
 0x114   :  { %v752_v9 = vmul.f32 %v4570_v2, %v751_v20  ;;  %v3600_v14 = vor.u32 %v4388_v4, %v3597_v18  ;;  %v3571_v20 = vld [vmem:[#allocation10 + $0xc0] sm:$0xf]  ;;  %v4383_v29 = vld [vmem:[#allocation10 + $0xc4] sm:$0xf]  ;;  %v3547_v4 = vld [vmem:[#allocation10 + $0x88] sm:$0xf] }
 0x115   :  { %v771_v42 = vmul.f32 %v4572_v5, %v770_v37  ;;  %v3572_v32 = vor.u32 %v4385_v28, %v3571_v20  ;;  %v4378_v18 = vld [vmem:[#allocation10 + $0x94] sm:$0xf0] }
 0x116   :  { %v753_v6 = vadd.f32 %v4570_v2, %v752_v9  ;;  %1349 = vmatpush.bf16.msrb.mxu3 %v3600_v14  ;;  %v3579_v9 = vld [vmem:[#allocation10 + $0xc8] sm:$0xf]  ;;  %v3548_v28 = vor.u32 %v4378_v18, %v3547_v4 }
 0x117   :  { %v772_v44 = vadd.f32 %v4572_v5, %v771_v42  ;;  %1311 = vmatpush.bf16.msrb.mxu0 %v3572_v32  ;;  %v3555_v42 = vld [vmem:[#allocation10 + $0xa0] sm:$0xf]  ;;  %v3549_v32 = vld [vmem:[#allocation10 + $0x98] sm:$0xf0] }
 0x118   :  { %v757_v1 = vsel %vm756_vm6, %v4570_v2, %v753_v6  ;;  %v3589_v2 = vld [vmem:[#allocation10 + $0xf0] sm:$0xf0]  ;;  %v3580_v6 = vor.u32 %v4386_v17, %v3579_v9  ;;  %v4373_v9 = vld [vmem:[#allocation10 + $0x6c] sm:$0xf0]  ;;  %v4371_v17 = vld [vmem:[#allocation10 + $0x64] sm:$0xf] }
 0x119   :  { %v762_v40 = vsel %vm759_vm7, %v761_v10, %v757_v1  ;;  %v776_v50 = vsel %vm775_vm10, %v4572_v5, %v772_v44  ;;  %v3592_v3 = vor.u32 %v4387_v63, %v3589_v2  ;;  %v3596_v5 = vor.u32 %v4390_v56, %v3595_v8  ;;  %v4384_v10 = vld [vmem:[#allocation10 + $0xcc] sm:$0xf]  ;;  %v3581_v1 = vld [vmem:[#allocation10 + $0xd8] sm:$0xf0]  ;;  %v4379_v44 = vld [vmem:[#allocation10 + $0xa4] sm:$0xf] }
 0x11a   :  { %v784_v11 = vmul.f32 0.0, %v762_v40  ;;  %v781_v58 = vsel %vm778_vm11, %v780_v52, %v776_v50  ;;  %v3584_v40 = vor.u32 %v4384_v10, %v3581_v1  ;;  %v3563_v50 = vld [vmem:[#allocation10 + $0xa8] sm:$0xf]  ;;  %v4382_v52 = vld [vmem:[#allocation10 + $0xb4] sm:$0xf0] }
 0x11b   :  { %1323 = vmatpush.bf16.msrb.mxu1 %v3592_v3  ;;  %1336 = vmatpush.bf16.msrb.mxu2 %v3596_v5  ;;  %v3539_v2 = vld [vmem:[#allocation10 + $0x80] sm:$0xf]  ;;  %v4377_v8 = vld [vmem:[#allocation10 + $0x8c] sm:$0xf0]  ;;  %v4375_v56 = vld [vmem:[#allocation10 + $0x84] sm:$0xf] }
 0x11c   :  { %v4978_v16 = vadd.f32 %v784_v11, %v783_v36  ;;  %v3573_v36 = vld [vmem:[#allocation10 + $0xd0] sm:$0xf0]  ;;  %v4381_v11 = vld [vmem:[#allocation10 + $0xac] sm:$0xf0]  ;;  %1350 = vmatpush.bf16.msrb.mxu3 %v3584_v40  ;;  %v3540_v3 = vor.u32 %v4377_v8, %v3539_v2  ;;  %v3531_v10 = vld [vmem:[#allocation10 + $0x68] sm:$0xf] }
 0x11d   :  { %v3576_v37 = vor.u32 %v4383_v29, %v3573_v36  ;;  %v3556_v45 = vor.u32 %v4381_v11, %v3555_v42  ;;  %v3541_v5 = vld [vmem:[#allocation10 + $0x90] sm:$0xf0]  ;;  %v4376_v29 = vld [vmem:[#allocation10 + $0x8c] sm:$0xf]  ;;  %v4374_v1 = vld [vmem:[#allocation10 + $0x74] sm:$0xf0] }
 0x11e   :  { %4575 = vtanh.f32 %v4978_v16  ;;  %v3544_v20 = vor.u32 %v4375_v56, %v3541_v5  ;;  %v3552_v36 = vor.u32 %v4376_v29, %v3549_v32  ;;  %v3515_v56 = vld [vmem:[#allocation10 + $0x48] sm:$0xf]  ;;  %v4368_v5 = vld [vmem:[#allocation10 + $0x4c] sm:$0xf]  ;;  %v4365_v29 = vld [vmem:[#allocation10 + $0x2c] sm:$0xf0] }
 0x11f   :  { %1324 = vmatpush.bf16.msrb.mxu1 %v3576_v37  ;;  %1337 = vmatpush.bf16.msrb.mxu2 %v3580_v6  ;;  %v3525_v6 = vld [vmem:[#allocation10 + $0x70] sm:$0xf0]  ;;  %v4363_v32 = vld [vmem:[#allocation10 + $0x24] sm:$0xf] }
 0x120   :  { %1312 = vmatpush.bf16.msrb.mxu0 %v3556_v45  ;;  %v3528_v11 = vor.u32 %v4371_v17, %v3525_v6  ;;  %v4372_v45 = vld [vmem:[#allocation10 + $0x6c] sm:$0xf]  ;;  %v3499_v17 = vld [vmem:[#allocation10 + $0x28] sm:$0xf]  ;;  %v4366_v6 = vld [vmem:[#allocation10 + $0x34] sm:$0xf0] }
 0x124   :  { %v4576_v53 = vpop.eup %4575  ;;  %1313 = vmatpush.bf16.msrb.mxu0 %v3540_v3  ;;  %v4370_v3 = vld [vmem:[#allocation10 + $0x54] sm:$0xf0] }
 0x125   :  { %v787_v59 = vmul.f32 %v4576_v53, %v781_v58  ;;  %v3560_v53 = vor.u32 %v4379_v44, %v3557_v48  ;;  %v3564_v58 = vor.u32 %v4382_v52, %v3563_v50  ;;  %v3532_v44 = vor.u32 %v4374_v1, %v3531_v10  ;;  %v3533_v48 = vld [vmem:[#allocation10 + $0x78] sm:$0xf0]  ;;  %v3507_v50 = vld [vmem:[#allocation10 + $0x40] sm:$0xf]  ;;  %v4364_v10 = vld [vmem:[#allocation10 + $0x2c] sm:$0xf] }
 0x126   :  { %v3501_v1 = vld [vmem:[#allocation10 + $0x38] sm:$0xf0] }
 0x127   :  { %v788_v60 = vpack.c.bf16 %v787_v59, %v787_v59  ;;  %v4380_v59 = vld [vmem:[#allocation10 + $0xac] sm:$0xf]  ;;  %1325 = vmatpush.bf16.msrb.mxu1 %v3560_v53  ;;  %1338 = vmatpush.bf16.msrb.mxu2 %v3564_v58 }
 0x129   :  { %789 = vst [vmem:[#allocation13] sm:$0xf] %v788_v60  ;;  %997 = vmatmul.bf16.vlgmr.msra.gmra.mxu0 %v788_v60  ;;  %1010 = vmatmul.bf16.vlgmr.msra.gmra.mxu1 %v788_v60 }
 0x12a   :  { %1023 = vmatmul.bf16.vlgmr.msra.gmra.mxu2 %v788_v60  ;;  %1036 = vmatmul.bf16.vlgmr.msra.gmra.mxu3 %v788_v60  ;;  %v3565_v60 = vld [vmem:[#allocation10 + $0xb8] sm:$0xf0] }
 0x12b   :  { %v3568_v63 = vor.u32 %v4380_v59, %v3565_v60  ;;  %1326 = vmatpush.bf16.msrb.mxu1 %v3544_v20  ;;  %1339 = vmatpush.bf16.msrb.mxu2 %v3548_v28  ;;  %v3536_v60 = vor.u32 %v4372_v45, %v3533_v48  ;;  %v3491_v28 = vld [vmem:[#allocation10 + $0x20] sm:$0xf]  ;;  %v3504_v45 = vor.u32 %v4364_v10, %v3501_v1  ;;  %v4361_v48 = vld [vmem:[#allocation10 + $0xc] sm:$0xf0] }
 0x12d   :  { %1351 = vmatpush.bf16.msrb.mxu3 %v3568_v63  ;;  %v4367_v63 = vld [vmem:[#allocation10 + $0x44] sm:$0xf] }
 0x12f   :  { %1327 = vmatpush.bf16.msrb.mxu1 %v3528_v11  ;;  %1340 = vmatpush.bf16.msrb.mxu2 %v3532_v44  ;;  %v3500_v44 = vor.u32 %v4366_v6, %v3499_v17 }
 0x131   :  { %1352 = vmatpush.bf16.msrb.mxu3 %v3552_v36 }
 0x135   :  { %1353 = vmatpush.bf16.msrb.mxu3 %v3536_v60 }
 0x1a6   :  { %v4981_v61 = vpop.f32.mrf.mxu0  ;;  %v1011_v62 = vpop.f32.mrf.mxu1 }
 0x1a7   :  { %v1042_v0 = vadd.f32 %v1011_v62, %v4883_v15  ;;  %v3523_v15 = vld [vmem:[#allocation10 + $0x60] sm:$0xf]  ;;  %v4369_v62 = vld [vmem:[#allocation10 + $0x4c] sm:$0xf0] }
 0x1a8   :  { %v3524_v37 = vor.u32 %v4373_v9, %v3523_v15  ;;  %v3508_v2 = vor.u32 %v4369_v62, %v3507_v50  ;;  %v3492_v15 = vor.u32 %v4365_v29, %v3491_v28  ;;  %v3493_v9 = vld [vmem:[#allocation10 + $0x30] sm:$0xf0]  ;;  %v4359_v50 = vld [vmem:[#allocation10 + $0x4] sm:$0xf] }
 0x1a9   :  { %v3470_v14 = vmul.f32 -1.442695, %v1042_v0  ;;  %v3509_v0 = vld [vmem:[#allocation10 + $0x50] sm:$0xf0] }
 0x1aa   :  { %1314 = vmatpush.bf16.msrb.mxu0 %v3524_v37  ;;  %v3512_v8 = vor.u32 %v4367_v63, %v3509_v0  ;;  %v3496_v37 = vor.u32 %v4363_v32, %v3493_v9  ;;  %v4360_v63 = vld [vmem:[#allocation10 + $0xc] sm:$0xf]  ;;  %v3485_v0 = vld [vmem:[#allocation10 + $0x18] sm:$0xf0] }
 0x1ab   :  { %4577 = vpow2.f32 %v3470_v14  ;;  %v3517_v14 = vld [vmem:[#allocation10 + $0x58] sm:$0xf0] }
 0x1ac   :  { %v3520_v20 = vor.u32 %v4368_v5, %v3517_v14  ;;  %1328 = vmatpush.bf16.msrb.mxu1 %v3512_v8  ;;  %v3488_v8 = vor.u32 %v4360_v63, %v3485_v0 }
 0x1ad   :  { %v1024_v40 = vpop.f32.mrf.mxu2  ;;  %v1037_v42 = vpop.f32.mrf.mxu3 }
 0x1ae   :  { %v1043_v52 = vadd.f32 %v1024_v40, %v4890_v19  ;;  %v1044_v53 = vadd.f32 %v1037_v42, %v4893_v22  ;;  %v1000_v58 = vpop.f32.mrf.mxu0  ;;  %v1013_v59 = vpop.f32.mrf.mxu1  ;;  %v3516_v19 = vor.u32 %v4370_v3, %v3515_v56  ;;  %1315 = vmatpush.bf16.msrb.mxu0 %v3508_v2  ;;  %1354 = vmatpush.bf16.msrb.mxu3 %v3520_v20  ;;  %v3475_v40 = vld [vmem:[#allocation10] sm:$0xf] }
 0x1af   :  { %v3483_v58 = vld [vmem:[#allocation10 + $0x8] sm:$0xf]  ;;  %v4362_v59 = vld [vmem:[#allocation10 + $0x14] sm:$0xf0] }
 0x1b0   :  { %v3471_v4 = vmul.f32 -1.442695, %v1043_v52  ;;  %v3472_v18 = vmul.f32 -1.442695, %v1044_v53  ;;  %1341 = vmatpush.bf16.msrb.mxu2 %v3516_v19  ;;  %v3477_v52 = vld [vmem:[#allocation10 + $0x10] sm:$0xf0]  ;;  %v3476_v53 = vor.u32 %v4361_v48, %v3475_v40  ;;  %1329 = vmatpush.bf16.msrb.mxu1 %v3496_v37  ;;  %v3484_v62 = vor.u32 %v4362_v59, %v3483_v58 }
 0x1b1   :  { %v4578_v22 = vpop.eup %4577  ;;  %v3480_v60 = vor.u32 %v4359_v50, %v3477_v52 }
 0x1b2   :  { %v4986_v36 = vadd.f32 1.0, %v4578_v22  ;;  %4579 = vpow2.f32 %v3471_v4  ;;  %1316 = vmatpush.bf16.msrb.mxu0 %v3492_v15  ;;  %1355 = vmatpush.bf16.msrb.mxu3 %v3504_v45  ;;  %v1041_v4 = vadd.f32 %v4981_v61, %v4880_v13 }
 0x1b3   :  { %4581 = vpow2.f32 %v3472_v18 }
 0x1b4   :  { %4583 = vrcp.f32 %v4986_v36  ;;  %1342 = vmatpush.bf16.msrb.mxu2 %v3500_v44  ;;  %1330 = vmatpush.bf16.msrb.mxu1 %v3480_v60  ;;  %v1061_v22 = vand.u32 2147483648, %v4986_v36  ;;  %v1059_v28 = vand.u32 2147483647, %v4986_v36  ;;  %vm1055_vm13 = vweird.f32 %v4986_v36 }
 0x1b5   :  { %v1026_v42 = vpop.f32.mrf.mxu2  ;;  %v1039_v11 = vpop.f32.mrf.mxu3 }
 0x1b6   :  { %1317 = vmatpush.bf16.msrb.mxu0 %v3476_v53  ;;  %1356 = vmatpush.bf16.msrb.mxu3 %v3488_v8  ;;  %v1062_v61 = vor.u32 1.1754944e-38, %v1061_v22  ;;  %vm1060_vm15 = vcmp.eq.f32.partialorder %v1059_v28, 8.507059e+37  ;;  %v3726_v22 = vld [vmem:[#allocation10 + $0xe8] sm:$0xf] }
 0x1b8   :  { %v4580_v2 = vpop.eup %4579  ;;  %1343 = vmatpush.bf16.msrb.mxu2 %v3484_v62 }
 0x1b9   :  { %v4582_v56 = vpop.eup %4581  ;;  %v1068_v3 = vadd.f32 1.0, %v4580_v2 }
 0x1ba   :  { %v4584_v5 = vpop.eup %4583  ;;  %v1087_v18 = vadd.f32 1.0, %v4582_v56 }
 0x1bb   :  { %v1051_v19 = vmul.f32 %v4584_v5, %v4986_v36  ;;  %4585 = vrcp.f32 %v1068_v3  ;;  %vm1056_vm12 = vweird.f32 %v4584_v5  ;;  %v1080_v40 = vand.u32 2147483648, %v1068_v3 }
 0x1bc   :  { %4587 = vrcp.f32 %v1087_v18  ;;  %vm1057_vm14 = vmor %vm1055_vm13, %vm1056_vm12  ;;  %v1078_v11 = vand.u32 2147483647, %v1068_v3  ;;  %vm1074_vm1 = vweird.f32 %v1068_v3  ;;  %v1099_v60 = vand.u32 2147483648, %v1087_v18 }
 0x1bd   :  { %v1052_v14 = vsub.f32 1.0, %v1051_v19  ;;  %4589 = vtanh.f32 %v1041_v4  ;;  %v1081_v36 = vor.u32 1.1754944e-38, %v1080_v40  ;;  %vm1093_vm5 = vweird.f32 %v1087_v18  ;;  %v4419_v4 = vld [vmem:[#allocation10 + $0xe4] sm:$0xf] }
 0x1be   :  { %vm1079_vm3 = vcmp.eq.f32.partialorder %v1078_v11, 8.507059e+37  ;;  %v1097_v62 = vand.u32 2147483647, %v1087_v18  ;;  %v1100_v0 = vor.u32 1.1754944e-38, %v1099_v60  ;;  %v3712_v11 = vld [vmem:[#allocation10 + $0xd8] sm:$0xf0] }
 0x1bf   :  { %v1053_v20 = vmul.f32 %v4584_v5, %v1052_v14  ;;  %v3720_v14 = vld [vmem:[#allocation10 + $0xf0] sm:$0xf0] }
 0x1c0   :  { %vm1098_vm7 = vcmp.eq.f32.partialorder %v1097_v62, 8.507059e+37 }
 0x1c1   :  { %v4586_v29 = vpop.eup %4585  ;;  %v1054_v32 = vadd.f32 %v4584_v5, %v1053_v20  ;;  %v3723_v20 = vor.u32 %v4419_v4, %v3720_v14  ;;  %v4407_v4 = vld [vmem:[#allocation10 + $0x84] sm:$0xf]  ;;  %v3672_v14 = vld [vmem:[#allocation10 + $0x90] sm:$0xf0] }
 0x1c2   :  { %v4588_v13 = vpop.eup %4587  ;;  %v1070_v15 = vmul.f32 %v4586_v29, %v1068_v3  ;;  %vm1075_vm0 = vweird.f32 %v4586_v29 }
 0x1c3   :  { %v1058_v9 = vsel %vm1057_vm14, %v4584_v5, %v1054_v32  ;;  %v1089_v17 = vmul.f32 %v4588_v13, %v1087_v18  ;;  %v4590_v37 = vpop.eup %4589  ;;  %vm1076_vm2 = vmor %vm1074_vm1, %vm1075_vm0  ;;  %vm1094_vm4 = vweird.f32 %v4588_v13  ;;  %v4421_v5 = vld [vmem:[#allocation10 + $0xec] sm:$0xf0]  ;;  %v4422_v18 = vld [vmem:[#allocation10 + $0xf4] sm:$0xf0]  ;;  %1644 = vmatpush.bf16.msra.mxu1 %v3723_v20 }
 0x1c4   :  { %v1063_v6 = vsel %vm1060_vm15, %v1062_v61, %v1058_v9  ;;  %v1071_v10 = vsub.f32 1.0, %v1070_v15  ;;  %vm1095_vm6 = vmor %vm1093_vm5, %vm1094_vm4  ;;  %v3727_v28 = vor.u32 %v4422_v18, %v3726_v22  ;;  %v3728_v32 = vld [vmem:[#allocation10 + $0xf8] sm:$0xf0]  ;;  %v3702_v61 = vld [vmem:[#allocation10 + $0xc0] sm:$0xf] }
 0x1c5   :  { %v1103_v1 = vmul.f32 %v4590_v37, %v1063_v6  ;;  %v1090_v44 = vsub.f32 1.0, %v1089_v17  ;;  %v4417_v15 = vld [vmem:[#allocation10 + $0xcc] sm:$0xf0]  ;;  %v4415_v9 = vld [vmem:[#allocation10 + $0xc4] sm:$0xf] }
 0x1c6   :  { %v1072_v42 = vmul.f32 %v4586_v29, %v1071_v10  ;;  %1657 = vmatpush.bf16.msra.mxu2 %v3727_v28  ;;  %v3703_v17 = vor.u32 %v4417_v15, %v3702_v61  ;;  %v3704_v37 = vld [vmem:[#allocation10 + $0xd0] sm:$0xf0]  ;;  %v3710_v6 = vld [vmem:[#allocation10 + $0xc8] sm:$0xf]  ;;  %v4418_v10 = vld [vmem:[#allocation10 + $0xd4] sm:$0xf0]  ;;  %v3675_v28 = vor.u32 %v4407_v4, %v3672_v14 }
 0x1c7   :  { %v1091_v52 = vmul.f32 %v4588_v13, %v1090_v44  ;;  %v3711_v40 = vor.u32 %v4418_v10, %v3710_v6  ;;  %v3678_v22 = vld [vmem:[#allocation10 + $0x88] sm:$0xf]  ;;  %v4410_v18 = vld [vmem:[#allocation10 + $0x94] sm:$0xf0]  ;;  %v4405_v15 = vld [vmem:[#allocation10 + $0x6c] sm:$0xf0] }
 0x1c8   :  { %v1073_v45 = vadd.f32 %v4586_v29, %v1072_v42  ;;  %v4416_v42 = vld [vmem:[#allocation10 + $0xcc] sm:$0xf]  ;;  %v3662_v6 = vld [vmem:[#allocation10 + $0x68] sm:$0xf]  ;;  %v4406_v10 = vld [vmem:[#allocation10 + $0x74] sm:$0xf0] }
 0x1c9   :  { %v1092_v59 = vadd.f32 %v4588_v13, %v1091_v52  ;;  %v3715_v44 = vor.u32 %v4416_v42, %v3712_v11  ;;  %v3688_v52 = vld [vmem:[#allocation10 + $0xb0] sm:$0xf0]  ;;  %v3663_v11 = vor.u32 %v4406_v10, %v3662_v6 }
 0x1ca   :  { %v1077_v48 = vsel %vm1076_vm2, %v4586_v29, %v1073_v45  ;;  %v4420_v29 = vld [vmem:[#allocation10 + $0xec] sm:$0xf]  ;;  %1658 = vmatpush.bf16.msra.mxu2 %v3711_v40  ;;  %v3686_v45 = vld [vmem:[#allocation10 + $0xa0] sm:$0xf] }
 0x1cb   :  { %v1082_v50 = vsel %vm1079_vm3, %v1081_v36, %v1077_v48  ;;  %v1096_v63 = vsel %vm1095_vm6, %v4588_v13, %v1092_v59  ;;  %v3731_v13 = vor.u32 %v4420_v29, %v3728_v32  ;;  %v4413_v36 = vld [vmem:[#allocation10 + $0xac] sm:$0xf0]  ;;  %v4411_v48 = vld [vmem:[#allocation10 + $0xa4] sm:$0xf]  ;;  %v4414_v59 = vld [vmem:[#allocation10 + $0xb4] sm:$0xf0]  ;;  %v3679_v29 = vor.u32 %v4410_v18, %v3678_v22 }
 0x1cc   :  { %v1104_v53 = vmul.f32 %v1082_v50, %v4978_v16  ;;  %v1101_v8 = vsel %vm1098_vm7, %v1100_v0, %v1096_v63  ;;  %v3718_v16 = vld [vmem:[#allocation10 + $0xe0] sm:$0xf]  ;;  %v3687_v50 = vor.u32 %v4413_v36, %v3686_v45  ;;  %v3691_v60 = vor.u32 %v4411_v48, %v3688_v52  ;;  %v4412_v63 = vld [vmem:[#allocation10 + $0xac] sm:$0xf]  ;;  %v3696_v0 = vld [vmem:[#allocation10 + $0xb8] sm:$0xf0] }
 0x1cd   :  { %v3719_v19 = vor.u32 %v4421_v5, %v3718_v16  ;;  %1670 = vmatpush.bf16.msra.mxu3 %v3731_v13  ;;  %v3670_v16 = vld [vmem:[#allocation10 + $0x80] sm:$0xf]  ;;  %v4409_v5 = vld [vmem:[#allocation10 + $0x8c] sm:$0xf0]  ;;  %v4408_v32 = vld [vmem:[#allocation10 + $0x8c] sm:$0xf] }
 0x1ce   :  { %v4996_v58 = vadd.f32 %v1104_v53, %v1103_v1  ;;  %v3707_v1 = vor.u32 %v4415_v9, %v3704_v37  ;;  %v3694_v53 = vld [vmem:[#allocation10 + $0xa8] sm:$0xf]  ;;  %v3680_v13 = vld [vmem:[#allocation10 + $0x98] sm:$0xf0]  ;;  %v4403_v9 = vld [vmem:[#allocation10 + $0x64] sm:$0xf] }
 0x1cf   :  { %1631 = vmatpush.bf16.msra.mxu0 %v3719_v19  ;;  %v3695_v62 = vor.u32 %v4414_v59, %v3694_v53  ;;  %v3671_v19 = vor.u32 %v4409_v5, %v3670_v16  ;;  %v3683_v61 = vor.u32 %v4408_v32, %v3680_v13  ;;  %v3656_v37 = vld [vmem:[#allocation10 + $0x70] sm:$0xf0]  ;;  %v3664_v45 = vld [vmem:[#allocation10 + $0x78] sm:$0xf0]  ;;  %v3638_v36 = vld [vmem:[#allocation10 + $0x40] sm:$0xf] }
 0x1d0   :  { %4591 = vtanh.f32 %v4996_v58  ;;  %1645 = vmatpush.bf16.msra.mxu1 %v3707_v1  ;;  %v3659_v42 = vor.u32 %v4403_v9, %v3656_v37  ;;  %v4400_v16 = vld [vmem:[#allocation10 + $0x4c] sm:$0xf]  ;;  %v3622_v22 = vld [vmem:[#allocation10 + $0x20] sm:$0xf]  ;;  %v4397_v18 = vld [vmem:[#allocation10 + $0x2c] sm:$0xf0] }
 0x1d1   :  { %1671 = vmatpush.bf16.msra.mxu3 %v3715_v44  ;;  %1659 = vmatpush.bf16.msra.mxu2 %v3695_v62  ;;  %v4404_v44 = vld [vmem:[#allocation10 + $0x6c] sm:$0xf]  ;;  %v4399_v62 = vld [vmem:[#allocation10 + $0x44] sm:$0xf]  ;;  %v3624_v32 = vld [vmem:[#allocation10 + $0x30] sm:$0xf0] }
 0x1d2   :  { %v3667_v59 = vor.u32 %v4404_v44, %v3664_v45  ;;  %v3630_v13 = vld [vmem:[#allocation10 + $0x28] sm:$0xf]  ;;  %v3632_v9 = vld [vmem:[#allocation10 + $0x38] sm:$0xf0] }
 0x1d3   :  { %1632 = vmatpush.bf16.msra.mxu0 %v3703_v17  ;;  %v3614_v45 = vld [vmem:[#allocation10 + $0x8] sm:$0xf] }
 0x1d4   :  { %1646 = vmatpush.bf16.msra.mxu1 %v3691_v60  ;;  %v4401_v60 = vld [vmem:[#allocation10 + $0x4c] sm:$0xf0] }
 0x1d5   :  { %1660 = vmatpush.bf16.msra.mxu2 %v3679_v29  ;;  %v3623_v29 = vor.u32 %v4397_v18, %v3622_v22 }
 0x1d6   :  { %v4592_v2 = vpop.eup %4591 }
 0x1d7   :  { %v1107_v56 = vmul.f32 %v4592_v2, %v1101_v8  ;;  %1633 = vmatpush.bf16.msra.mxu0 %v3687_v50 }
 0x1d8   :  { %1647 = vmatpush.bf16.msra.mxu1 %v3675_v28 }
 0x1d9   :  { %v1108_v3 = vpack.c.bf16 %v1107_v56, %v1107_v56  ;;  %v3699_v56 = vor.u32 %v4412_v63, %v3696_v0  ;;  %v3640_v63 = vld [vmem:[#allocation10 + $0x50] sm:$0xf0]  ;;  %1661 = vmatpush.bf16.msra.mxu2 %v3663_v11  ;;  %v3639_v0 = vor.u32 %v4401_v60, %v3638_v36  ;;  %v4394_v36 = vld [vmem:[#allocation10 + $0x14] sm:$0xf0] }
 0x1da   :  { %v3608_v11 = vld [vmem:[#allocation10 + $0x10] sm:$0xf0] }
 0x1db   :  { %1110 = vst [vmem:[#allocation13 + $0x4] sm:$0xf] %v1108_v3  ;;  %1318 = vmatmul.bf16.vlgmr.msrb.gmra.mxu0 %v1108_v3  ;;  %1331 = vmatmul.bf16.vlgmr.msrb.gmra.mxu1 %v1108_v3 }
 0x1dc   :  { %1344 = vmatmul.bf16.vlgmr.msrb.gmra.mxu2 %v1108_v3  ;;  %1357 = vmatmul.bf16.vlgmr.msrb.gmra.mxu3 %v1108_v3 }
 0x1dd   :  { %1672 = vmatpush.bf16.msra.mxu3 %v3699_v56  ;;  %1634 = vmatpush.bf16.msra.mxu0 %v3671_v19  ;;  %v3646_v56 = vld [vmem:[#allocation10 + $0x48] sm:$0xf]  ;;  %v3648_v19 = vld [vmem:[#allocation10 + $0x58] sm:$0xf0] }
 0x1de   :  { %1648 = vmatpush.bf16.msra.mxu1 %v3659_v42  ;;  %v3651_v14 = vor.u32 %v4400_v16, %v3648_v19  ;;  %v4391_v42 = vld [vmem:[#allocation10 + $0x4] sm:$0xf] }
 0x1e1   :  { %1673 = vmatpush.bf16.msra.mxu3 %v3683_v61 }
 0x1e5   :  { %1674 = vmatpush.bf16.msra.mxu3 %v3667_v59 }
 0x1e9   :  { %1675 = vmatpush.bf16.msra.mxu3 %v3651_v14 }
 0x258   :  { %v4999_v2 = vpop.f32.mrf.mxu0  ;;  %v1332_v8 = vpop.f32.mrf.mxu1 }
 0x259   :  { %v1363_v3 = vadd.f32 %v1332_v8, %v4899_v25  ;;  %v3654_v25 = vld [vmem:[#allocation10 + $0x60] sm:$0xf]  ;;  %v3643_v8 = vor.u32 %v4399_v62, %v3640_v63 }
 0x25a   :  { %v3655_v17 = vor.u32 %v4405_v15, %v3654_v25  ;;  %v4398_v25 = vld [vmem:[#allocation10 + $0x34] sm:$0xf0]  ;;  %v4396_v15 = vld [vmem:[#allocation10 + $0x2c] sm:$0xf] }
 0x25b   :  { %v3601_v20 = vmul.f32 -1.442695, %v1363_v3  ;;  %v4402_v3 = vld [vmem:[#allocation10 + $0x54] sm:$0xf0]  ;;  %1649 = vmatpush.bf16.msra.mxu1 %v3643_v8  ;;  %v3631_v10 = vor.u32 %v4398_v25, %v3630_v13  ;;  %v1362_v8 = vadd.f32 %v4999_v2, %v4896_v23 }
 0x25c   :  { %1635 = vmatpush.bf16.msra.mxu0 %v3655_v17  ;;  %v3606_v17 = vld [vmem:[#allocation10] sm:$0xf] }
 0x25d   :  { %4593 = vpow2.f32 %v3601_v20  ;;  %v4395_v20 = vld [vmem:[#allocation10 + $0x24] sm:$0xf] }
 0x25e   :  { %v3627_v61 = vor.u32 %v4395_v20, %v3624_v32 }
 0x25f   :  { %v1345_v1 = vpop.f32.mrf.mxu2  ;;  %v1358_v40 = vpop.f32.mrf.mxu3 }
 0x260   :  { %v1364_v48 = vadd.f32 %v1345_v1, %v4902_v27  ;;  %v1365_v50 = vadd.f32 %v1358_v40, %v4905_v30  ;;  %v1321_v52 = vpop.f32.mrf.mxu0  ;;  %v1334_v53 = vpop.f32.mrf.mxu1  ;;  %v3647_v27 = vor.u32 %v4402_v3, %v3646_v56  ;;  %1636 = vmatpush.bf16.msra.mxu0 %v3639_v0  ;;  %v3635_v1 = vor.u32 %v4396_v15, %v3632_v9  ;;  %v4393_v40 = vld [vmem:[#allocation10 + $0xc] sm:$0xf0] }
 0x261   :  { %v3607_v44 = vor.u32 %v4393_v40, %v3606_v17  ;;  %1650 = vmatpush.bf16.msra.mxu1 %v3627_v61  ;;  %v4392_v52 = vld [vmem:[#allocation10 + $0xc] sm:$0xf]  ;;  %v3616_v53 = vld [vmem:[#allocation10 + $0x18] sm:$0xf0] }
 0x262   :  { %v3602_v5 = vmul.f32 -1.442695, %v1364_v48  ;;  %v3603_v4 = vmul.f32 -1.442695, %v1365_v50  ;;  %1662 = vmatpush.bf16.msra.mxu2 %v3647_v27  ;;  %v3611_v48 = vor.u32 %v4391_v42, %v3608_v11  ;;  %v3615_v50 = vor.u32 %v4394_v36, %v3614_v45  ;;  %1676 = vmatpush.bf16.msra.mxu3 %v3635_v1 }
 0x263   :  { %v4594_v30 = vpop.eup %4593  ;;  %v3619_v60 = vor.u32 %v4392_v52, %v3616_v53 }
 0x264   :  { %v5004_v28 = vadd.f32 1.0, %v4594_v30  ;;  %4595 = vpow2.f32 %v3602_v5  ;;  %1637 = vmatpush.bf16.msra.mxu0 %v3623_v29 }
 0x265   :  { %4597 = vpow2.f32 %v3603_v4  ;;  %1651 = vmatpush.bf16.msra.mxu1 %v3611_v48 }
 0x266   :  { %4599 = vrcp.f32 %v5004_v28  ;;  %1663 = vmatpush.bf16.msra.mxu2 %v3631_v10  ;;  %1677 = vmatpush.bf16.msra.mxu3 %v3619_v60  ;;  %v1382_v5 = vand.u32 2147483648, %v5004_v28  ;;  %v1380_v27 = vand.u32 2147483647, %v5004_v28  ;;  %vm1376_vm9 = vweird.f32 %v5004_v28  ;;  %v4451_v60 = vld [vmem:[#allocation10 + $0xe4] sm:$0xf] }
 0x267   :  { %v1347_v37 = vpop.f32.mrf.mxu2  ;;  %v1360_v6 = vpop.f32.mrf.mxu3 }
 0x268   :  { %1638 = vmatpush.bf16.msra.mxu0 %v3607_v44  ;;  %v1383_v2 = vor.u32 1.1754944e-38, %v1382_v5  ;;  %vm1381_vm11 = vcmp.eq.f32.partialorder %v1380_v27, 8.507059e+37  ;;  %v3859_v5 = vld [vmem:[#allocation10 + $0xf8] sm:$0xf0]  ;;  %v3833_v27 = vld [vmem:[#allocation10 + $0xc0] sm:$0xf] }
 0x26a   :  { %v4596_v59 = vpop.eup %4595  ;;  %1664 = vmatpush.bf16.msra.mxu2 %v3615_v50 }
 0x26b   :  { %v4598_v62 = vpop.eup %4597  ;;  %v1389_v63 = vadd.f32 1.0, %v4596_v59  ;;  %v4453_v59 = vld [vmem:[#allocation10 + $0xec] sm:$0xf0] }
 0x26c   :  { %v4600_v0 = vpop.eup %4599  ;;  %v1408_v56 = vadd.f32 1.0, %v4598_v62 }
 0x26d   :  { %v1372_v3 = vmul.f32 %v4600_v0, %v5004_v28  ;;  %4601 = vrcp.f32 %v1389_v63  ;;  %vm1377_vm8 = vweird.f32 %v4600_v0  ;;  %v1401_v61 = vand.u32 2147483648, %v1389_v63 }
 0x26e   :  { %4603 = vrcp.f32 %v1408_v56  ;;  %vm1378_vm10 = vmor %vm1376_vm9, %vm1377_vm8  ;;  %v1399_v15 = vand.u32 2147483647, %v1389_v63  ;;  %vm1395_vm13 = vweird.f32 %v1389_v63  ;;  %v1420_v11 = vand.u32 2147483648, %v1408_v56 }
 0x26f   :  { %v1373_v16 = vsub.f32 1.0, %v1372_v3  ;;  %4605 = vtanh.f32 %v1362_v8  ;;  %v1402_v28 = vor.u32 1.1754944e-38, %v1401_v61  ;;  %vm1414_vm1 = vweird.f32 %v1408_v56  ;;  %v4454_v8 = vld [vmem:[#allocation10 + $0xf4] sm:$0xf0]  ;;  %v3817_v61 = vld [vmem:[#allocation10 + $0xa0] sm:$0xf] }
 0x270   :  { %vm1400_vm15 = vcmp.eq.f32.partialorder %v1399_v15, 8.507059e+37  ;;  %v1418_v44 = vand.u32 2147483647, %v1408_v56  ;;  %v1421_v36 = vor.u32 1.1754944e-38, %v1420_v11  ;;  %v4443_v15 = vld [vmem:[#allocation10 + $0xa4] sm:$0xf] }
 0x271   :  { %v1374_v4 = vmul.f32 %v4600_v0, %v1373_v16  ;;  %v4452_v16 = vld [vmem:[#allocation10 + $0xec] sm:$0xf] }
 0x272   :  { %vm1419_vm3 = vcmp.eq.f32.partialorder %v1418_v44, 8.507059e+37 }
 0x273   :  { %v4602_v19 = vpop.eup %4601  ;;  %v1375_v30 = vadd.f32 %v4600_v0, %v1374_v4  ;;  %v3862_v4 = vor.u32 %v4452_v16, %v3859_v5  ;;  %v4437_v16 = vld [vmem:[#allocation10 + $0x6c] sm:$0xf0]  ;;  %v4435_v5 = vld [vmem:[#allocation10 + $0x64] sm:$0xf] }
 0x274   :  { %v4604_v23 = vpop.eup %4603  ;;  %v1391_v14 = vmul.f32 %v4602_v19, %v1389_v63  ;;  %vm1396_vm12 = vweird.f32 %v4602_v19  ;;  %v3851_v63 = vld [vmem:[#allocation10 + $0xf0] sm:$0xf0] }
 0x275   :  { %v1379_v22 = vsel %vm1378_vm10, %v4600_v0, %v1375_v30  ;;  %v1410_v18 = vmul.f32 %v4604_v23, %v1408_v56  ;;  %v4606_v20 = vpop.eup %4605  ;;  %vm1397_vm14 = vmor %vm1395_vm13, %vm1396_vm12  ;;  %vm1415_vm0 = vweird.f32 %v4604_v23  ;;  %v3857_v0 = vld [vmem:[#allocation10 + $0xe8] sm:$0xf]  ;;  %v3854_v56 = vor.u32 %v4451_v60, %v3851_v63  ;;  %v4447_v30 = vld [vmem:[#allocation10 + $0xc4] sm:$0xf]  ;;  %1991 = vmatpush.bf16.msrb.mxu3 %v3862_v4 }
 0x276   :  { %v1384_v29 = vsel %vm1381_vm11, %v1383_v2, %v1379_v22  ;;  %v1392_v32 = vsub.f32 1.0, %v1391_v14  ;;  %vm1416_vm2 = vmor %vm1414_vm1, %vm1415_vm0  ;;  %v3858_v3 = vor.u32 %v4454_v8, %v3857_v0  ;;  %v3835_v2 = vld [vmem:[#allocation10 + $0xd0] sm:$0xf0]  ;;  %v3841_v14 = vld [vmem:[#allocation10 + $0xc8] sm:$0xf] }
 0x277   :  { %v1424_v13 = vmul.f32 %v4606_v20, %v1384_v29  ;;  %v1411_v9 = vsub.f32 1.0, %v1410_v18  ;;  %1965 = vmatpush.bf16.msrb.mxu1 %v3854_v56  ;;  %v4450_v22 = vld [vmem:[#allocation10 + $0xd4] sm:$0xf0]  ;;  %v3838_v18 = vor.u32 %v4447_v30, %v3835_v2  ;;  %v4448_v29 = vld [vmem:[#allocation10 + $0xcc] sm:$0xf] }
 0x278   :  { %v1393_v25 = vmul.f32 %v4602_v19, %v1392_v32  ;;  %1978 = vmatpush.bf16.msrb.mxu2 %v3858_v3  ;;  %v3842_v20 = vor.u32 %v4450_v22, %v3841_v14  ;;  %v3843_v32 = vld [vmem:[#allocation10 + $0xd8] sm:$0xf0]  ;;  %v4442_v60 = vld [vmem:[#allocation10 + $0x94] sm:$0xf0]  ;;  %v4440_v8 = vld [vmem:[#allocation10 + $0x8c] sm:$0xf] }
 0x279   :  { %v1412_v10 = vmul.f32 %v4604_v23, %v1411_v9  ;;  %v3811_v56 = vld [vmem:[#allocation10 + $0x98] sm:$0xf0]  ;;  %v4438_v30 = vld [vmem:[#allocation10 + $0x74] sm:$0xf0] }
 0x27a   :  { %v1394_v17 = vadd.f32 %v4602_v19, %v1393_v25  ;;  %v4445_v25 = vld [vmem:[#allocation10 + $0xac] sm:$0xf0]  ;;  %v3814_v3 = vor.u32 %v4440_v8, %v3811_v56  ;;  %v4428_v8 = vld [vmem:[#allocation10 + $0x2c] sm:$0xf]  ;;  %v3763_v56 = vld [vmem:[#allocation10 + $0x38] sm:$0xf0] }
 0x27b   :  { %v1413_v42 = vadd.f32 %v4604_v23, %v1412_v10  ;;  %1966 = vmatpush.bf16.msrb.mxu1 %v3838_v18  ;;  %v3818_v9 = vor.u32 %v4445_v25, %v3817_v61  ;;  %v4436_v18 = vld [vmem:[#allocation10 + $0x6c] sm:$0xf] }
 0x27c   :  { %v1398_v37 = vsel %vm1397_vm14, %v4602_v19, %v1394_v17  ;;  %v4449_v19 = vld [vmem:[#allocation10 + $0xcc] sm:$0xf0]  ;;  %1979 = vmatpush.bf16.msrb.mxu2 %v3842_v20  ;;  %v3819_v17 = vld [vmem:[#allocation10 + $0xb0] sm:$0xf0]  ;;  %v3795_v20 = vld [vmem:[#allocation10 + $0x78] sm:$0xf0] }
 0x27d   :  { %v1403_v6 = vsel %vm1400_vm15, %v1402_v28, %v1398_v37  ;;  %v1417_v45 = vsel %vm1416_vm2, %v4604_v23, %v1413_v42  ;;  %v3834_v23 = vor.u32 %v4449_v19, %v3833_v27  ;;  %v3825_v28 = vld [vmem:[#allocation10 + $0xa8] sm:$0xf]  ;;  %v4446_v37 = vld [vmem:[#allocation10 + $0xb4] sm:$0xf0]  ;;  %v3827_v42 = vld [vmem:[#allocation10 + $0xb8] sm:$0xf0] }
 0x27e   :  { %v1425_v1 = vmul.f32 %v1403_v6, %v4996_v58  ;;  %v1422_v50 = vsel %vm1419_vm3, %v1421_v36, %v1417_v45  ;;  %v3849_v58 = vld [vmem:[#allocation10 + $0xe0] sm:$0xf]  ;;  %v3822_v6 = vor.u32 %v4443_v15, %v3819_v17  ;;  %v3826_v10 = vor.u32 %v4446_v37, %v3825_v28  ;;  %v3787_v27 = vld [vmem:[#allocation10 + $0x70] sm:$0xf0]  ;;  %v3793_v19 = vld [vmem:[#allocation10 + $0x68] sm:$0xf] }
 0x27f   :  { %v3850_v62 = vor.u32 %v4453_v59, %v3849_v58  ;;  %v3803_v58 = vld [vmem:[#allocation10 + $0x90] sm:$0xf0]  ;;  %v3809_v59 = vld [vmem:[#allocation10 + $0x88] sm:$0xf]  ;;  %v3790_v14 = vor.u32 %v4435_v5, %v3787_v27  ;;  %v3794_v22 = vor.u32 %v4438_v30, %v3793_v19  ;;  %v3798_v15 = vor.u32 %v4436_v18, %v3795_v20  ;;  %v4431_v17 = vld [vmem:[#allocation10 + $0x44] sm:$0xf] }
 0x280   :  { %v5014_v40 = vadd.f32 %v1425_v1, %v1424_v13  ;;  %v3846_v13 = vor.u32 %v4448_v29, %v3843_v32  ;;  %v4444_v1 = vld [vmem:[#allocation10 + $0xac] sm:$0xf]  ;;  %1967 = vmatpush.bf16.msrb.mxu1 %v3822_v6  ;;  %1980 = vmatpush.bf16.msrb.mxu2 %v3826_v10  ;;  %v3810_v0 = vor.u32 %v4442_v60, %v3809_v59  ;;  %v3769_v29 = vld [vmem:[#allocation10 + $0x40] sm:$0xf]  ;;  %v3771_v28 = vld [vmem:[#allocation10 + $0x50] sm:$0xf0] }
 0x281   :  { %1952 = vmatpush.bf16.msrb.mxu0 %v3850_v62  ;;  %v3830_v45 = vor.u32 %v4444_v1, %v3827_v42  ;;  %v3774_v6 = vor.u32 %v4431_v17, %v3771_v28  ;;  %v3777_v10 = vld [vmem:[#allocation10 + $0x48] sm:$0xf]  ;;  %v4434_v1 = vld [vmem:[#allocation10 + $0x54] sm:$0xf0]  ;;  %v4432_v42 = vld [vmem:[#allocation10 + $0x4c] sm:$0xf] }
 0x282   :  { %4607 = vtanh.f32 %v5014_v40  ;;  %1992 = vmatpush.bf16.msrb.mxu3 %v3846_v13  ;;  %v3755_v60 = vld [vmem:[#allocation10 + $0x30] sm:$0xf0]  ;;  %v4425_v27 = vld [vmem:[#allocation10 + $0xc] sm:$0xf0]  ;;  %v4423_v19 = vld [vmem:[#allocation10 + $0x4] sm:$0xf] }
 0x283   :  { %v3739_v30 = vld [vmem:[#allocation10 + $0x10] sm:$0xf0]  ;;  %v4424_v20 = vld [vmem:[#allocation10 + $0xc] sm:$0xf] }
 0x284   :  { %1981 = vmatpush.bf16.msrb.mxu2 %v3810_v0  ;;  %v4430_v0 = vld [vmem:[#allocation10 + $0x34] sm:$0xf0] }
 0x285   :  { %1953 = vmatpush.bf16.msrb.mxu0 %v3834_v23 }
 0x286   :  { %1993 = vmatpush.bf16.msrb.mxu3 %v3830_v45 }
 0x288   :  { %v4608_v48 = vpop.eup %4607  ;;  %1982 = vmatpush.bf16.msrb.mxu2 %v3794_v22  ;;  %v3742_v22 = vor.u32 %v4423_v19, %v3739_v30 }
 0x289   :  { %v1428_v52 = vmul.f32 %v4608_v48, %v1422_v50  ;;  %1954 = vmatpush.bf16.msrb.mxu0 %v3818_v9  ;;  %v3801_v48 = vld [vmem:[#allocation10 + $0x80] sm:$0xf]  ;;  %v4441_v50 = vld [vmem:[#allocation10 + $0x8c] sm:$0xf0] }
 0x28a   :  { %1994 = vmatpush.bf16.msrb.mxu3 %v3814_v3  ;;  %v4433_v9 = vld [vmem:[#allocation10 + $0x4c] sm:$0xf0]  ;;  %v3737_v3 = vld [vmem:[#allocation10] sm:$0xf] }
 0x28b   :  { %v1429_v53 = vpack.c.bf16 %v1428_v52, %v1428_v52  ;;  %v4439_v52 = vld [vmem:[#allocation10 + $0x84] sm:$0xf]  ;;  %v3770_v37 = vor.u32 %v4433_v9, %v3769_v29  ;;  %v3747_v29 = vld [vmem:[#allocation10 + $0x18] sm:$0xf0] }
 0x28c   :  { %v3806_v63 = vor.u32 %v4439_v52, %v3803_v58  ;;  %v4429_v52 = vld [vmem:[#allocation10 + $0x2c] sm:$0xf0] }
 0x28d   :  { %1431 = vst [vmem:[#allocation13 + $0x8] sm:$0xf] %v1429_v53  ;;  %1639 = vmatmul.bf16.vlgmr.msra.gmra.mxu0 %v1429_v53  ;;  %1652 = vmatmul.bf16.vlgmr.msra.gmra.mxu1 %v1429_v53 }
 0x28e   :  { %1665 = vmatmul.bf16.vlgmr.msra.gmra.mxu2 %v1429_v53  ;;  %1678 = vmatmul.bf16.vlgmr.msra.gmra.mxu3 %v1429_v53  ;;  %v3802_v53 = vor.u32 %v4441_v50, %v3801_v48  ;;  %v3753_v50 = vld [vmem:[#allocation10 + $0x20] sm:$0xf] }
 0x28f   :  { %1968 = vmatpush.bf16.msrb.mxu1 %v3806_v63  ;;  %1995 = vmatpush.bf16.msrb.mxu3 %v3798_v15  ;;  %v3754_v59 = vor.u32 %v4429_v52, %v3753_v50 }
 0x290   :  { %1955 = vmatpush.bf16.msrb.mxu0 %v3802_v53  ;;  %v4427_v53 = vld [vmem:[#allocation10 + $0x24] sm:$0xf] }
 0x291   :  { %v3758_v63 = vor.u32 %v4427_v53, %v3755_v60 }
 0x293   :  { %1969 = vmatpush.bf16.msrb.mxu1 %v3790_v14  ;;  %v4426_v14 = vld [vmem:[#allocation10 + $0x14] sm:$0xf0] }
 0x297   :  { %1970 = vmatpush.bf16.msrb.mxu1 %v3774_v6 }
 0x29b   :  { %1971 = vmatpush.bf16.msrb.mxu1 %v3758_v63 }
 0x29f   :  { %1972 = vmatpush.bf16.msrb.mxu1 %v3742_v22  ;;  %v4485_v22 = vld [vmem:[#allocation10 + $0xec] sm:$0xf0] }
 0x30a   :  { %v5017_v11 = vpop.f32.mrf.mxu0  ;;  %v1653_v44 = vpop.f32.mrf.mxu1 }
 0x30b   :  { %v1684_v36 = vadd.f32 %v1653_v44, %v4911_v33  ;;  %v3785_v33 = vld [vmem:[#allocation10 + $0x60] sm:$0xf]  ;;  %v1683_v9 = vadd.f32 %v5017_v11, %v4908_v31 }
 0x30c   :  { %v3786_v4 = vor.u32 %v4437_v16, %v3785_v33 }
 0x30d   :  { %v3732_v62 = vmul.f32 -1.442695, %v1684_v36  ;;  %v3779_v36 = vld [vmem:[#allocation10 + $0x58] sm:$0xf0] }
 0x30e   :  { %1956 = vmatpush.bf16.msrb.mxu0 %v3786_v4  ;;  %v3782_v48 = vor.u32 %v4432_v42, %v3779_v36  ;;  %v3766_v4 = vor.u32 %v4428_v8, %v3763_v56 }
 0x30f   :  { %4609 = vpow2.f32 %v3732_v62  ;;  %v3761_v62 = vld [vmem:[#allocation10 + $0x28] sm:$0xf] }
 0x310   :  { %1996 = vmatpush.bf16.msrb.mxu3 %v3782_v48  ;;  %v3762_v5 = vor.u32 %v4430_v0, %v3761_v62 }
 0x311   :  { %v1666_v23 = vpop.f32.mrf.mxu2  ;;  %v1679_v2 = vpop.f32.mrf.mxu3 }
 0x312   :  { %v1685_v32 = vadd.f32 %v1666_v23, %v4914_v35  ;;  %v1686_v13 = vadd.f32 %v1679_v2, %v4917_v38  ;;  %v1642_v61 = vpop.f32.mrf.mxu0  ;;  %v1655_v25 = vpop.f32.mrf.mxu1  ;;  %v3778_v35 = vor.u32 %v4434_v1, %v3777_v10  ;;  %1957 = vmatpush.bf16.msrb.mxu0 %v3770_v37  ;;  %v3738_v23 = vor.u32 %v4425_v27, %v3737_v3  ;;  %v3745_v2 = vld [vmem:[#allocation10 + $0x8] sm:$0xf] }
 0x313   :  { %v3746_v18 = vor.u32 %v4426_v14, %v3745_v2 }
 0x314   :  { %v3733_v44 = vmul.f32 -1.442695, %v1685_v32  ;;  %v3734_v45 = vmul.f32 -1.442695, %v1686_v13  ;;  %1983 = vmatpush.bf16.msrb.mxu2 %v3778_v35  ;;  %1997 = vmatpush.bf16.msrb.mxu3 %v3766_v4  ;;  %v3750_v13 = vor.u32 %v4424_v20, %v3747_v29  ;;  %v3982_v29 = vld [vmem:[#allocation10 + $0xf0] sm:$0xf0] }
 0x315   :  { %v4610_v38 = vpop.eup %4609 }
 0x316   :  { %v5022_v58 = vadd.f32 1.0, %v4610_v38  ;;  %4611 = vpow2.f32 %v3733_v44  ;;  %1958 = vmatpush.bf16.msrb.mxu0 %v3754_v59 }
 0x317   :  { %4613 = vpow2.f32 %v3734_v45 }
 0x318   :  { %4615 = vrcp.f32 %v5022_v58  ;;  %1984 = vmatpush.bf16.msrb.mxu2 %v3762_v5  ;;  %1998 = vmatpush.bf16.msrb.mxu3 %v3750_v13  ;;  %v1703_v6 = vand.u32 2147483648, %v5022_v58  ;;  %v1701_v1 = vand.u32 2147483647, %v5022_v58  ;;  %vm1697_vm5 = vweird.f32 %v5022_v58  ;;  %v4486_v13 = vld [vmem:[#allocation10 + $0xf4] sm:$0xf0] }
 0x319   :  { %v1668_v33 = vpop.f32.mrf.mxu2  ;;  %v1681_v16 = vpop.f32.mrf.mxu3 }
 0x31a   :  { %1959 = vmatpush.bf16.msrb.mxu0 %v3738_v23  ;;  %v1704_v11 = vor.u32 1.1754944e-38, %v1703_v6  ;;  %vm1702_vm7 = vcmp.eq.f32.partialorder %v1701_v1, 8.507059e+37  ;;  %v4479_v6 = vld [vmem:[#allocation10 + $0xc4] sm:$0xf]  ;;  %v3966_v1 = vld [vmem:[#allocation10 + $0xd0] sm:$0xf0] }
 0x31c   :  { %v4612_v32 = vpop.eup %4611  ;;  %1985 = vmatpush.bf16.msrb.mxu2 %v3746_v18  ;;  %v4483_v18 = vld [vmem:[#allocation10 + $0xe4] sm:$0xf] }
 0x31d   :  { %v4614_v61 = vpop.eup %4613  ;;  %v1710_v25 = vadd.f32 1.0, %v4612_v32  ;;  %v3988_v32 = vld [vmem:[#allocation10 + $0xe8] sm:$0xf] }
 0x31e   :  { %v4616_v15 = vpop.eup %4615  ;;  %v1729_v17 = vadd.f32 1.0, %v4614_v61  ;;  %v3985_v61 = vor.u32 %v4483_v18, %v3982_v29  ;;  %v4472_v18 = vld [vmem:[#allocation10 + $0x8c] sm:$0xf] }
 0x31f   :  { %v1693_v28 = vmul.f32 %v4616_v15, %v5022_v58  ;;  %4617 = vrcp.f32 %v1710_v25  ;;  %vm1698_vm4 = vweird.f32 %v4616_v15  ;;  %v1722_v53 = vand.u32 2147483648, %v1710_v25 }
 0x320   :  { %4619 = vrcp.f32 %v1729_v17  ;;  %vm1699_vm6 = vmor %vm1697_vm5, %vm1698_vm4  ;;  %v1720_v60 = vand.u32 2147483647, %v1710_v25  ;;  %vm1716_vm9 = vweird.f32 %v1710_v25  ;;  %v1741_v5 = vand.u32 2147483648, %v1729_v17  ;;  %2286 = vmatpush.bf16.msra.mxu1 %v3985_v61 }
 0x321   :  { %v1694_v37 = vsub.f32 1.0, %v1693_v28  ;;  %4621 = vtanh.f32 %v1683_v9  ;;  %v1723_v58 = vor.u32 1.1754944e-38, %v1722_v53  ;;  %vm1735_vm13 = vweird.f32 %v1729_v17  ;;  %v3990_v9 = vld [vmem:[#allocation10 + $0xf8] sm:$0xf0]  ;;  %v3964_v28 = vld [vmem:[#allocation10 + $0xc0] sm:$0xf] }
 0x322   :  { %vm1721_vm11 = vcmp.eq.f32.partialorder %v1720_v60, 8.507059e+37  ;;  %v1739_v4 = vand.u32 2147483647, %v1729_v17  ;;  %v1742_v19 = vor.u32 1.1754944e-38, %v1741_v5  ;;  %v3950_v53 = vld [vmem:[#allocation10 + $0xb0] sm:$0xf0] }
 0x323   :  { %v1695_v10 = vmul.f32 %v4616_v15, %v1694_v37  ;;  %v4481_v37 = vld [vmem:[#allocation10 + $0xcc] sm:$0xf0]  ;;  %v4478_v60 = vld [vmem:[#allocation10 + $0xb4] sm:$0xf0]  ;;  %v3932_v5 = vld [vmem:[#allocation10 + $0x80] sm:$0xf] }
 0x324   :  { %vm1740_vm15 = vcmp.eq.f32.partialorder %v1739_v4, 8.507059e+37  ;;  %v4473_v4 = vld [vmem:[#allocation10 + $0x8c] sm:$0xf0] }
 0x325   :  { %v4618_v42 = vpop.eup %4617  ;;  %v1696_v44 = vadd.f32 %v4616_v15, %v1695_v10  ;;  %v3965_v10 = vor.u32 %v4481_v37, %v3964_v28 }
 0x326   :  { %v4620_v31 = vpop.eup %4619  ;;  %v1712_v45 = vmul.f32 %v4618_v42, %v1710_v25  ;;  %vm1717_vm8 = vweird.f32 %v4618_v42  ;;  %v3989_v25 = vor.u32 %v4486_v13, %v3988_v32  ;;  %v4469_v32 = vld [vmem:[#allocation10 + $0x6c] sm:$0xf0]  ;;  %v4467_v13 = vld [vmem:[#allocation10 + $0x64] sm:$0xf] }
 0x327   :  { %v1700_v35 = vsel %vm1699_vm6, %v4616_v15, %v1696_v44  ;;  %v1731_v36 = vmul.f32 %v4620_v31, %v1729_v17  ;;  %v4622_v38 = vpop.eup %4621  ;;  %vm1718_vm10 = vmor %vm1716_vm9, %vm1717_vm8  ;;  %vm1736_vm12 = vweird.f32 %v4620_v31  ;;  %v4484_v15 = vld [vmem:[#allocation10 + $0xec] sm:$0xf]  ;;  %v4482_v44 = vld [vmem:[#allocation10 + $0xd4] sm:$0xf0] }
 0x328   :  { %v1705_v48 = vsel %vm1702_vm7, %v1704_v11, %v1700_v35  ;;  %v1713_v50 = vsub.f32 1.0, %v1712_v45  ;;  %vm1737_vm14 = vmor %vm1735_vm13, %vm1736_vm12  ;;  %v3993_v17 = vor.u32 %v4484_v15, %v3990_v9  ;;  %2299 = vmatpush.bf16.msra.mxu2 %v3989_v25  ;;  %v4480_v45 = vld [vmem:[#allocation10 + $0xcc] sm:$0xf]  ;;  %v3974_v35 = vld [vmem:[#allocation10 + $0xd8] sm:$0xf0] }
 0x329   :  { %v1745_v52 = vmul.f32 %v4622_v38, %v1705_v48  ;;  %v1732_v62 = vsub.f32 1.0, %v1731_v36  ;;  %v3977_v36 = vor.u32 %v4480_v45, %v3974_v35  ;;  %v3948_v38 = vld [vmem:[#allocation10 + $0xa0] sm:$0xf]  ;;  %v4477_v48 = vld [vmem:[#allocation10 + $0xac] sm:$0xf0] }
 0x32a   :  { %v1714_v59 = vmul.f32 %v4618_v42, %v1713_v50  ;;  %2312 = vmatpush.bf16.msra.mxu3 %v3993_v17  ;;  %v4475_v50 = vld [vmem:[#allocation10 + $0xa4] sm:$0xf]  ;;  %v3918_v25 = vld [vmem:[#allocation10 + $0x70] sm:$0xf0]  ;;  %v3924_v15 = vld [vmem:[#allocation10 + $0x68] sm:$0xf] }
 0x32b   :  { %v1733_v56 = vmul.f32 %v4620_v31, %v1732_v62  ;;  %v3953_v62 = vor.u32 %v4475_v50, %v3950_v53  ;;  %v4470_v9 = vld [vmem:[#allocation10 + $0x74] sm:$0xf0]  ;;  %v3921_v37 = vor.u32 %v4467_v13, %v3918_v25  ;;  %v3908_v53 = vld [vmem:[#allocation10 + $0x48] sm:$0xf]  ;;  %v3870_v13 = vld [vmem:[#allocation10 + $0x10] sm:$0xf0] }
 0x32c   :  { %v1715_v63 = vadd.f32 %v4618_v42, %v1714_v59  ;;  %v3956_v59 = vld [vmem:[#allocation10 + $0xa8] sm:$0xf] }
 0x32d   :  { %v1734_v16 = vadd.f32 %v4620_v31, %v1733_v56  ;;  %v3876_v25 = vld [vmem:[#allocation10 + $0x8] sm:$0xf] }
 0x32e   :  { %v1719_v0 = vsel %vm1718_vm10, %v4618_v42, %v1715_v63  ;;  %v3972_v42 = vld [vmem:[#allocation10 + $0xc8] sm:$0xf]  ;;  %2313 = vmatpush.bf16.msra.mxu3 %v3977_v36  ;;  %v3957_v63 = vor.u32 %v4478_v60, %v3956_v59  ;;  %v4465_v36 = vld [vmem:[#allocation10 + $0x4c] sm:$0xf0]  ;;  %v4466_v59 = vld [vmem:[#allocation10 + $0x54] sm:$0xf0] }
 0x32f   :  { %v1724_v8 = vsel %vm1721_vm11, %v1723_v58, %v1719_v0  ;;  %v1738_v27 = vsel %vm1737_vm14, %v4620_v31, %v1734_v16  ;;  %v3969_v31 = vor.u32 %v4479_v6, %v3966_v1  ;;  %v3973_v11 = vor.u32 %v4482_v44, %v3972_v42  ;;  %v4476_v58 = vld [vmem:[#allocation10 + $0xac] sm:$0xf]  ;;  %v3958_v0 = vld [vmem:[#allocation10 + $0xb8] sm:$0xf0]  ;;  %v3900_v42 = vld [vmem:[#allocation10 + $0x40] sm:$0xf] }
 0x330   :  { %v1746_v3 = vmul.f32 %v1724_v8, %v5014_v40  ;;  %v1743_v23 = vsel %vm1740_vm15, %v1742_v19, %v1738_v27  ;;  %v3980_v40 = vld [vmem:[#allocation10 + $0xe0] sm:$0xf]  ;;  %v4471_v27 = vld [vmem:[#allocation10 + $0x84] sm:$0xf]  ;;  %v3933_v19 = vor.u32 %v4473_v4, %v3932_v5  ;;  %v3925_v6 = vor.u32 %v4470_v9, %v3924_v15  ;;  %v3926_v1 = vld [vmem:[#allocation10 + $0x78] sm:$0xf0] }
 0x331   :  { %v3981_v20 = vor.u32 %v4485_v22, %v3980_v40  ;;  %2287 = vmatpush.bf16.msra.mxu1 %v3969_v31  ;;  %2300 = vmatpush.bf16.msra.mxu2 %v3973_v11  ;;  %v3901_v50 = vor.u32 %v4465_v36, %v3900_v42  ;;  %v4464_v60 = vld [vmem:[#allocation10 + $0x4c] sm:$0xf]  ;;  %v4458_v15 = vld [vmem:[#allocation10 + $0x14] sm:$0xf0] }
 0x332   :  { %v5032_v33 = vadd.f32 %v1746_v3, %v1745_v52  ;;  %v3949_v52 = vor.u32 %v4477_v48, %v3948_v38  ;;  %v3961_v3 = vor.u32 %v4476_v58, %v3958_v0  ;;  %v4463_v38 = vld [vmem:[#allocation10 + $0x44] sm:$0xf]  ;;  %v3902_v48 = vld [vmem:[#allocation10 + $0x50] sm:$0xf0]  ;;  %v3910_v58 = vld [vmem:[#allocation10 + $0x58] sm:$0xf0] }
 0x333   :  { %2273 = vmatpush.bf16.msra.mxu0 %v3981_v20  ;;  %v3942_v20 = vld [vmem:[#allocation10 + $0x98] sm:$0xf0]  ;;  %v3913_v0 = vor.u32 %v4464_v60, %v3910_v58 }
 0x334   :  { %4623 = vtanh.f32 %v5032_v33  ;;  %2314 = vmatpush.bf16.msra.mxu3 %v3961_v3  ;;  %v3945_v29 = vor.u32 %v4472_v18, %v3942_v20  ;;  %v4461_v3 = vld [vmem:[#allocation10 + $0x2c] sm:$0xf0] }
 0x335   :  { %2288 = vmatpush.bf16.msra.mxu1 %v3953_v62  ;;  %2301 = vmatpush.bf16.msra.mxu2 %v3957_v63 }
 0x337   :  { %2274 = vmatpush.bf16.msra.mxu0 %v3965_v10  ;;  %v4468_v10 = vld [vmem:[#allocation10 + $0x6c] sm:$0xf] }
 0x338   :  { %2315 = vmatpush.bf16.msra.mxu3 %v3945_v29  ;;  %v3929_v35 = vor.u32 %v4468_v10, %v3926_v1 }
 0x33a   :  { %v4624_v30 = vpop.eup %4623 }
 0x33b   :  { %v1749_v2 = vmul.f32 %v4624_v30, %v1743_v23  ;;  %2275 = vmatpush.bf16.msra.mxu0 %v3949_v52  ;;  %v3934_v30 = vld [vmem:[#allocation10 + $0x90] sm:$0xf0]  ;;  %v3940_v23 = vld [vmem:[#allocation10 + $0x88] sm:$0xf]  ;;  %v3905_v52 = vor.u32 %v4463_v38, %v3902_v48 }
 0x33c   :  { %v3937_v40 = vor.u32 %v4471_v27, %v3934_v30  ;;  %2316 = vmatpush.bf16.msra.mxu3 %v3929_v35  ;;  %v3886_v27 = vld [vmem:[#allocation10 + $0x30] sm:$0xf0] }
 0x33d   :  { %v1750_v14 = vpack.c.bf16 %v1749_v2, %v1749_v2  ;;  %v4474_v2 = vld [vmem:[#allocation10 + $0x94] sm:$0xf0] }
 0x33e   :  { %v3941_v22 = vor.u32 %v4474_v2, %v3940_v23  ;;  %2289 = vmatpush.bf16.msra.mxu1 %v3937_v40  ;;  %v4462_v23 = vld [vmem:[#allocation10 + $0x34] sm:$0xf0]  ;;  %v4460_v2 = vld [vmem:[#allocation10 + $0x2c] sm:$0xf]  ;;  %v3868_v40 = vld [vmem:[#allocation10] sm:$0xf] }
 0x33f   :  { %1752 = vst [vmem:[#allocation13 + $0xc] sm:$0xf] %v1750_v14  ;;  %1960 = vmatmul.bf16.vlgmr.msrb.gmra.mxu0 %v1750_v14  ;;  %1973 = vmatmul.bf16.vlgmr.msrb.gmra.mxu1 %v1750_v14 }
 0x340   :  { %1986 = vmatmul.bf16.vlgmr.msrb.gmra.mxu2 %v1750_v14  ;;  %1999 = vmatmul.bf16.vlgmr.msrb.gmra.mxu3 %v1750_v14 }
 0x341   :  { %2276 = vmatpush.bf16.msra.mxu0 %v3933_v19  ;;  %2302 = vmatpush.bf16.msra.mxu2 %v3941_v22  ;;  %v3892_v19 = vld [vmem:[#allocation10 + $0x28] sm:$0xf] }
 0x342   :  { %2290 = vmatpush.bf16.msra.mxu1 %v3921_v37  ;;  %2317 = vmatpush.bf16.msra.mxu3 %v3913_v0  ;;  %v3893_v20 = vor.u32 %v4462_v23, %v3892_v19  ;;  %v3878_v37 = vld [vmem:[#allocation10 + $0x18] sm:$0xf0] }
 0x345   :  { %2303 = vmatpush.bf16.msra.mxu2 %v3925_v6 }
 0x346   :  { %2291 = vmatpush.bf16.msra.mxu1 %v3905_v52 }
 0x3bc   :  { %v5035_v8 = vpop.f32.mrf.mxu0  ;;  %v1974_v56 = vpop.f32.mrf.mxu1 }
 0x3bd   :  { %v2005_v16 = vadd.f32 %v1974_v56, %v4923_v41  ;;  %v3916_v41 = vld [vmem:[#allocation10 + $0x60] sm:$0xf] }
 0x3be   :  { %v3917_v61 = vor.u32 %v4469_v32, %v3916_v41  ;;  %v3884_v56 = vld [vmem:[#allocation10 + $0x20] sm:$0xf]  ;;  %v4457_v41 = vld [vmem:[#allocation10 + $0xc] sm:$0xf0]  ;;  %v4455_v32 = vld [vmem:[#allocation10 + $0x4] sm:$0xf] }
 0x3bf   :  { %v3863_v14 = vmul.f32 -1.442695, %v2005_v16  ;;  %v4459_v16 = vld [vmem:[#allocation10 + $0x24] sm:$0xf]  ;;  %v3885_v4 = vor.u32 %v4461_v3, %v3884_v56  ;;  %v3873_v9 = vor.u32 %v4455_v32, %v3870_v13  ;;  %v4517_v13 = vld [vmem:[#allocation10 + $0xec] sm:$0xf0] }
 0x3c0   :  { %2277 = vmatpush.bf16.msra.mxu0 %v3917_v61  ;;  %v3889_v30 = vor.u32 %v4459_v16, %v3886_v27  ;;  %v3869_v61 = vor.u32 %v4457_v41, %v3868_v40 }
 0x3c1   :  { %4625 = vpow2.f32 %v3863_v14  ;;  %v3894_v14 = vld [vmem:[#allocation10 + $0x38] sm:$0xf0] }
 0x3c2   :  { %v3897_v29 = vor.u32 %v4460_v2, %v3894_v14  ;;  %2292 = vmatpush.bf16.msra.mxu1 %v3889_v30 }
 0x3c3   :  { %v1987_v17 = vpop.f32.mrf.mxu2  ;;  %v2000_v28 = vpop.f32.mrf.mxu3 }
 0x3c4   :  { %v2006_v44 = vadd.f32 %v1987_v17, %v4926_v43  ;;  %v2007_v31 = vadd.f32 %v2000_v28, %v4929_v46  ;;  %v1963_v11 = vpop.f32.mrf.mxu0  ;;  %v1976_v45 = vpop.f32.mrf.mxu1  ;;  %v3909_v43 = vor.u32 %v4466_v59, %v3908_v53  ;;  %2278 = vmatpush.bf16.msra.mxu0 %v3901_v50  ;;  %v3877_v17 = vor.u32 %v4458_v15, %v3876_v25  ;;  %v4456_v28 = vld [vmem:[#allocation10 + $0xc] sm:$0xf]  ;;  %v4113_v15 = vld [vmem:[#allocation10 + $0xf0] sm:$0xf0] }
 0x3c5   :  { %2318 = vmatpush.bf16.msra.mxu3 %v3897_v29  ;;  %v3881_v10 = vor.u32 %v4456_v28, %v3878_v37 }
 0x3c6   :  { %v3864_v62 = vmul.f32 -1.442695, %v2006_v44  ;;  %v3865_v63 = vmul.f32 -1.442695, %v2007_v31  ;;  %2304 = vmatpush.bf16.msra.mxu2 %v3909_v43  ;;  %v2004_v31 = vadd.f32 %v5035_v8, %v4920_v39  ;;  %2293 = vmatpush.bf16.msra.mxu1 %v3873_v9  ;;  %v4119_v9 = vld [vmem:[#allocation10 + $0xe8] sm:$0xf] }
 0x3c7   :  { %v4626_v46 = vpop.eup %4625 }
 0x3c8   :  { %v5040_v5 = vadd.f32 1.0, %v4626_v46  ;;  %4627 = vpow2.f32 %v3864_v62  ;;  %2279 = vmatpush.bf16.msra.mxu0 %v3885_v4 }
 0x3c9   :  { %4629 = vpow2.f32 %v3865_v63  ;;  %2319 = vmatpush.bf16.msra.mxu3 %v3881_v10  ;;  %v4121_v10 = vld [vmem:[#allocation10 + $0xf8] sm:$0xf0] }
 0x3ca   :  { %4631 = vrcp.f32 %v5040_v5  ;;  %2305 = vmatpush.bf16.msra.mxu2 %v3893_v20  ;;  %v2024_v36 = vand.u32 2147483648, %v5040_v5  ;;  %v2022_v48 = vand.u32 2147483647, %v5040_v5  ;;  %vm2018_vm1 = vweird.f32 %v5040_v5 }
 0x3cb   :  { %v1989_v22 = vpop.f32.mrf.mxu2  ;;  %v2002_v18 = vpop.f32.mrf.mxu3 }
 0x3cc   :  { %2280 = vmatpush.bf16.msra.mxu0 %v3869_v61  ;;  %v2025_v8 = vor.u32 1.1754944e-38, %v2024_v36  ;;  %vm2023_vm3 = vcmp.eq.f32.partialorder %v2022_v48, 8.507059e+37  ;;  %v4515_v61 = vld [vmem:[#allocation10 + $0xe4] sm:$0xf]  ;;  %v4514_v36 = vld [vmem:[#allocation10 + $0xd4] sm:$0xf0] }
 0x3cd   :  { %v4116_v28 = vor.u32 %v4515_v61, %v4113_v15  ;;  %v4499_v61 = vld [vmem:[#allocation10 + $0x64] sm:$0xf]  ;;  %v4049_v15 = vld [vmem:[#allocation10 + $0x70] sm:$0xf0] }
 0x3ce   :  { %v4628_v6 = vpop.eup %4627  ;;  %2306 = vmatpush.bf16.msra.mxu2 %v3877_v17  ;;  %v4518_v17 = vld [vmem:[#allocation10 + $0xf4] sm:$0xf0] }
 0x3cf   :  { %v4630_v1 = vpop.eup %4629  ;;  %v2031_v42 = vadd.f32 1.0, %v4628_v6  ;;  %v4120_v37 = vor.u32 %v4518_v17, %v4119_v9  ;;  %v4516_v6 = vld [vmem:[#allocation10 + $0xec] sm:$0xf]  ;;  %2607 = vmatpush.bf16.msrb.mxu1 %v4116_v28  ;;  %v4055_v9 = vld [vmem:[#allocation10 + $0x68] sm:$0xf] }
 0x3d0   :  { %v4632_v44 = vpop.eup %4631  ;;  %v2050_v11 = vadd.f32 1.0, %v4630_v1  ;;  %v4124_v1 = vor.u32 %v4516_v6, %v4121_v10  ;;  %v4502_v17 = vld [vmem:[#allocation10 + $0x74] sm:$0xf0]  ;;  %v4052_v6 = vor.u32 %v4499_v61, %v4049_v15  ;;  %v4488_v15 = vld [vmem:[#allocation10 + $0xc] sm:$0xf] }
 0x3d1   :  { %v2014_v45 = vmul.f32 %v4632_v44, %v5040_v5  ;;  %4633 = vrcp.f32 %v2031_v42  ;;  %vm2019_vm0 = vweird.f32 %v4632_v44  ;;  %v2043_v46 = vand.u32 2147483648, %v2031_v42 }
 0x3d2   :  { %4635 = vrcp.f32 %v2050_v11  ;;  %vm2020_vm2 = vmor %vm2018_vm1, %vm2019_vm0  ;;  %v2041_v56 = vand.u32 2147483647, %v2031_v42  ;;  %vm2037_vm5 = vweird.f32 %v2031_v42  ;;  %v2062_v14 = vand.u32 2147483648, %v2050_v11  ;;  %2620 = vmatpush.bf16.msrb.mxu2 %v4120_v37  ;;  %2633 = vmatpush.bf16.msrb.mxu3 %v4124_v1  ;;  %v4500_v1 = vld [vmem:[#allocation10 + $0x6c] sm:$0xf] }
 0x3d3   :  { %v2015_v35 = vsub.f32 1.0, %v2014_v45  ;;  %4637 = vtanh.f32 %v2004_v31  ;;  %v2044_v5 = vor.u32 1.1754944e-38, %v2043_v46  ;;  %vm2056_vm9 = vweird.f32 %v2050_v11  ;;  %v4511_v31 = vld [vmem:[#allocation10 + $0xc4] sm:$0xf]  ;;  %v4097_v45 = vld [vmem:[#allocation10 + $0xd0] sm:$0xf0] }
 0x3d4   :  { %vm2042_vm7 = vcmp.eq.f32.partialorder %v2041_v56, 8.507059e+37  ;;  %v2060_v40 = vand.u32 2147483647, %v2050_v11  ;;  %v2063_v18 = vor.u32 1.1754944e-38, %v2062_v14  ;;  %v4089_v56 = vld [vmem:[#allocation10 + $0xb8] sm:$0xf0]  ;;  %v4056_v10 = vor.u32 %v4502_v17, %v4055_v9 }
 0x3d5   :  { %v2016_v38 = vmul.f32 %v4632_v44, %v2015_v35  ;;  %v4103_v35 = vld [vmem:[#allocation10 + $0xc8] sm:$0xf]  ;;  %v4065_v14 = vld [vmem:[#allocation10 + $0x90] sm:$0xf0]  ;;  %v4009_v9 = vld [vmem:[#allocation10 + $0x18] sm:$0xf0] }
 0x3d6   :  { %vm2061_vm11 = vcmp.eq.f32.partialorder %v2060_v40, 8.507059e+37  ;;  %v4104_v48 = vor.u32 %v4514_v36, %v4103_v35  ;;  %v4071_v40 = vld [vmem:[#allocation10 + $0x88] sm:$0xf] }
 0x3d7   :  { %v4634_v50 = vpop.eup %4633  ;;  %v2017_v52 = vadd.f32 %v4632_v44, %v2016_v38  ;;  %v4100_v38 = vor.u32 %v4511_v31, %v4097_v45 }
 0x3d8   :  { %v4636_v39 = vpop.eup %4635  ;;  %v2033_v53 = vmul.f32 %v4634_v50, %v2031_v42  ;;  %vm2038_vm4 = vweird.f32 %v4634_v50  ;;  %v4095_v42 = vld [vmem:[#allocation10 + $0xc0] sm:$0xf]  ;;  %2621 = vmatpush.bf16.msrb.mxu2 %v4104_v48  ;;  %v4495_v48 = vld [vmem:[#allocation10 + $0x44] sm:$0xf] }
 0x3d9   :  { %v2021_v59 = vsel %vm2020_vm2, %v4632_v44, %v2017_v52  ;;  %v2052_v60 = vmul.f32 %v4636_v39, %v2050_v11  ;;  %v4638_v62 = vpop.eup %4637  ;;  %vm2039_vm6 = vmor %vm2037_vm5, %vm2038_vm4  ;;  %vm2057_vm8 = vweird.f32 %v4636_v39  ;;  %v4513_v44 = vld [vmem:[#allocation10 + $0xcc] sm:$0xf0]  ;;  %v4105_v52 = vld [vmem:[#allocation10 + $0xd8] sm:$0xf0]  ;;  %2608 = vmatpush.bf16.msrb.mxu1 %v4100_v38 }
 0x3da   :  { %v2026_v63 = vsel %vm2023_vm3, %v2025_v8, %v2021_v59  ;;  %v2034_v43 = vsub.f32 1.0, %v2033_v53  ;;  %vm2058_vm10 = vmor %vm2056_vm9, %vm2057_vm8  ;;  %v4096_v11 = vor.u32 %v4513_v44, %v4095_v42  ;;  %v4079_v8 = vld [vmem:[#allocation10 + $0xa0] sm:$0xf]  ;;  %v4509_v53 = vld [vmem:[#allocation10 + $0xac] sm:$0xf0] }
 0x3db   :  { %v2066_v58 = vmul.f32 %v4638_v62, %v2026_v63  ;;  %v2053_v3 = vsub.f32 1.0, %v2052_v60  ;;  %v4507_v59 = vld [vmem:[#allocation10 + $0xa4] sm:$0xf]  ;;  %v4080_v60 = vor.u32 %v4509_v53, %v4079_v8  ;;  %v4081_v62 = vld [vmem:[#allocation10 + $0xb0] sm:$0xf0] }
 0x3dc   :  { %v2035_v0 = vmul.f32 %v4634_v50, %v2034_v43  ;;  %v4087_v63 = vld [vmem:[#allocation10 + $0xa8] sm:$0xf]  ;;  %v4510_v43 = vld [vmem:[#allocation10 + $0xb4] sm:$0xf0]  ;;  %v4057_v42 = vld [vmem:[#allocation10 + $0x78] sm:$0xf0] }
 0x3dd   :  { %v2054_v19 = vmul.f32 %v4636_v39, %v2053_v3  ;;  %v4088_v46 = vor.u32 %v4510_v43, %v4087_v63  ;;  %v4031_v44 = vld [vmem:[#allocation10 + $0x40] sm:$0xf]  ;;  %v4060_v36 = vor.u32 %v4500_v1, %v4057_v42  ;;  %v4497_v38 = vld [vmem:[#allocation10 + $0x4c] sm:$0xf0]  ;;  %v4039_v8 = vld [vmem:[#allocation10 + $0x48] sm:$0xf] }
 0x3de   :  { %v2036_v16 = vadd.f32 %v4634_v50, %v2035_v0  ;;  %v4508_v0 = vld [vmem:[#allocation10 + $0xac] sm:$0xf]  ;;  %v4498_v53 = vld [vmem:[#allocation10 + $0x54] sm:$0xf0]  ;;  %v4041_v63 = vld [vmem:[#allocation10 + $0x58] sm:$0xf0] }
 0x3df   :  { %v2055_v2 = vadd.f32 %v4636_v39, %v2054_v19  ;;  %2622 = vmatpush.bf16.msrb.mxu2 %v4088_v46  ;;  %v4505_v19 = vld [vmem:[#allocation10 + $0x8c] sm:$0xf0] }
 0x3e0   :  { %v2040_v4 = vsel %vm2039_vm6, %v4634_v50, %v2036_v16  ;;  %v4512_v50 = vld [vmem:[#allocation10 + $0xcc] sm:$0xf]  ;;  %v4493_v46 = vld [vmem:[#allocation10 + $0x2c] sm:$0xf0] }
 0x3e1   :  { %v2045_v27 = vsel %vm2042_vm7, %v2044_v5, %v2040_v4  ;;  %v2059_v22 = vsel %vm2058_vm10, %v4636_v39, %v2055_v2  ;;  %v4108_v39 = vor.u32 %v4512_v50, %v4105_v52  ;;  %v4092_v5 = vor.u32 %v4508_v0, %v4089_v56  ;;  %v4033_v50 = vld [vmem:[#allocation10 + $0x50] sm:$0xf0]  ;;  %v4491_v0 = vld [vmem:[#allocation10 + $0x24] sm:$0xf] }
 0x3e2   :  { %v2067_v30 = vmul.f32 %v2045_v27, %v5032_v33  ;;  %v2064_v29 = vsel %vm2061_vm11, %v2063_v18, %v2059_v22  ;;  %v4111_v33 = vld [vmem:[#allocation10 + $0xe0] sm:$0xf]  ;;  %v4506_v22 = vld [vmem:[#allocation10 + $0x94] sm:$0xf0]  ;;  %v4032_v52 = vor.u32 %v4497_v38, %v4031_v44 }
 0x3e3   :  { %v4112_v25 = vor.u32 %v4517_v13, %v4111_v33  ;;  %2634 = vmatpush.bf16.msrb.mxu3 %v4108_v39  ;;  %v4063_v27 = vld [vmem:[#allocation10 + $0x80] sm:$0xf]  ;;  %v4501_v13 = vld [vmem:[#allocation10 + $0x6c] sm:$0xf0]  ;;  %v4036_v39 = vor.u32 %v4495_v48, %v4033_v50 }
 0x3e4   :  { %v5050_v23 = vadd.f32 %v2067_v30, %v2066_v58  ;;  %v4084_v58 = vor.u32 %v4507_v59, %v4081_v62  ;;  %v4503_v30 = vld [vmem:[#allocation10 + $0x84] sm:$0xf]  ;;  %v4064_v2 = vor.u32 %v4505_v19, %v4063_v27  ;;  %v4496_v59 = vld [vmem:[#allocation10 + $0x4c] sm:$0xf]  ;;  %v4494_v19 = vld [vmem:[#allocation10 + $0x34] sm:$0xf0] }
 0x3e5   :  { %2594 = vmatpush.bf16.msrb.mxu0 %v4112_v25  ;;  %v4044_v43 = vor.u32 %v4496_v59, %v4041_v63 }
 0x3e6   :  { %4639 = vtanh.f32 %v5050_v23  ;;  %2609 = vmatpush.bf16.msrb.mxu1 %v4084_v58  ;;  %v4015_v58 = vld [vmem:[#allocation10 + $0x20] sm:$0xf] }
 0x3e7   :  { %2635 = vmatpush.bf16.msrb.mxu3 %v4092_v5  ;;  %v4017_v5 = vld [vmem:[#allocation10 + $0x30] sm:$0xf0] }
 0x3e8   :  { %v4020_v27 = vor.u32 %v4491_v0, %v4017_v5 }
 0x3e9   :  { %2595 = vmatpush.bf16.msrb.mxu0 %v4096_v11 }
 0x3ec   :  { %v4640_v20 = vpop.eup %4639 }
 0x3ed   :  { %v2070_v41 = vmul.f32 %v4640_v20, %v2064_v29  ;;  %2596 = vmatpush.bf16.msrb.mxu0 %v4080_v60  ;;  %v4068_v20 = vor.u32 %v4503_v30, %v4065_v14  ;;  %v4072_v29 = vor.u32 %v4506_v22, %v4071_v40  ;;  %v4492_v30 = vld [vmem:[#allocation10 + $0x2c] sm:$0xf]  ;;  %v3999_v14 = vld [vmem:[#allocation10] sm:$0xf] }
 0x3ef   :  { %v2071_v32 = vpack.c.bf16 %v2070_v41, %v2070_v41  ;;  %v4504_v41 = vld [vmem:[#allocation10 + $0x8c] sm:$0xf]  ;;  %2610 = vmatpush.bf16.msrb.mxu1 %v4068_v20  ;;  %2623 = vmatpush.bf16.msrb.mxu2 %v4072_v29  ;;  %v4489_v29 = vld [vmem:[#allocation10 + $0xc] sm:$0xf0] }
 0x3f1   :  { %2073 = vst [vmem:[#allocation13 + $0x10] sm:$0xf] %v2071_v32  ;;  %2281 = vmatmul.bf16.vlgmr.msra.gmra.mxu0 %v2071_v32  ;;  %2294 = vmatmul.bf16.vlgmr.msra.gmra.mxu1 %v2071_v32 }
 0x3f2   :  { %2307 = vmatmul.bf16.vlgmr.msra.gmra.mxu2 %v2071_v32  ;;  %2320 = vmatmul.bf16.vlgmr.msra.gmra.mxu3 %v2071_v32  ;;  %v4073_v32 = vld [vmem:[#allocation10 + $0x98] sm:$0xf0] }
 0x3f3   :  { %2597 = vmatpush.bf16.msrb.mxu0 %v4064_v2  ;;  %v4076_v33 = vor.u32 %v4504_v41, %v4073_v32  ;;  %2611 = vmatpush.bf16.msrb.mxu1 %v4052_v6  ;;  %v4025_v2 = vld [vmem:[#allocation10 + $0x38] sm:$0xf0]  ;;  %v4487_v41 = vld [vmem:[#allocation10 + $0x4] sm:$0xf]  ;;  %v4001_v32 = vld [vmem:[#allocation10 + $0x10] sm:$0xf0] }
 0x3f4   :  { %2624 = vmatpush.bf16.msrb.mxu2 %v4056_v10  ;;  %v4028_v20 = vor.u32 %v4492_v30, %v4025_v2  ;;  %v4004_v61 = vor.u32 %v4487_v41, %v4001_v32  ;;  %v4244_v41 = vld [vmem:[#allocation10 + $0xf0] sm:$0xf0]  ;;  %v4250_v32 = vld [vmem:[#allocation10 + $0xe8] sm:$0xf] }
 0x3f5   :  { %2636 = vmatpush.bf16.msrb.mxu3 %v4076_v33  ;;  %v4000_v33 = vor.u32 %v4489_v29, %v3999_v14 }
 0x3f7   :  { %2612 = vmatpush.bf16.msrb.mxu1 %v4036_v39 }
 0x3f9   :  { %2637 = vmatpush.bf16.msrb.mxu3 %v4060_v36 }
 0x3fb   :  { %2613 = vmatpush.bf16.msrb.mxu1 %v4020_v27 }
 0x3fd   :  { %2638 = vmatpush.bf16.msrb.mxu3 %v4044_v43 }
 0x3ff   :  { %2614 = vmatpush.bf16.msrb.mxu1 %v4004_v61  ;;  %v4548_v61 = vld [vmem:[#allocation10 + $0xec] sm:$0xf] }
 0x401   :  { %2639 = vmatpush.bf16.msrb.mxu3 %v4028_v20  ;;  %v4547_v20 = vld [vmem:[#allocation10 + $0xe4] sm:$0xf] }
 0x46e   :  { %v5053_v3 = vpop.f32.mrf.mxu0  ;;  %v2295_v16 = vpop.f32.mrf.mxu1 }
 0x46f   :  { %v2326_v4 = vadd.f32 %v2295_v16, %v4935_v49  ;;  %v4047_v49 = vld [vmem:[#allocation10 + $0x60] sm:$0xf]  ;;  %v4016_v16 = vor.u32 %v4493_v46, %v4015_v58  ;;  %v2325_v1 = vadd.f32 %v5053_v3, %v4932_v47 }
 0x470   :  { %v4048_v25 = vor.u32 %v4501_v13, %v4047_v49  ;;  %v4007_v49 = vld [vmem:[#allocation10 + $0x8] sm:$0xf]  ;;  %v4490_v13 = vld [vmem:[#allocation10 + $0x14] sm:$0xf0] }
 0x471   :  { %v3994_v18 = vmul.f32 -1.442695, %v2326_v4  ;;  %v4023_v4 = vld [vmem:[#allocation10 + $0x28] sm:$0xf] }
 0x472   :  { %2598 = vmatpush.bf16.msrb.mxu0 %v4048_v25  ;;  %v4008_v25 = vor.u32 %v4490_v13, %v4007_v49  ;;  %v4247_v49 = vor.u32 %v4547_v20, %v4244_v41  ;;  %v4534_v20 = vld [vmem:[#allocation10 + $0x74] sm:$0xf0] }
 0x473   :  { %4641 = vpow2.f32 %v3994_v18  ;;  %v4024_v18 = vor.u32 %v4494_v19, %v4023_v4 }
 0x474   :  { %2928 = vmatpush.bf16.msra.mxu1 %v4247_v49  ;;  %v4532_v49 = vld [vmem:[#allocation10 + $0x6c] sm:$0xf] }
 0x475   :  { %v2308_v28 = vpop.f32.mrf.mxu2  ;;  %v2321_v37 = vpop.f32.mrf.mxu3 }
 0x476   :  { %v2327_v31 = vadd.f32 %v2308_v28, %v4938_v51  ;;  %v2328_v11 = vadd.f32 %v2321_v37, %v4941_v54  ;;  %v2284_v45 = vpop.f32.mrf.mxu0  ;;  %v2297_v35 = vpop.f32.mrf.mxu1  ;;  %v4040_v51 = vor.u32 %v4498_v53, %v4039_v8  ;;  %2599 = vmatpush.bf16.msrb.mxu0 %v4032_v52  ;;  %v4012_v28 = vor.u32 %v4488_v15, %v4009_v9  ;;  %v4226_v9 = vld [vmem:[#allocation10 + $0xc0] sm:$0xf] }
 0x478   :  { %v3995_v60 = vmul.f32 -1.442695, %v2327_v31  ;;  %v3996_v62 = vmul.f32 -1.442695, %v2328_v11  ;;  %2625 = vmatpush.bf16.msrb.mxu2 %v4040_v51  ;;  %2640 = vmatpush.bf16.msrb.mxu3 %v4012_v28  ;;  %v4543_v28 = vld [vmem:[#allocation10 + $0xc4] sm:$0xf] }
 0x479   :  { %v4642_v54 = vpop.eup %4641 }
 0x47a   :  { %v5058_v56 = vadd.f32 1.0, %v4642_v54  ;;  %4643 = vpow2.f32 %v3995_v60  ;;  %2600 = vmatpush.bf16.msrb.mxu0 %v4016_v16 }
 0x47b   :  { %4645 = vpow2.f32 %v3996_v62 }
 0x47c   :  { %4647 = vrcp.f32 %v5058_v56  ;;  %2626 = vmatpush.bf16.msrb.mxu2 %v4024_v18  ;;  %v2345_v11 = vand.u32 2147483648, %v5058_v56  ;;  %v2343_v35 = vand.u32 2147483647, %v5058_v56  ;;  %vm2339_vm13 = vweird.f32 %v5058_v56  ;;  %v4549_v18 = vld [vmem:[#allocation10 + $0xec] sm:$0xf0] }
 0x47d   :  { %v2310_v40 = vpop.f32.mrf.mxu2  ;;  %v2323_v22 = vpop.f32.mrf.mxu3 }
 0x47e   :  { %2601 = vmatpush.bf16.msrb.mxu0 %v4000_v33  ;;  %v2346_v3 = vor.u32 1.1754944e-38, %v2345_v11  ;;  %vm2344_vm15 = vcmp.eq.f32.partialorder %v2343_v35, 8.507059e+37  ;;  %v4550_v33 = vld [vmem:[#allocation10 + $0xf4] sm:$0xf0]  ;;  %v4236_v11 = vld [vmem:[#allocation10 + $0xd8] sm:$0xf0] }
 0x47f   :  { %v4251_v13 = vor.u32 %v4550_v33, %v4250_v32  ;;  %v4210_v35 = vld [vmem:[#allocation10 + $0xa0] sm:$0xf] }
 0x480   :  { %v4644_v17 = vpop.eup %4643  ;;  %2627 = vmatpush.bf16.msrb.mxu2 %v4008_v25  ;;  %v4252_v25 = vld [vmem:[#allocation10 + $0xf8] sm:$0xf0] }
 0x481   :  { %v4646_v37 = vpop.eup %4645  ;;  %v2352_v6 = vadd.f32 1.0, %v4644_v17  ;;  %v4255_v15 = vor.u32 %v4548_v61, %v4252_v25  ;;  %v4545_v17 = vld [vmem:[#allocation10 + $0xcc] sm:$0xf0]  ;;  %v4162_v61 = vld [vmem:[#allocation10 + $0x40] sm:$0xf] }
 0x482   :  { %v4648_v10 = vpop.eup %4647  ;;  %v2371_v42 = vadd.f32 1.0, %v4646_v37  ;;  %v4227_v37 = vor.u32 %v4545_v17, %v4226_v9 }
 0x483   :  { %v2335_v44 = vmul.f32 %v4648_v10, %v5058_v56  ;;  %4649 = vrcp.f32 %v2352_v6  ;;  %vm2340_vm12 = vweird.f32 %v4648_v10  ;;  %v2364_v60 = vand.u32 2147483648, %v2352_v6  ;;  %2954 = vmatpush.bf16.msra.mxu3 %v4255_v15 }
 0x484   :  { %4651 = vrcp.f32 %v2371_v42  ;;  %vm2341_vm14 = vmor %vm2339_vm13, %vm2340_vm12  ;;  %v2362_v51 = vand.u32 2147483647, %v2352_v6  ;;  %vm2358_vm1 = vweird.f32 %v2352_v6  ;;  %v2383_v4 = vand.u32 2147483648, %v2371_v42  ;;  %2941 = vmatpush.bf16.msra.mxu2 %v4251_v13  ;;  %v4188_v13 = vld [vmem:[#allocation10 + $0x78] sm:$0xf0] }
 0x485   :  { %v2336_v31 = vsub.f32 1.0, %v2335_v44  ;;  %4653 = vtanh.f32 %v2325_v1  ;;  %v2365_v43 = vor.u32 1.1754944e-38, %v2364_v60  ;;  %vm2377_vm5 = vweird.f32 %v2371_v42  ;;  %v4546_v1 = vld [vmem:[#allocation10 + $0xd4] sm:$0xf0] }
 0x486   :  { %vm2363_vm3 = vcmp.eq.f32.partialorder %v2362_v51, 8.507059e+37  ;;  %v2381_v27 = vand.u32 2147483647, %v2371_v42  ;;  %v2384_v30 = vor.u32 1.1754944e-38, %v2383_v4 }
 0x487   :  { %v2337_v45 = vmul.f32 %v4648_v10, %v2336_v31  ;;  %v4544_v31 = vld [vmem:[#allocation10 + $0xcc] sm:$0xf] }
 0x488   :  { %vm2382_vm7 = vcmp.eq.f32.partialorder %v2381_v27, 8.507059e+37 }
 0x489   :  { %v4650_v36 = vpop.eup %4649  ;;  %v2338_v38 = vadd.f32 %v4648_v10, %v2337_v45  ;;  %v4239_v45 = vor.u32 %v4544_v31, %v4236_v11  ;;  %v4530_v31 = vld [vmem:[#allocation10 + $0x54] sm:$0xf0]  ;;  %v4528_v11 = vld [vmem:[#allocation10 + $0x4c] sm:$0xf] }
 0x48a   :  { %v4652_v47 = vpop.eup %4651  ;;  %v2354_v48 = vmul.f32 %v4650_v36, %v2352_v6  ;;  %vm2359_vm0 = vweird.f32 %v4650_v36  ;;  %v4228_v6 = vld [vmem:[#allocation10 + $0xd0] sm:$0xf0] }
 0x48b   :  { %v2342_v50 = vsel %vm2341_vm14, %v4648_v10, %v2338_v38  ;;  %v2373_v52 = vmul.f32 %v4652_v47, %v2371_v42  ;;  %v4654_v39 = vpop.eup %4653  ;;  %vm2360_vm2 = vmor %vm2358_vm1, %vm2359_vm0  ;;  %vm2378_vm4 = vweird.f32 %v4652_v47  ;;  %v4234_v10 = vld [vmem:[#allocation10 + $0xc8] sm:$0xf]  ;;  %v4231_v42 = vor.u32 %v4543_v28, %v4228_v6  ;;  %v4539_v38 = vld [vmem:[#allocation10 + $0xa4] sm:$0xf]  ;;  %2955 = vmatpush.bf16.msra.mxu3 %v4239_v45 }
 0x48c   :  { %v2347_v8 = vsel %vm2344_vm15, %v2346_v3, %v2342_v50  ;;  %v2355_v53 = vsub.f32 1.0, %v2354_v48  ;;  %vm2379_vm6 = vmor %vm2377_vm5, %vm2378_vm4  ;;  %v4235_v44 = vor.u32 %v4546_v1, %v4234_v10  ;;  %v4212_v3 = vld [vmem:[#allocation10 + $0xb0] sm:$0xf0]  ;;  %v4218_v48 = vld [vmem:[#allocation10 + $0xa8] sm:$0xf]  ;;  %v4191_v28 = vor.u32 %v4532_v49, %v4188_v13 }
 0x48d   :  { %v2387_v59 = vmul.f32 %v4654_v39, %v2347_v8  ;;  %v2374_v63 = vsub.f32 1.0, %v2373_v52  ;;  %2929 = vmatpush.bf16.msra.mxu1 %v4231_v42  ;;  %v4542_v50 = vld [vmem:[#allocation10 + $0xb4] sm:$0xf0]  ;;  %v4215_v52 = vor.u32 %v4539_v38, %v4212_v3  ;;  %v4540_v8 = vld [vmem:[#allocation10 + $0xac] sm:$0xf] }
 0x48e   :  { %v2356_v62 = vmul.f32 %v4650_v36, %v2355_v53  ;;  %2942 = vmatpush.bf16.msra.mxu2 %v4235_v44  ;;  %v4219_v39 = vor.u32 %v4542_v50, %v4218_v48  ;;  %v4220_v53 = vld [vmem:[#allocation10 + $0xb8] sm:$0xf0]  ;;  %v4527_v6 = vld [vmem:[#allocation10 + $0x44] sm:$0xf]  ;;  %v4164_v10 = vld [vmem:[#allocation10 + $0x50] sm:$0xf0] }
 0x48f   :  { %v2375_v0 = vmul.f32 %v4652_v47, %v2374_v63  ;;  %v4194_v63 = vld [vmem:[#allocation10 + $0x80] sm:$0xf]  ;;  %v4167_v42 = vor.u32 %v4527_v6, %v4164_v10  ;;  %v4170_v44 = vld [vmem:[#allocation10 + $0x48] sm:$0xf]  ;;  %v4525_v3 = vld [vmem:[#allocation10 + $0x2c] sm:$0xf0] }
 0x490   :  { %v2357_v54 = vadd.f32 %v4650_v36, %v2356_v62  ;;  %v4223_v62 = vor.u32 %v4540_v8, %v4220_v53  ;;  %v4523_v48 = vld [vmem:[#allocation10 + $0x24] sm:$0xf]  ;;  %v4154_v8 = vld [vmem:[#allocation10 + $0x28] sm:$0xf] }
 0x491   :  { %v2376_v5 = vadd.f32 %v4652_v47, %v2375_v0  ;;  %2930 = vmatpush.bf16.msra.mxu1 %v4215_v52  ;;  %v4202_v0 = vld [vmem:[#allocation10 + $0x88] sm:$0xf] }
 0x492   :  { %v2361_v58 = vsel %vm2360_vm2, %v4650_v36, %v2357_v54  ;;  %v4541_v36 = vld [vmem:[#allocation10 + $0xac] sm:$0xf0]  ;;  %2943 = vmatpush.bf16.msra.mxu2 %v4219_v39  ;;  %2956 = vmatpush.bf16.msra.mxu3 %v4223_v62  ;;  %v4148_v39 = vld [vmem:[#allocation10 + $0x30] sm:$0xf0]  ;;  %v4524_v62 = vld [vmem:[#allocation10 + $0x2c] sm:$0xf] }
 0x493   :  { %v2366_v46 = vsel %vm2363_vm3, %v2365_v43, %v2361_v58  ;;  %v2380_v19 = vsel %vm2379_vm6, %v4652_v47, %v2376_v5  ;;  %v4211_v47 = vor.u32 %v4541_v36, %v4210_v35  ;;  %v4537_v54 = vld [vmem:[#allocation10 + $0x8c] sm:$0xf0]  ;;  %v4535_v43 = vld [vmem:[#allocation10 + $0x84] sm:$0xf]  ;;  %v4172_v36 = vld [vmem:[#allocation10 + $0x58] sm:$0xf0]  ;;  %v4151_v53 = vor.u32 %v4523_v48, %v4148_v39 }
 0x494   :  { %v2388_v56 = vmul.f32 %v2366_v46, %v5050_v23  ;;  %v2385_v14 = vsel %vm2382_vm7, %v2384_v30, %v2380_v19  ;;  %v4242_v23 = vld [vmem:[#allocation10 + $0xe0] sm:$0xf]  ;;  %v4195_v58 = vor.u32 %v4537_v54, %v4194_v63  ;;  %v4196_v46 = vld [vmem:[#allocation10 + $0x90] sm:$0xf0]  ;;  %v4536_v19 = vld [vmem:[#allocation10 + $0x8c] sm:$0xf]  ;;  %v4175_v38 = vor.u32 %v4528_v11, %v4172_v36 }
 0x495   :  { %v4243_v29 = vor.u32 %v4549_v18, %v4242_v23  ;;  %v4199_v4 = vor.u32 %v4535_v43, %v4196_v46  ;;  %v4204_v30 = vld [vmem:[#allocation10 + $0x98] sm:$0xf0]  ;;  %v4180_v23 = vld [vmem:[#allocation10 + $0x70] sm:$0xf0]  ;;  %v4186_v18 = vld [vmem:[#allocation10 + $0x68] sm:$0xf] }
 0x496   :  { %v5068_v16 = vadd.f32 %v2388_v56, %v2387_v59  ;;  %v4538_v56 = vld [vmem:[#allocation10 + $0x94] sm:$0xf0]  ;;  %v4187_v33 = vor.u32 %v4534_v20, %v4186_v18  ;;  %v4130_v63 = vld [vmem:[#allocation10] sm:$0xf] }
 0x497   :  { %2915 = vmatpush.bf16.msra.mxu0 %v4243_v29  ;;  %v4203_v27 = vor.u32 %v4538_v56, %v4202_v0  ;;  %2931 = vmatpush.bf16.msra.mxu1 %v4199_v4  ;;  %v4521_v0 = vld [vmem:[#allocation10 + $0xc] sm:$0xf0]  ;;  %v4519_v56 = vld [vmem:[#allocation10 + $0x4] sm:$0xf] }
 0x498   :  { %4655 = vtanh.f32 %v5068_v16  ;;  %v4131_v4 = vor.u32 %v4521_v0, %v4130_v63 }
 0x499   :  { %2944 = vmatpush.bf16.msra.mxu2 %v4203_v27  ;;  %v4138_v27 = vld [vmem:[#allocation10 + $0x8] sm:$0xf] }
 0x49b   :  { %2916 = vmatpush.bf16.msra.mxu0 %v4227_v37  ;;  %v4529_v37 = vld [vmem:[#allocation10 + $0x4c] sm:$0xf0] }
 0x49c   :  { %v4163_v1 = vor.u32 %v4529_v37, %v4162_v61 }
 0x49d   :  { %2945 = vmatpush.bf16.msra.mxu2 %v4187_v33 }
 0x49e   :  { %v4656_v2 = vpop.eup %4655 }
 0x49f   :  { %v2391_v40 = vmul.f32 %v4656_v2, %v2385_v14  ;;  %2917 = vmatpush.bf16.msra.mxu0 %v4211_v47  ;;  %v4207_v2 = vor.u32 %v4536_v19, %v4204_v30  ;;  %v4533_v14 = vld [vmem:[#allocation10 + $0x6c] sm:$0xf0]  ;;  %v4146_v47 = vld [vmem:[#allocation10 + $0x20] sm:$0xf]  ;;  %v4522_v19 = vld [vmem:[#allocation10 + $0x14] sm:$0xf0] }
 0x4a0   :  { %v4147_v52 = vor.u32 %v4525_v3, %v4146_v47 }
 0x4a1   :  { %v2392_v22 = vpack.c.bf16 %v2391_v40, %v2391_v40  ;;  %v4531_v40 = vld [vmem:[#allocation10 + $0x64] sm:$0xf]  ;;  %2957 = vmatpush.bf16.msra.mxu3 %v4207_v2  ;;  %v4139_v2 = vor.u32 %v4522_v19, %v4138_v27 }
 0x4a2   :  { %v4183_v32 = vor.u32 %v4531_v40, %v4180_v23 }
 0x4a3   :  { %2394 = vst [vmem:[#allocation13 + $0x14] sm:$0xf] %v2392_v22  ;;  %2602 = vmatmul.bf16.vlgmr.msrb.gmra.mxu0 %v2392_v22  ;;  %2615 = vmatmul.bf16.vlgmr.msrb.gmra.mxu1 %v2392_v22 }
 0x4a4   :  { %2628 = vmatmul.bf16.vlgmr.msrb.gmra.mxu2 %v2392_v22  ;;  %2641 = vmatmul.bf16.vlgmr.msrb.gmra.mxu3 %v2392_v22 }
 0x4a5   :  { %2918 = vmatpush.bf16.msra.mxu0 %v4195_v58  ;;  %2932 = vmatpush.bf16.msra.mxu1 %v4183_v32 }
 0x4a6   :  { %2958 = vmatpush.bf16.msra.mxu3 %v4191_v28 }
 0x4a9   :  { %2933 = vmatpush.bf16.msra.mxu1 %v4167_v42 }
 0x4aa   :  { %2959 = vmatpush.bf16.msra.mxu3 %v4175_v38 }
 0x4ad   :  { %2934 = vmatpush.bf16.msra.mxu1 %v4151_v53 }
 0x520   :  { %v5071_v59 = vpop.f32.mrf.mxu0  ;;  %v2616_v60 = vpop.f32.mrf.mxu1 }
 0x521   :  { %v2647_v51 = vadd.f32 %v2616_v60, %v4947_v57  ;;  %v4178_v57 = vld [vmem:[#allocation10 + $0x60] sm:$0xf]  ;;  %v4526_v60 = vld [vmem:[#allocation10 + $0x34] sm:$0xf0] }
 0x522   :  { %v4179_v22 = vor.u32 %v4533_v14, %v4178_v57  ;;  %v4155_v58 = vor.u32 %v4526_v60, %v4154_v8  ;;  %v4520_v57 = vld [vmem:[#allocation10 + $0xc] sm:$0xf]  ;;  %v4140_v14 = vld [vmem:[#allocation10 + $0x18] sm:$0xf0] }
 0x523   :  { %v4125_v5 = vmul.f32 -1.442695, %v2647_v51  ;;  %v4156_v51 = vld [vmem:[#allocation10 + $0x38] sm:$0xf0] }
 0x524   :  { %2919 = vmatpush.bf16.msra.mxu0 %v4179_v22  ;;  %v4159_v46 = vor.u32 %v4524_v62, %v4156_v51  ;;  %v4143_v22 = vor.u32 %v4520_v57, %v4140_v14 }
 0x525   :  { %4657 = vpow2.f32 %v4125_v5  ;;  %v4132_v5 = vld [vmem:[#allocation10 + $0x10] sm:$0xf0] }
 0x526   :  { %v4135_v30 = vor.u32 %v4519_v56, %v4132_v5  ;;  %2960 = vmatpush.bf16.msra.mxu3 %v4159_v46 }
 0x527   :  { %v2629_v29 = vpop.f32.mrf.mxu2  ;;  %v2642_v41 = vpop.f32.mrf.mxu3 }
 0x528   :  { %v2648_v25 = vadd.f32 %v2629_v29, %v4950_v12  ;;  %v2649_v15 = vadd.f32 %v2642_v41, %v4953_v21  ;;  %v2605_v9 = vpop.f32.mrf.mxu0  ;;  %v2618_v17 = vpop.f32.mrf.mxu1  ;;  %v4171_v12 = vor.u32 %v4530_v31, %v4170_v44  ;;  %2920 = vmatpush.bf16.msra.mxu0 %v4163_v1  ;;  %v2646_v29 = vadd.f32 %v5071_v59, %v4944_v55 }
 0x529   :  { %2935 = vmatpush.bf16.msra.mxu1 %v4135_v30 }
 0x52a   :  { %v4126_v45 = vmul.f32 -1.442695, %v2648_v25  ;;  %v4127_v35 = vmul.f32 -1.442695, %v2649_v15  ;;  %2946 = vmatpush.bf16.msra.mxu2 %v4171_v12  ;;  %2961 = vmatpush.bf16.msra.mxu3 %v4143_v22 }
 0x52b   :  { %v4658_v21 = vpop.eup %4657 }
 0x52c   :  { %v5076_v50 = vadd.f32 1.0, %v4658_v21  ;;  %4659 = vpow2.f32 %v4126_v45  ;;  %2921 = vmatpush.bf16.msra.mxu0 %v4147_v52 }
 0x52d   :  { %4661 = vpow2.f32 %v4127_v35 }
 0x52e   :  { %4663 = vrcp.f32 %v5076_v50  ;;  %2947 = vmatpush.bf16.msra.mxu2 %v4155_v58  ;;  %v2666_v49 = vand.u32 2147483648, %v5076_v50  ;;  %v2664_v61 = vand.u32 2147483647, %v5076_v50  ;;  %vm2660_vm9 = vweird.f32 %v5076_v50 }
 0x52f   :  { %v2631_v54 = vpop.f32.mrf.mxu2  ;;  %v2644_v43 = vpop.f32.mrf.mxu3 }
 0x530   :  { %2922 = vmatpush.bf16.msra.mxu0 %v4131_v4  ;;  %v2667_v59 = vor.u32 1.1754944e-38, %v2666_v49  ;;  %vm2665_vm11 = vcmp.eq.f32.partialorder %v2664_v61, 8.507059e+37 }
 0x532   :  { %v4660_v40 = vpop.eup %4659  ;;  %2948 = vmatpush.bf16.msra.mxu2 %v4139_v2 }
 0x533   :  { %v4662_v23 = vpop.eup %4661  ;;  %v2673_v18 = vadd.f32 1.0, %v4660_v40 }
 0x534   :  { %v4664_v20 = vpop.eup %4663  ;;  %v2692_v41 = vadd.f32 1.0, %v4662_v23 }
 0x535   :  { %v2656_v32 = vmul.f32 %v4664_v20, %v5076_v50  ;;  %4665 = vrcp.f32 %v2673_v18  ;;  %vm2661_vm8 = vweird.f32 %v4664_v20  ;;  %v2685_v42 = vand.u32 2147483648, %v2673_v18 }
 0x536   :  { %4667 = vrcp.f32 %v2692_v41  ;;  %vm2662_vm10 = vmor %vm2660_vm9, %vm2661_vm8  ;;  %v2683_v31 = vand.u32 2147483647, %v2673_v18  ;;  %vm2679_vm13 = vweird.f32 %v2673_v18  ;;  %v2704_v48 = vand.u32 2147483648, %v2692_v41 }
 0x537   :  { %v2657_v33 = vsub.f32 1.0, %v2656_v32  ;;  %4669 = vtanh.f32 %v2646_v29  ;;  %v2686_v35 = vor.u32 1.1754944e-38, %v2685_v42  ;;  %vm2698_vm1 = vweird.f32 %v2692_v41 }
 0x538   :  { %vm2684_vm15 = vcmp.eq.f32.partialorder %v2683_v31, 8.507059e+37  ;;  %v2702_v50 = vand.u32 2147483647, %v2692_v41  ;;  %v2705_v39 = vor.u32 1.1754944e-38, %v2704_v48 }
 0x539   :  { %v2658_v13 = vmul.f32 %v4664_v20, %v2657_v33 }
 0x53a   :  { %vm2703_vm3 = vcmp.eq.f32.partialorder %v2702_v50, 8.507059e+37 }
 0x53b   :  { %v4666_v25 = vpop.eup %4665  ;;  %v2659_v15 = vadd.f32 %v4664_v20, %v2658_v13 }
 0x53c   :  { %v4668_v55 = vpop.eup %4667  ;;  %v2675_v9 = vmul.f32 %v4666_v25, %v2673_v18  ;;  %vm2680_vm12 = vweird.f32 %v4666_v25 }
 0x53d   :  { %v2663_v17 = vsel %vm2662_vm10, %v4664_v20, %v2659_v15  ;;  %v2694_v28 = vmul.f32 %v4668_v55, %v2692_v41  ;;  %v4670_v37 = vpop.eup %4669  ;;  %vm2681_vm14 = vmor %vm2679_vm13, %vm2680_vm12  ;;  %vm2699_vm0 = vweird.f32 %v4668_v55 }
 0x53e   :  { %v2668_v6 = vsel %vm2665_vm11, %v2667_v59, %v2663_v17  ;;  %v2676_v10 = vsub.f32 1.0, %v2675_v9  ;;  %vm2700_vm2 = vmor %vm2698_vm1, %vm2699_vm0 }
 0x53f   :  { %v2708_v1 = vmul.f32 %v4670_v37, %v2668_v6  ;;  %v2695_v11 = vsub.f32 1.0, %v2694_v28 }
 0x540   :  { %v2677_v44 = vmul.f32 %v4666_v25, %v2676_v10 }
 0x541   :  { %v2696_v21 = vmul.f32 %v4668_v55, %v2695_v11 }
 0x542   :  { %v2678_v45 = vadd.f32 %v4666_v25, %v2677_v44 }
 0x543   :  { %v2697_v3 = vadd.f32 %v4668_v55, %v2696_v21 }
 0x544   :  { %v2682_v12 = vsel %vm2681_vm14, %v4666_v25, %v2678_v45 }
 0x545   :  { %v2687_v36 = vsel %vm2684_vm15, %v2686_v35, %v2682_v12  ;;  %v2701_v52 = vsel %vm2700_vm2, %v4668_v55, %v2697_v3 }
 0x546   :  { %v2709_v38 = vmul.f32 %v2687_v36, %v5068_v16  ;;  %v2706_v53 = vsel %vm2703_vm3, %v2705_v39, %v2701_v52 }
 0x548   :  { %v5086_v47 = vadd.f32 %v2709_v38, %v2708_v1 }
 0x54a   :  { %4671 = vtanh.f32 %v5086_v47 }
 0x550   :  { %v4672_v8 = vpop.eup %4671 }
 0x551   :  { %v2712_v60 = vmul.f32 %v4672_v8, %v2706_v53 }
 0x553   :  { %v2713_v62 = vpack.c.bf16 %v2712_v60, %v2712_v60 }
 0x555   :  { %2715 = vst [vmem:[#allocation13 + $0x18] sm:$0xf] %v2713_v62  ;;  %2923 = vmatmul.bf16.vlgmr.msra.gmra.mxu0 %v2713_v62  ;;  %2936 = vmatmul.bf16.vlgmr.msra.gmra.mxu1 %v2713_v62 }
 0x556   :  { %2949 = vmatmul.bf16.vlgmr.msra.gmra.mxu2 %v2713_v62  ;;  %2962 = vmatmul.bf16.vlgmr.msra.gmra.mxu3 %v2713_v62 }
 0x5d2   :  { %v2924_v16 = vpop.f32.mrf.mxu0  ;;  %v2937_v51 = vpop.f32.mrf.mxu1 }
 0x5d3   :  { %v2968_v63 = vadd.f32 %v2937_v51, %v4959_v34  ;;  %v2967_v23 = vadd.f32 %v2924_v16, %v4956_v24 }
 0x5d5   :  { %v4256_v54 = vmul.f32 -1.442695, %v2968_v63 }
 0x5d7   :  { %4673 = vpow2.f32 %v4256_v54 }
 0x5d9   :  { %v2950_v43 = vpop.f32.mrf.mxu2  ;;  %v2963_v58 = vpop.f32.mrf.mxu3 }
 0x5da   :  { %v2969_v46 = vadd.f32 %v2950_v43, %v4964_v7  ;;  %v2970_v0 = vadd.f32 %v2963_v58, %v4969_v26  ;;  %v2926_v56 = vpop.f32.mrf.mxu0  ;;  %v2939_v5 = vpop.f32.mrf.mxu1 }
 0x5dc   :  { %v4257_v4 = vmul.f32 -1.442695, %v2969_v46  ;;  %v4258_v27 = vmul.f32 -1.442695, %v2970_v0 }
 0x5dd   :  { %v4674_v19 = vpop.eup %4673 }
 0x5de   :  { %v2975_v30 = vadd.f32 1.0, %v4674_v19  ;;  %4675 = vpow2.f32 %v4257_v4 }
 0x5df   :  { %4677 = vpow2.f32 %v4258_v27 }
 0x5e0   :  { %4679 = vrcp.f32 %v2975_v30  ;;  %v2987_v20 = vand.u32 2147483648, %v2975_v30  ;;  %v2985_v41 = vand.u32 2147483647, %v2975_v30  ;;  %vm2981_vm5 = vweird.f32 %v2975_v30 }
 0x5e1   :  { %v2952_v2 = vpop.f32.mrf.mxu2  ;;  %v2965_v57 = vpop.f32.mrf.mxu3 }
 0x5e2   :  { %v2988_v13 = vor.u32 1.1754944e-38, %v2987_v20  ;;  %vm2986_vm7 = vcmp.eq.f32.partialorder %v2985_v41, 8.507059e+37 }
 0x5e4   :  { %v4676_v34 = vpop.eup %4675 }
 0x5e5   :  { %v4678_v14 = vpop.eup %4677  ;;  %v2994_v40 = vadd.f32 1.0, %v4676_v34 }
 0x5e6   :  { %v4680_v22 = vpop.eup %4679  ;;  %v3013_v7 = vadd.f32 1.0, %v4678_v14 }
 0x5e7   :  { %v2977_v18 = vmul.f32 %v4680_v22, %v2975_v30  ;;  %4681 = vrcp.f32 %v2994_v40  ;;  %vm2982_vm4 = vweird.f32 %v4680_v22  ;;  %v3006_v17 = vand.u32 2147483648, %v2994_v40 }
 0x5e8   :  { %4683 = vrcp.f32 %v3013_v7  ;;  %vm2983_vm6 = vmor %vm2981_vm5, %vm2982_vm4  ;;  %v3004_v37 = vand.u32 2147483647, %v2994_v40  ;;  %vm3000_vm9 = vweird.f32 %v2994_v40  ;;  %v3025_v12 = vand.u32 2147483648, %v3013_v7 }
 0x5e9   :  { %v2978_v26 = vsub.f32 1.0, %v2977_v18  ;;  %4685 = vtanh.f32 %v2967_v23  ;;  %v3007_v1 = vor.u32 1.1754944e-38, %v3006_v17  ;;  %vm3019_vm13 = vweird.f32 %v3013_v7 }
 0x5ea   :  { %vm3005_vm11 = vcmp.eq.f32.partialorder %v3004_v37, 8.507059e+37  ;;  %v3023_v36 = vand.u32 2147483647, %v3013_v7  ;;  %v3026_v38 = vor.u32 1.1754944e-38, %v3025_v12 }
 0x5eb   :  { %v2979_v29 = vmul.f32 %v4680_v22, %v2978_v26 }
 0x5ec   :  { %vm3024_vm15 = vcmp.eq.f32.partialorder %v3023_v36, 8.507059e+37 }
 0x5ed   :  { %v4682_v32 = vpop.eup %4681  ;;  %v2980_v33 = vadd.f32 %v4680_v22, %v2979_v29 }
 0x5ee   :  { %v4684_v49 = vpop.eup %4683  ;;  %v2996_v61 = vmul.f32 %v4682_v32, %v2994_v40  ;;  %vm3001_vm8 = vweird.f32 %v4682_v32 }
 0x5ef   :  { %v2984_v25 = vsel %vm2983_vm6, %v4680_v22, %v2980_v33  ;;  %v3015_v24 = vmul.f32 %v4684_v49, %v3013_v7  ;;  %v4686_v15 = vpop.eup %4685  ;;  %vm3002_vm10 = vmor %vm3000_vm9, %vm3001_vm8  ;;  %vm3020_vm12 = vweird.f32 %v4684_v49 }
 0x5f0   :  { %v2989_v55 = vsel %vm2986_vm7, %v2988_v13, %v2984_v25  ;;  %v2997_v59 = vsub.f32 1.0, %v2996_v61  ;;  %vm3021_vm14 = vmor %vm3019_vm13, %vm3020_vm12 }
 0x5f1   :  { %v3029_v9 = vmul.f32 %v4686_v15, %v2989_v55  ;;  %v3016_v6 = vsub.f32 1.0, %v3015_v24 }
 0x5f2   :  { %v2998_v28 = vmul.f32 %v4682_v32, %v2997_v59 }
 0x5f3   :  { %v3017_v31 = vmul.f32 %v4684_v49, %v3016_v6 }
 0x5f4   :  { %v2999_v10 = vadd.f32 %v4682_v32, %v2998_v28 }
 0x5f5   :  { %v3018_v35 = vadd.f32 %v4684_v49, %v3017_v31 }
 0x5f6   :  { %v3003_v42 = vsel %vm3002_vm10, %v4682_v32, %v2999_v10 }
 0x5f7   :  { %v3008_v44 = vsel %vm3005_vm11, %v3007_v1, %v3003_v42  ;;  %v3022_v21 = vsel %vm3021_vm14, %v4684_v49, %v3018_v35 }
 0x5f8   :  { %v3030_v11 = vmul.f32 %v3008_v44, %v5086_v47  ;;  %v3027_v48 = vsel %vm3024_vm15, %v3026_v38, %v3022_v21 }
 0x5fa   :  { %v3031_v45 = vadd.f32 %v3030_v11, %v3029_v9 }
 0x5fc   :  { %4687 = vtanh.f32 %v3031_v45 }
 0x602   :  { %v4688_v3 = vpop.eup %4687 }
 0x603   :  { %v3033_v47 = vmul.f32 %v4688_v3, %v3027_v48 }
 0x605   :  { %v3034_v50 = vpack.c.bf16 %v3033_v47, %v3033_v47 }
 0x607   :  { %3036 = vst [vmem:[#allocation13 + $0x1c] sm:$0xf] %v3034_v50 }
 0x608   :  { %3051 = dma.vmem_to_hbm [thread:$0]  %s3044_s3, 512, %s3046_s13, [#allocation7], %s4821_s27, %s4821_s27, %s4822_s28  }
 0x609   :  { %4815 = dma.done.wait [#allocation7], 512  }
 0x60a   :  { %4816 = vsyncadd [#allocation7], 4294966784 }
 0x60b   :  { %3056 = vsyncpa [#allocation6], 1 }
 0x60c   :  { %3057 = vsyncpa [#allocation9], 1 }
 0x60d   :  { %3058 = vsyncpa [#allocation12], 1 }
 0x60e   :  { %3059 = vsyncpa [#allocation7], 1 }

</bundles_post_ra>
